<compile_context>
chip_gen: v7x
topology: tpu7x:2x2x1
jax: 0.10.0
libtpu: 0.0.40
codegen_flags: <defaults>
</compile_context>

<pallas_src>
import numpy as np
import jax
import jax.numpy as jnp
from jax import lax
from jax.experimental import pallas as pl
from jax.experimental.pallas import tpu as pltpu

LANES = 128
TB = 8          # images per grid step (batch tile); multiple of 8 for the out BlockSpec
K1 = 32         # conv1 im2col contraction (25 taps zero-padded to 32)


# ----------------------------------------------------------------------------
# Fused forward-pass kernel: one grid step == TB images
# ----------------------------------------------------------------------------
def _lenet_kernel(x_ref, w1_ref, b1_ref, w2_ref, b2_ref,
                  wf1_ref, bf1_ref, wf2_ref, bf2_ref, wo_ref, bo_ref,
                  out_ref,
                  ps1_ref, hp1_ref, ps2_ref, hp2_ref):
    f32, bf16 = jnp.float32, jnp.bfloat16

    def per_image(i, carry):
        # ---- conv1 as an im2col MXU GEMM, fused with the 2x2/2 max-pool -----
        # 3 chunks x 192 im2col rows (= 8 conv rows = 4 pooled rows) per image;
        # bias+relu are applied after pooling (valid: per-channel bias, monotone relu).
        for c in range(3):
            lhs = x_ref[pl.ds(i, 1), pl.ds(c * 192, 192), :].reshape(192, K1)  # bf16
            y = jnp.dot(lhs, w1_ref[...], preferred_element_type=f32)   # (192,128)
            y = y.reshape(4, 2, 24, LANES)                              # free reshape
            ps1_ref[...] = jnp.maximum(y[:, 0], y[:, 1])                # row max
            ev = ps1_ref[:, pl.ds(0, 12, stride=2), :]                  # strided ref reads
            od = ps1_ref[:, pl.ds(1, 12, stride=2), :]
            hp1_ref[pl.ds(c * 4, 4)] = jnp.maximum(
                jnp.maximum(ev, od) + b1_ref[...], 0.0)                 # (4,12,128)

        # ---- conv2: 25 shifted-window MXU GEMMs, f32 register accumulator ---
        acc2 = jnp.zeros((64, LANES), f32)
        for kh in range(5):
            for kw in range(5):
                win = hp1_ref[pl.ds(kh, 8), pl.ds(kw, 8), :]            # (8,8,128) ref read
                acc2 = acc2 + jnp.dot(win.reshape(64, LANES).astype(bf16),
                                      w2_ref[kh * 5 + kw],
                                      preferred_element_type=f32)
        h2 = jnp.maximum(acc2 + b2_ref[...], 0.0)                       # (64,128)

        # ---- 2x2/2 max-pool, emitted directly in (p = 4*ph + pw) row order --
        h2 = h2.reshape(4, 2, 8, LANES)                                 # free reshape
        ps2_ref[...] = jnp.maximum(h2[:, 0], h2[:, 1]).reshape(32, LANES)
        hp2 = jnp.maximum(ps2_ref[pl.ds(0, 16, stride=2), :],
                          ps2_ref[pl.ds(1, 16, stride=2), :])           # (16,128)
        hp2_ref[pl.ds(pl.multiple_of(i * 16, 16), 16), :] = hp2
        return carry

    lax.fori_loop(0, TB, per_image, 0)

    # ---- fc1 as a K-accumulated contraction over the 16 spatial positions ----
    accf = jnp.zeros((TB, LANES), f32)
    for p in range(16):
        lhs = hp2_ref[pl.ds(p, TB, stride=16), :].astype(bf16)          # (TB,128)
        accf = accf + jnp.dot(lhs, wf1_ref[p], preferred_element_type=f32)
    z = jnp.maximum(accf + bf1_ref[...], 0.0)                           # (TB,128)

    # ---- fc2 -> relu -> out -> softmax (padded logit lanes carry -1e30 bias) -
    z = jnp.maximum(jnp.dot(z.astype(bf16), wf2_ref[...],
                            preferred_element_type=f32) + bf2_ref[...], 0.0)
    logits = jnp.dot(z.astype(bf16), wo_ref[...],
                     preferred_element_type=f32) + bo_ref[...]
    m = jnp.max(logits, axis=-1, keepdims=True)
    e = jnp.exp(logits - m)
    out_ref[...] = e / jnp.sum(e, axis=-1, keepdims=True)               # exact normalize


# ----------------------------------------------------------------------------
# Wrapper: weight re-layout + wrapper-side im2col + pallas_call
# ----------------------------------------------------------------------------
def _const_spec(shape):
    zeros = (0,) * len(shape)
    return pl.BlockSpec(shape, lambda b: zeros)      # resident across all grid steps


def _prepare(params, x):
    f32, bf16 = jnp.float32, jnp.bfloat16
    B = x.shape[0]
    Bp = ((B + TB - 1) // TB) * TB

    # im2col for conv1: tap index k = kh*5 + kw, zero-padded from 25 to 32 taps,
    # rows ordered (h, w) row-major.  Done once in XLA; tiny vs. the kernel work.
    img = x.reshape(B, 28, 28).astype(f32)
    patches = jnp.stack([img[:, kh:kh + 24, kw:kw + 24]
                         for kh in range(5) for kw in range(5)], axis=-1)   # (B,24,24,25)
    x_col = jnp.pad(patches.reshape(B, 576, 25),
                    ((0, Bp - B), (0, 0), (0, K1 - 25))).astype(bf16)       # (Bp,576,32)

    # conv1: (6,1,5,5) OIHW -> (32,128): rows = taps (kh,kw), cols = padded OC.
    w1 = jnp.transpose(params["conv1_w"][:, 0], (1, 2, 0)).reshape(25, 6)
    w1 = jnp.pad(w1, ((0, K1 - 25), (0, LANES - 6))).astype(bf16)
    b1 = jnp.pad(params["conv1_b"], (0, LANES - 6)).reshape(1, LANES).astype(f32)

    # conv2: (12,6,5,5) -> (25,128,128) [tap, padded C_in, padded C_out].
    w2 = jnp.transpose(params["conv2_w"], (2, 3, 1, 0)).reshape(25, 6, 12)
    w2 = jnp.pad(w2, ((0, 0), (0, LANES - 6), (0, LANES - 12))).astype(bf16)
    b2 = jnp.pad(params["conv2_b"], (0, LANES - 12)).reshape(1, LANES).astype(f32)

    # fc1: torch flatten index = c*16 + ph*4 + pw; kernel position index p = ph*4 + pw.
    wf1 = params["fc1_w"].reshape(12, 4, 4, 120)          # (c, ph, pw, o)
    wf1 = jnp.transpose(wf1, (1, 2, 0, 3))                # (ph, pw, c, o)
    wf1 = jnp.pad(wf1, ((0, 0), (0, 0), (0, LANES - 12), (0, LANES - 120)))
    wf1 = wf1.reshape(16, LANES, LANES).astype(bf16)
    bf1 = jnp.pad(params["fc1_b"], (0, LANES - 120)).reshape(1, LANES).astype(f32)

    wf2 = jnp.pad(params["fc2_w"], ((0, LANES - 120), (0, LANES - 60))).astype(bf16)
    bf2 = jnp.pad(params["fc2_b"], (0, LANES - 60)).reshape(1, LANES).astype(f32)

    wo = jnp.pad(params["out_w"], ((0, LANES - 60), (0, LANES - 10))).astype(bf16)
    bo = jnp.concatenate([params["out_b"].astype(f32),
                          jnp.full((LANES - 10,), -1e30, f32)]).reshape(1, LANES)
    return x_col, (w1, b1, w2, b2, wf1, bf1, wf2, bf2, wo, bo)


@jax.jit
def network_forward(params, x):
    B = x.shape[0]
    x_col, weights = _prepare(params, x)
    Bp = x_col.shape[0]

    out = pl.pallas_call(
        _lenet_kernel,
        out_shape=jax.ShapeDtypeStruct((Bp, LANES), jnp.float32),
        grid=(Bp // TB,),
        in_specs=[
            pl.BlockSpec((TB, 576, K1), lambda b: (b, 0, 0)),
            _const_spec((K1, LANES)), _const_spec((1, LANES)),
            _const_spec((25, LANES, LANES)), _const_spec((1, LANES)),
            _const_spec((16, LANES, LANES)), _const_spec((1, LANES)),
            _const_spec((LANES, LANES)), _const_spec((1, LANES)),
            _const_spec((LANES, LANES)), _const_spec((1, LANES)),
        ],
        out_specs=pl.BlockSpec((TB, LANES), lambda b: (b, 0)),
        scratch_shapes=[
            pltpu.VMEM((4, 24, LANES), jnp.float32),     # ps1: row-pooled conv1 chunk
            pltpu.VMEM((12, 12, LANES), jnp.float32),    # hp1: pooled conv1 output
            pltpu.VMEM((32, LANES), jnp.float32),        # ps2: row-pooled conv2 output
            pltpu.VMEM((TB * 16, LANES), jnp.float32),   # hp2: pooled conv2, flat rows
        ],
        compiler_params=pltpu.CompilerParams(dimension_semantics=("parallel",)),
    )(x_col, *weights)
    return out[:B, :10]


# ----------------------------------------------------------------------------
# Deterministic parameter init (PyTorch-default-style uniform(-1/sqrt(fan_in), .))
# ----------------------------------------------------------------------------
def init_params(key):
    def uinit(k, shape, fan_in):
        bound = 1.0 / np.sqrt(fan_in)
        return jax.random.uniform(k, shape, jnp.float32, -bound, bound)

    keys = jax.random.split(key, 10)
    return {
        "conv1_w": uinit(keys[0], (6, 1, 5, 5), 1 * 5 * 5),
        "conv1_b": uinit(keys[1], (6,), 1 * 5 * 5),
        "conv2_w": uinit(keys[2], (12, 6, 5, 5), 6 * 5 * 5),
        "conv2_b": uinit(keys[3], (12,), 6 * 5 * 5),
        "fc1_w":   uinit(keys[4], (192, 120), 192),   # stored (in, out)
        "fc1_b":   uinit(keys[5], (120,), 192),
        "fc2_w":   uinit(keys[6], (120, 60), 120),
        "fc2_b":   uinit(keys[7], (60,), 120),
        "out_w":   uinit(keys[8], (60, 10), 60),
        "out_b":   uinit(keys[9], (10,), 60),
    }


# ----------------------------------------------------------------------------
# Pure-JAX reference (mirrors the kernel's bf16-at-the-MXU-boundary casts)
# ----------------------------------------------------------------------------
def reference_forward(params, x):
    f32, bf16 = jnp.float32, jnp.bfloat16

    def conv(t, w, b):
        dn = lax.conv_dimension_numbers(t.shape, w.shape, ("NCHW", "OIHW", "NCHW"))
        y = lax.conv_general_dilated(t.astype(bf16), w.astype(bf16), (1, 1), "VALID",
                                     dimension_numbers=dn, preferred_element_type=f32)
        return jax.nn.relu(y + b.reshape(1, -1, 1, 1))

    def pool(t):
        return lax.reduce_window(t, -jnp.inf, lax.max,
                                 (1, 1, 2, 2), (1, 1, 2, 2), "VALID")

    def dense(t, w, b, relu=True):
        y = jnp.dot(t.astype(bf16), w.astype(bf16), preferred_element_type=f32) + b
        return jax.nn.relu(y) if relu else y

    t = pool(conv(x.astype(f32), params["conv1_w"], params["conv1_b"]))
    t = pool(conv(t, params["conv2_w"], params["conv2_b"]))
    t = t.reshape(-1, 12 * 4 * 4)
    t = dense(t, params["fc1_w"], params["fc1_b"])
    t = dense(t, params["fc2_w"], params["fc2_b"])
    t = dense(t, params["out_w"], params["out_b"], relu=False)
    return jax.nn.softmax(t, axis=1)


if __name__ == "__main__":
    key = jax.random.PRNGKey(0)
    pkey, xkey = jax.random.split(key)
    params = init_params(pkey)
    # Module implies MNIST-sized input: (B, 1, 28, 28) NCHW so conv/pool -> 12*4*4.
    # B=12 exercises both the multi-step grid (Bp=16, TB=8) and the batch-pad path.
    x = jax.random.normal(xkey, (12, 1, 28, 28), dtype=jnp.float32)

    out = jax.block_until_ready(network_forward(params, x))
    ref = jax.block_until_ready(reference_forward(params, x))

    assert out.shape == (12, 10), out.shape
    # tolerance covers bf16 MXU operands (reference casts identically)
    np.testing.assert_allclose(np.asarray(out), np.asarray(ref), rtol=2e-2, atol=2e-3)
    np.testing.assert_allclose(np.asarray(out).sum(axis=1), np.ones(12), atol=1e-3)
    print("KERNEL_OK")
</pallas_src>

<mosaic_0001>
module attributes {stable_mosaic.version = 11 : i64} {
  func.func @_lenet_kernel(%arg0: i32, %arg1: memref<8x576x32xbf16, #tpu.memory_space<vmem>>, %arg2: memref<32x128xbf16, #tpu.memory_space<vmem>>, %arg3: memref<1x128xf32, #tpu.memory_space<vmem>>, %arg4: memref<25x128x128xbf16, #tpu.memory_space<vmem>>, %arg5: memref<1x128xf32, #tpu.memory_space<vmem>>, %arg6: memref<16x128x128xbf16, #tpu.memory_space<vmem>>, %arg7: memref<1x128xf32, #tpu.memory_space<vmem>>, %arg8: memref<128x128xbf16, #tpu.memory_space<vmem>>, %arg9: memref<1x128xf32, #tpu.memory_space<vmem>>, %arg10: memref<128x128xbf16, #tpu.memory_space<vmem>>, %arg11: memref<1x128xf32, #tpu.memory_space<vmem>>, %arg12: memref<8x128xf32, #tpu.memory_space<vmem>>, %arg13: memref<4x24x128xf32, #tpu.memory_space<vmem>>, %arg14: memref<12x12x128xf32, #tpu.memory_space<vmem>>, %arg15: memref<32x128xf32, #tpu.memory_space<vmem>>, %arg16: memref<128x128xf32, #tpu.memory_space<vmem>>) attributes {dimension_semantics = [#tpu.dimension_semantics<parallel>], iteration_bounds = array<i64: 2>, scalar_prefetch = 0 : i64, scratch_operands = 4 : i64, tpu.core_type = #tpu.core_type<tc>, window_params = [{transform_indices = @transform_0, window_bounds = array<i64: 8, 576, 32>}, {pipeline_mode = #tpu.pipeline_mode<synchronous>, transform_indices = @transform_1, window_bounds = array<i64: 32, 128>}, {pipeline_mode = #tpu.pipeline_mode<synchronous>, transform_indices = @transform_2, window_bounds = array<i64: 1, 128>}, {pipeline_mode = #tpu.pipeline_mode<synchronous>, transform_indices = @transform_3, window_bounds = array<i64: 25, 128, 128>}, {pipeline_mode = #tpu.pipeline_mode<synchronous>, transform_indices = @transform_4, window_bounds = array<i64: 1, 128>}, {pipeline_mode = #tpu.pipeline_mode<synchronous>, transform_indices = @transform_5, window_bounds = array<i64: 16, 128, 128>}, {pipeline_mode = #tpu.pipeline_mode<synchronous>, transform_indices = @transform_6, window_bounds = array<i64: 1, 128>}, {pipeline_mode = #tpu.pipeline_mode<synchronous>, transform_indices = @transform_7, window_bounds = array<i64: 128, 128>}, {pipeline_mode = #tpu.pipeline_mode<synchronous>, transform_indices = @transform_8, window_bounds = array<i64: 1, 128>}, {pipeline_mode = #tpu.pipeline_mode<synchronous>, transform_indices = @transform_9, window_bounds = array<i64: 128, 128>}, {pipeline_mode = #tpu.pipeline_mode<synchronous>, transform_indices = @transform_10, window_bounds = array<i64: 1, 128>}, {transform_indices = @transform_11, window_bounds = array<i64: 8, 128>}]} {
    %c0_i32 = arith.constant 0 : i32
    %c8_i32 = arith.constant 8 : i32
    %0 = arith.addi %c0_i32, %c8_i32 : i32
    %c1_i32 = arith.constant 1 : i32
    scf.for %arg17 = %c0_i32 to %0 step %c1_i32  : i32 {
      %127 = arith.index_cast %arg17 : i32 to index
      %c0_99 = arith.constant 0 : index
      %c0_100 = arith.constant 0 : index
      %128 = vector.load %arg1[%127, %c0_99, %c0_100] : memref<8x576x32xbf16, #tpu.memory_space<vmem>>, vector<1x192x32xbf16>
      %129 = vector.shape_cast %128 : vector<1x192x32xbf16> to vector<192x32xbf16>
      %c0_101 = arith.constant 0 : index
      %c0_102 = arith.constant 0 : index
      %130 = vector.load %arg2[%c0_101, %c0_102] : memref<32x128xbf16, #tpu.memory_space<vmem>>, vector<32x128xbf16>
      %cst_103 = arith.constant dense<0.000000e+00> : vector<192x128xf32>
      %131 = tpu.matmul %129, %130, %cst_103 {dimension_numbers = #tpu.dot_dimension_numbers<[1], [0], [0], [1], [0, 0, 1, 1], [], []>} : vector<192x32xbf16>, vector<32x128xbf16>, vector<192x128xf32> -> vector<192x128xf32>
      %132 = vector.shape_cast %131 : vector<192x128xf32> to vector<4x2x24x128xf32>
      %133 = vector.extract_strided_slice %132 {offsets = [0, 0, 0, 0], sizes = [4, 1, 24, 128], strides = [1, 1, 1, 1]} : vector<4x2x24x128xf32> to vector<4x1x24x128xf32>
      %134 = vector.shape_cast %133 : vector<4x1x24x128xf32> to vector<4x24x128xf32>
      %135 = vector.extract_strided_slice %132 {offsets = [0, 1, 0, 0], sizes = [4, 1, 24, 128], strides = [1, 1, 1, 1]} : vector<4x2x24x128xf32> to vector<4x1x24x128xf32>
      %136 = vector.shape_cast %135 : vector<4x1x24x128xf32> to vector<4x24x128xf32>
      %137 = arith.maximumf %134, %136 : vector<4x24x128xf32>
      %c0_104 = arith.constant 0 : index
      %c0_105 = arith.constant 0 : index
      %c0_106 = arith.constant 0 : index
      %138 = vector.load %arg13[%c0_104, %c0_105, %c0_106] : memref<4x24x128xf32, #tpu.memory_space<vmem>>, vector<4x24x128xf32>
      tpu.vector_store %arg13[%c0_104, %c0_105, %c0_106], %137 {strides = array<i32>} : memref<4x24x128xf32, #tpu.memory_space<vmem>>, vector<4x24x128xf32>,
      %c0_107 = arith.constant 0 : index
      %c0_108 = arith.constant 0 : index
      %c0_109 = arith.constant 0 : index
      %139 = tpu.strided_load %arg13[%c0_107, %c0_108, %c0_109] {strides = array<i32: 1, 2, 1>} : memref<4x24x128xf32, #tpu.memory_space<vmem>>, vector<4x12x128xf32>
      %c0_110 = arith.constant 0 : index
      %c1_111 = arith.constant 1 : index
      %c0_112 = arith.constant 0 : index
      %140 = tpu.strided_load %arg13[%c0_110, %c1_111, %c0_112] {strides = array<i32: 1, 2, 1>} : memref<4x24x128xf32, #tpu.memory_space<vmem>>, vector<4x12x128xf32>
      %141 = arith.maximumf %139, %140 : vector<4x12x128xf32>
      %c0_113 = arith.constant 0 : index
      %c0_114 = arith.constant 0 : index
      %142 = vector.load %arg3[%c0_113, %c0_114] : memref<1x128xf32, #tpu.memory_space<vmem>>, vector<1x128xf32>
      %143 = vector.shape_cast %142 : vector<1x128xf32> to vector<1x1x128xf32>
      %144 = vector.broadcast %143 : vector<1x1x128xf32> to vector<4x12x128xf32>
      %145 = arith.addf %141, %144 : vector<4x12x128xf32>
      %cst_115 = arith.constant 0.000000e+00 : f32
      %146 = vector.broadcast %cst_115 : f32 to vector<4x12x128xf32>
      %147 = arith.maximumf %145, %146 : vector<4x12x128xf32>
      %c0_116 = arith.constant 0 : index
      %c0_117 = arith.constant 0 : index
      %c0_118 = arith.constant 0 : index
      %148 = vector.load %arg14[%c0_116, %c0_117, %c0_118] : memref<12x12x128xf32, #tpu.memory_space<vmem>>, vector<4x12x128xf32>
      tpu.vector_store %arg14[%c0_116, %c0_117, %c0_118], %147 {strides = array<i32>} : memref<12x12x128xf32, #tpu.memory_space<vmem>>, vector<4x12x128xf32>,
      %149 = arith.index_cast %arg17 : i32 to index
      %c192 = arith.constant 192 : index
      %c0_119 = arith.constant 0 : index
      %150 = vector.load %arg1[%149, %c192, %c0_119] : memref<8x576x32xbf16, #tpu.memory_space<vmem>>, vector<1x192x32xbf16>
      %151 = vector.shape_cast %150 : vector<1x192x32xbf16> to vector<192x32xbf16>
      %c0_120 = arith.constant 0 : index
      %c0_121 = arith.constant 0 : index
      %152 = vector.load %arg2[%c0_120, %c0_121] : memref<32x128xbf16, #tpu.memory_space<vmem>>, vector<32x128xbf16>
      %cst_122 = arith.constant dense<0.000000e+00> : vector<192x128xf32>
      %153 = tpu.matmul %151, %152, %cst_122 {dimension_numbers = #tpu.dot_dimension_numbers<[1], [0], [0], [1], [0, 0, 1, 1], [], []>} : vector<192x32xbf16>, vector<32x128xbf16>, vector<192x128xf32> -> vector<192x128xf32>
      %154 = vector.shape_cast %153 : vector<192x128xf32> to vector<4x2x24x128xf32>
      %155 = vector.extract_strided_slice %154 {offsets = [0, 0, 0, 0], sizes = [4, 1, 24, 128], strides = [1, 1, 1, 1]} : vector<4x2x24x128xf32> to vector<4x1x24x128xf32>
      %156 = vector.shape_cast %155 : vector<4x1x24x128xf32> to vector<4x24x128xf32>
      %157 = vector.extract_strided_slice %154 {offsets = [0, 1, 0, 0], sizes = [4, 1, 24, 128], strides = [1, 1, 1, 1]} : vector<4x2x24x128xf32> to vector<4x1x24x128xf32>
      %158 = vector.shape_cast %157 : vector<4x1x24x128xf32> to vector<4x24x128xf32>
      %159 = arith.maximumf %156, %158 : vector<4x24x128xf32>
      %c0_123 = arith.constant 0 : index
      %c0_124 = arith.constant 0 : index
      %c0_125 = arith.constant 0 : index
      %160 = vector.load %arg13[%c0_123, %c0_124, %c0_125] : memref<4x24x128xf32, #tpu.memory_space<vmem>>, vector<4x24x128xf32>
      tpu.vector_store %arg13[%c0_123, %c0_124, %c0_125], %159 {strides = array<i32>} : memref<4x24x128xf32, #tpu.memory_space<vmem>>, vector<4x24x128xf32>,
      %c0_126 = arith.constant 0 : index
      %c0_127 = arith.constant 0 : index
      %c0_128 = arith.constant 0 : index
      %161 = tpu.strided_load %arg13[%c0_126, %c0_127, %c0_128] {strides = array<i32: 1, 2, 1>} : memref<4x24x128xf32, #tpu.memory_space<vmem>>, vector<4x12x128xf32>
      %c0_129 = arith.constant 0 : index
      %c1_130 = arith.constant 1 : index
      %c0_131 = arith.constant 0 : index
      %162 = tpu.strided_load %arg13[%c0_129, %c1_130, %c0_131] {strides = array<i32: 1, 2, 1>} : memref<4x24x128xf32, #tpu.memory_space<vmem>>, vector<4x12x128xf32>
      %163 = arith.maximumf %161, %162 : vector<4x12x128xf32>
      %c0_132 = arith.constant 0 : index
      %c0_133 = arith.constant 0 : index
      %164 = vector.load %arg3[%c0_132, %c0_133] : memref<1x128xf32, #tpu.memory_space<vmem>>, vector<1x128xf32>
      %165 = vector.shape_cast %164 : vector<1x128xf32> to vector<1x1x128xf32>
      %166 = vector.broadcast %165 : vector<1x1x128xf32> to vector<4x12x128xf32>
      %167 = arith.addf %163, %166 : vector<4x12x128xf32>
      %cst_134 = arith.constant 0.000000e+00 : f32
      %168 = vector.broadcast %cst_134 : f32 to vector<4x12x128xf32>
      %169 = arith.maximumf %167, %168 : vector<4x12x128xf32>
      %c4_135 = arith.constant 4 : index
      %c0_136 = arith.constant 0 : index
      %c0_137 = arith.constant 0 : index
      %170 = vector.load %arg14[%c4_135, %c0_136, %c0_137] : memref<12x12x128xf32, #tpu.memory_space<vmem>>, vector<4x12x128xf32>
      tpu.vector_store %arg14[%c4_135, %c0_136, %c0_137], %169 {strides = array<i32>} : memref<12x12x128xf32, #tpu.memory_space<vmem>>, vector<4x12x128xf32>,
      %171 = arith.index_cast %arg17 : i32 to index
      %c384 = arith.constant 384 : index
      %c0_138 = arith.constant 0 : index
      %172 = vector.load %arg1[%171, %c384, %c0_138] : memref<8x576x32xbf16, #tpu.memory_space<vmem>>, vector<1x192x32xbf16>
      %173 = vector.shape_cast %172 : vector<1x192x32xbf16> to vector<192x32xbf16>
      %c0_139 = arith.constant 0 : index
      %c0_140 = arith.constant 0 : index
      %174 = vector.load %arg2[%c0_139, %c0_140] : memref<32x128xbf16, #tpu.memory_space<vmem>>, vector<32x128xbf16>
      %cst_141 = arith.constant dense<0.000000e+00> : vector<192x128xf32>
      %175 = tpu.matmul %173, %174, %cst_141 {dimension_numbers = #tpu.dot_dimension_numbers<[1], [0], [0], [1], [0, 0, 1, 1], [], []>} : vector<192x32xbf16>, vector<32x128xbf16>, vector<192x128xf32> -> vector<192x128xf32>
      %176 = vector.shape_cast %175 : vector<192x128xf32> to vector<4x2x24x128xf32>
      %177 = vector.extract_strided_slice %176 {offsets = [0, 0, 0, 0], sizes = [4, 1, 24, 128], strides = [1, 1, 1, 1]} : vector<4x2x24x128xf32> to vector<4x1x24x128xf32>
      %178 = vector.shape_cast %177 : vector<4x1x24x128xf32> to vector<4x24x128xf32>
      %179 = vector.extract_strided_slice %176 {offsets = [0, 1, 0, 0], sizes = [4, 1, 24, 128], strides = [1, 1, 1, 1]} : vector<4x2x24x128xf32> to vector<4x1x24x128xf32>
      %180 = vector.shape_cast %179 : vector<4x1x24x128xf32> to vector<4x24x128xf32>
      %181 = arith.maximumf %178, %180 : vector<4x24x128xf32>
      %c0_142 = arith.constant 0 : index
      %c0_143 = arith.constant 0 : index
      %c0_144 = arith.constant 0 : index
      %182 = vector.load %arg13[%c0_142, %c0_143, %c0_144] : memref<4x24x128xf32, #tpu.memory_space<vmem>>, vector<4x24x128xf32>
      tpu.vector_store %arg13[%c0_142, %c0_143, %c0_144], %181 {strides = array<i32>} : memref<4x24x128xf32, #tpu.memory_space<vmem>>, vector<4x24x128xf32>,
      %c0_145 = arith.constant 0 : index
      %c0_146 = arith.constant 0 : index
      %c0_147 = arith.constant 0 : index
      %183 = tpu.strided_load %arg13[%c0_145, %c0_146, %c0_147] {strides = array<i32: 1, 2, 1>} : memref<4x24x128xf32, #tpu.memory_space<vmem>>, vector<4x12x128xf32>
      %c0_148 = arith.constant 0 : index
      %c1_149 = arith.constant 1 : index
      %c0_150 = arith.constant 0 : index
      %184 = tpu.strided_load %arg13[%c0_148, %c1_149, %c0_150] {strides = array<i32: 1, 2, 1>} : memref<4x24x128xf32, #tpu.memory_space<vmem>>, vector<4x12x128xf32>
      %185 = arith.maximumf %183, %184 : vector<4x12x128xf32>
      %c0_151 = arith.constant 0 : index
      %c0_152 = arith.constant 0 : index
      %186 = vector.load %arg3[%c0_151, %c0_152] : memref<1x128xf32, #tpu.memory_space<vmem>>, vector<1x128xf32>
      %187 = vector.shape_cast %186 : vector<1x128xf32> to vector<1x1x128xf32>
      %188 = vector.broadcast %187 : vector<1x1x128xf32> to vector<4x12x128xf32>
      %189 = arith.addf %185, %188 : vector<4x12x128xf32>
      %cst_153 = arith.constant 0.000000e+00 : f32
      %190 = vector.broadcast %cst_153 : f32 to vector<4x12x128xf32>
      %191 = arith.maximumf %189, %190 : vector<4x12x128xf32>
      %c8_154 = arith.constant 8 : index
      %c0_155 = arith.constant 0 : index
      %c0_156 = arith.constant 0 : index
      %192 = vector.load %arg14[%c8_154, %c0_155, %c0_156] : memref<12x12x128xf32, #tpu.memory_space<vmem>>, vector<4x12x128xf32>
      tpu.vector_store %arg14[%c8_154, %c0_155, %c0_156], %191 {strides = array<i32>} : memref<12x12x128xf32, #tpu.memory_space<vmem>>, vector<4x12x128xf32>,
      %cst_157 = arith.constant 0.000000e+00 : f32
      %193 = vector.broadcast %cst_157 : f32 to vector<64x128xf32>
      %c0_158 = arith.constant 0 : index
      %c0_159 = arith.constant 0 : index
      %c0_160 = arith.constant 0 : index
      %194 = vector.load %arg14[%c0_158, %c0_159, %c0_160] : memref<12x12x128xf32, #tpu.memory_space<vmem>>, vector<8x8x128xf32>
      %195 = vector.shape_cast %194 : vector<8x8x128xf32> to vector<64x128xf32>
      %196 = arith.truncf %195 : vector<64x128xf32> to vector<64x128xbf16>
      %c0_161 = arith.constant 0 : index
      %c0_162 = arith.constant 0 : index
      %c0_163 = arith.constant 0 : index
      %197 = vector.load %arg4[%c0_161, %c0_162, %c0_163] : memref<25x128x128xbf16, #tpu.memory_space<vmem>>, vector<1x128x128xbf16>
      %198 = vector.shape_cast %197 : vector<1x128x128xbf16> to vector<128x128xbf16>
      %cst_164 = arith.constant dense<0.000000e+00> : vector<64x128xf32>
      %199 = tpu.matmul %196, %198, %cst_164 {dimension_numbers = #tpu.dot_dimension_numbers<[1], [0], [0], [1], [0, 0, 1, 1], [], []>} : vector<64x128xbf16>, vector<128x128xbf16>, vector<64x128xf32> -> vector<64x128xf32>
      %200 = arith.addf %193, %199 : vector<64x128xf32>
      %c0_165 = arith.constant 0 : index
      %c1_166 = arith.constant 1 : index
      %c0_167 = arith.constant 0 : index
      %201 = vector.load %arg14[%c0_165, %c1_166, %c0_167] : memref<12x12x128xf32, #tpu.memory_space<vmem>>, vector<8x8x128xf32>
      %202 = vector.shape_cast %201 : vector<8x8x128xf32> to vector<64x128xf32>
      %203 = arith.truncf %202 : vector<64x128xf32> to vector<64x128xbf16>
      %c1_168 = arith.constant 1 : index
      %c0_169 = arith.constant 0 : index
      %c0_170 = arith.constant 0 : index
      %204 = vector.load %arg4[%c1_168, %c0_169, %c0_170] : memref<25x128x128xbf16, #tpu.memory_space<vmem>>, vector<1x128x128xbf16>
      %205 = vector.shape_cast %204 : vector<1x128x128xbf16> to vector<128x128xbf16>
      %cst_171 = arith.constant dense<0.000000e+00> : vector<64x128xf32>
      %206 = tpu.matmul %203, %205, %cst_171 {dimension_numbers = #tpu.dot_dimension_numbers<[1], [0], [0], [1], [0, 0, 1, 1], [], []>} : vector<64x128xbf16>, vector<128x128xbf16>, vector<64x128xf32> -> vector<64x128xf32>
      %207 = arith.addf %200, %206 : vector<64x128xf32>
      %c0_172 = arith.constant 0 : index
      %c2_173 = arith.constant 2 : index
      %c0_174 = arith.constant 0 : index
      %208 = vector.load %arg14[%c0_172, %c2_173, %c0_174] : memref<12x12x128xf32, #tpu.memory_space<vmem>>, vector<8x8x128xf32>
      %209 = vector.shape_cast %208 : vector<8x8x128xf32> to vector<64x128xf32>
      %210 = arith.truncf %209 : vector<64x128xf32> to vector<64x128xbf16>
      %c2_175 = arith.constant 2 : index
      %c0_176 = arith.constant 0 : index
      %c0_177 = arith.constant 0 : index
      %211 = vector.load %arg4[%c2_175, %c0_176, %c0_177] : memref<25x128x128xbf16, #tpu.memory_space<vmem>>, vector<1x128x128xbf16>
      %212 = vector.shape_cast %211 : vector<1x128x128xbf16> to vector<128x128xbf16>
      %cst_178 = arith.constant dense<0.000000e+00> : vector<64x128xf32>
      %213 = tpu.matmul %210, %212, %cst_178 {dimension_numbers = #tpu.dot_dimension_numbers<[1], [0], [0], [1], [0, 0, 1, 1], [], []>} : vector<64x128xbf16>, vector<128x128xbf16>, vector<64x128xf32> -> vector<64x128xf32>
      %214 = arith.addf %207, %213 : vector<64x128xf32>
      %c0_179 = arith.constant 0 : index
      %c3_180 = arith.constant 3 : index
      %c0_181 = arith.constant 0 : index
      %215 = vector.load %arg14[%c0_179, %c3_180, %c0_181] : memref<12x12x128xf32, #tpu.memory_space<vmem>>, vector<8x8x128xf32>
      %216 = vector.shape_cast %215 : vector<8x8x128xf32> to vector<64x128xf32>
      %217 = arith.truncf %216 : vector<64x128xf32> to vector<64x128xbf16>
      %c3_182 = arith.constant 3 : index
      %c0_183 = arith.constant 0 : index
      %c0_184 = arith.constant 0 : index
      %218 = vector.load %arg4[%c3_182, %c0_183, %c0_184] : memref<25x128x128xbf16, #tpu.memory_space<vmem>>, vector<1x128x128xbf16>
      %219 = vector.shape_cast %218 : vector<1x128x128xbf16> to vector<128x128xbf16>
      %cst_185 = arith.constant dense<0.000000e+00> : vector<64x128xf32>
      %220 = tpu.matmul %217, %219, %cst_185 {dimension_numbers = #tpu.dot_dimension_numbers<[1], [0], [0], [1], [0, 0, 1, 1], [], []>} : vector<64x128xbf16>, vector<128x128xbf16>, vector<64x128xf32> -> vector<64x128xf32>
      %221 = arith.addf %214, %220 : vector<64x128xf32>
      %c0_186 = arith.constant 0 : index
      %c4_187 = arith.constant 4 : index
      %c0_188 = arith.constant 0 : index
      %222 = vector.load %arg14[%c0_186, %c4_187, %c0_188] : memref<12x12x128xf32, #tpu.memory_space<vmem>>, vector<8x8x128xf32>
      %223 = vector.shape_cast %222 : vector<8x8x128xf32> to vector<64x128xf32>
      %224 = arith.truncf %223 : vector<64x128xf32> to vector<64x128xbf16>
      %c4_189 = arith.constant 4 : index
      %c0_190 = arith.constant 0 : index
      %c0_191 = arith.constant 0 : index
      %225 = vector.load %arg4[%c4_189, %c0_190, %c0_191] : memref<25x128x128xbf16, #tpu.memory_space<vmem>>, vector<1x128x128xbf16>
      %226 = vector.shape_cast %225 : vector<1x128x128xbf16> to vector<128x128xbf16>
      %cst_192 = arith.constant dense<0.000000e+00> : vector<64x128xf32>
      %227 = tpu.matmul %224, %226, %cst_192 {dimension_numbers = #tpu.dot_dimension_numbers<[1], [0], [0], [1], [0, 0, 1, 1], [], []>} : vector<64x128xbf16>, vector<128x128xbf16>, vector<64x128xf32> -> vector<64x128xf32>
      %228 = arith.addf %221, %227 : vector<64x128xf32>
      %c1_193 = arith.constant 1 : index
      %c0_194 = arith.constant 0 : index
      %c0_195 = arith.constant 0 : index
      %229 = vector.load %arg14[%c1_193, %c0_194, %c0_195] : memref<12x12x128xf32, #tpu.memory_space<vmem>>, vector<8x8x128xf32>
      %230 = vector.shape_cast %229 : vector<8x8x128xf32> to vector<64x128xf32>
      %231 = arith.truncf %230 : vector<64x128xf32> to vector<64x128xbf16>
      %c5_196 = arith.constant 5 : index
      %c0_197 = arith.constant 0 : index
      %c0_198 = arith.constant 0 : index
      %232 = vector.load %arg4[%c5_196, %c0_197, %c0_198] : memref<25x128x128xbf16, #tpu.memory_space<vmem>>, vector<1x128x128xbf16>
      %233 = vector.shape_cast %232 : vector<1x128x128xbf16> to vector<128x128xbf16>
      %cst_199 = arith.constant dense<0.000000e+00> : vector<64x128xf32>
      %234 = tpu.matmul %231, %233, %cst_199 {dimension_numbers = #tpu.dot_dimension_numbers<[1], [0], [0], [1], [0, 0, 1, 1], [], []>} : vector<64x128xbf16>, vector<128x128xbf16>, vector<64x128xf32> -> vector<64x128xf32>
      %235 = arith.addf %228, %234 : vector<64x128xf32>
      %c1_200 = arith.constant 1 : index
      %c1_201 = arith.constant 1 : index
      %c0_202 = arith.constant 0 : index
      %236 = vector.load %arg14[%c1_200, %c1_201, %c0_202] : memref<12x12x128xf32, #tpu.memory_space<vmem>>, vector<8x8x128xf32>
      %237 = vector.shape_cast %236 : vector<8x8x128xf32> to vector<64x128xf32>
      %238 = arith.truncf %237 : vector<64x128xf32> to vector<64x128xbf16>
      %c6_203 = arith.constant 6 : index
      %c0_204 = arith.constant 0 : index
      %c0_205 = arith.constant 0 : index
      %239 = vector.load %arg4[%c6_203, %c0_204, %c0_205] : memref<25x128x128xbf16, #tpu.memory_space<vmem>>, vector<1x128x128xbf16>
      %240 = vector.shape_cast %239 : vector<1x128x128xbf16> to vector<128x128xbf16>
      %cst_206 = arith.constant dense<0.000000e+00> : vector<64x128xf32>
      %241 = tpu.matmul %238, %240, %cst_206 {dimension_numbers = #tpu.dot_dimension_numbers<[1], [0], [0], [1], [0, 0, 1, 1], [], []>} : vector<64x128xbf16>, vector<128x128xbf16>, vector<64x128xf32> -> vector<64x128xf32>
      %242 = arith.addf %235, %241 : vector<64x128xf32>
      %c1_207 = arith.constant 1 : index
      %c2_208 = arith.constant 2 : index
      %c0_209 = arith.constant 0 : index
      %243 = vector.load %arg14[%c1_207, %c2_208, %c0_209] : memref<12x12x128xf32, #tpu.memory_space<vmem>>, vector<8x8x128xf32>
      %244 = vector.shape_cast %243 : vector<8x8x128xf32> to vector<64x128xf32>
      %245 = arith.truncf %244 : vector<64x128xf32> to vector<64x128xbf16>
      %c7_210 = arith.constant 7 : index
      %c0_211 = arith.constant 0 : index
      %c0_212 = arith.constant 0 : index
      %246 = vector.load %arg4[%c7_210, %c0_211, %c0_212] : memref<25x128x128xbf16, #tpu.memory_space<vmem>>, vector<1x128x128xbf16>
      %247 = vector.shape_cast %246 : vector<1x128x128xbf16> to vector<128x128xbf16>
      %cst_213 = arith.constant dense<0.000000e+00> : vector<64x128xf32>
      %248 = tpu.matmul %245, %247, %cst_213 {dimension_numbers = #tpu.dot_dimension_numbers<[1], [0], [0], [1], [0, 0, 1, 1], [], []>} : vector<64x128xbf16>, vector<128x128xbf16>, vector<64x128xf32> -> vector<64x128xf32>
      %249 = arith.addf %242, %248 : vector<64x128xf32>
      %c1_214 = arith.constant 1 : index
      %c3_215 = arith.constant 3 : index
      %c0_216 = arith.constant 0 : index
      %250 = vector.load %arg14[%c1_214, %c3_215, %c0_216] : memref<12x12x128xf32, #tpu.memory_space<vmem>>, vector<8x8x128xf32>
      %251 = vector.shape_cast %250 : vector<8x8x128xf32> to vector<64x128xf32>
      %252 = arith.truncf %251 : vector<64x128xf32> to vector<64x128xbf16>
      %c8_217 = arith.constant 8 : index
      %c0_218 = arith.constant 0 : index
      %c0_219 = arith.constant 0 : index
      %253 = vector.load %arg4[%c8_217, %c0_218, %c0_219] : memref<25x128x128xbf16, #tpu.memory_space<vmem>>, vector<1x128x128xbf16>
      %254 = vector.shape_cast %253 : vector<1x128x128xbf16> to vector<128x128xbf16>
      %cst_220 = arith.constant dense<0.000000e+00> : vector<64x128xf32>
      %255 = tpu.matmul %252, %254, %cst_220 {dimension_numbers = #tpu.dot_dimension_numbers<[1], [0], [0], [1], [0, 0, 1, 1], [], []>} : vector<64x128xbf16>, vector<128x128xbf16>, vector<64x128xf32> -> vector<64x128xf32>
      %256 = arith.addf %249, %255 : vector<64x128xf32>
      %c1_221 = arith.constant 1 : index
      %c4_222 = arith.constant 4 : index
      %c0_223 = arith.constant 0 : index
      %257 = vector.load %arg14[%c1_221, %c4_222, %c0_223] : memref<12x12x128xf32, #tpu.memory_space<vmem>>, vector<8x8x128xf32>
      %258 = vector.shape_cast %257 : vector<8x8x128xf32> to vector<64x128xf32>
      %259 = arith.truncf %258 : vector<64x128xf32> to vector<64x128xbf16>
      %c9_224 = arith.constant 9 : index
      %c0_225 = arith.constant 0 : index
      %c0_226 = arith.constant 0 : index
      %260 = vector.load %arg4[%c9_224, %c0_225, %c0_226] : memref<25x128x128xbf16, #tpu.memory_space<vmem>>, vector<1x128x128xbf16>
      %261 = vector.shape_cast %260 : vector<1x128x128xbf16> to vector<128x128xbf16>
      %cst_227 = arith.constant dense<0.000000e+00> : vector<64x128xf32>
      %262 = tpu.matmul %259, %261, %cst_227 {dimension_numbers = #tpu.dot_dimension_numbers<[1], [0], [0], [1], [0, 0, 1, 1], [], []>} : vector<64x128xbf16>, vector<128x128xbf16>, vector<64x128xf32> -> vector<64x128xf32>
      %263 = arith.addf %256, %262 : vector<64x128xf32>
      %c2_228 = arith.constant 2 : index
      %c0_229 = arith.constant 0 : index
      %c0_230 = arith.constant 0 : index
      %264 = vector.load %arg14[%c2_228, %c0_229, %c0_230] : memref<12x12x128xf32, #tpu.memory_space<vmem>>, vector<8x8x128xf32>
      %265 = vector.shape_cast %264 : vector<8x8x128xf32> to vector<64x128xf32>
      %266 = arith.truncf %265 : vector<64x128xf32> to vector<64x128xbf16>
      %c10_231 = arith.constant 10 : index
      %c0_232 = arith.constant 0 : index
      %c0_233 = arith.constant 0 : index
      %267 = vector.load %arg4[%c10_231, %c0_232, %c0_233] : memref<25x128x128xbf16, #tpu.memory_space<vmem>>, vector<1x128x128xbf16>
      %268 = vector.shape_cast %267 : vector<1x128x128xbf16> to vector<128x128xbf16>
      %cst_234 = arith.constant dense<0.000000e+00> : vector<64x128xf32>
      %269 = tpu.matmul %266, %268, %cst_234 {dimension_numbers = #tpu.dot_dimension_numbers<[1], [0], [0], [1], [0, 0, 1, 1], [], []>} : vector<64x128xbf16>, vector<128x128xbf16>, vector<64x128xf32> -> vector<64x128xf32>
      %270 = arith.addf %263, %269 : vector<64x128xf32>
      %c2_235 = arith.constant 2 : index
      %c1_236 = arith.constant 1 : index
      %c0_237 = arith.constant 0 : index
      %271 = vector.load %arg14[%c2_235, %c1_236, %c0_237] : memref<12x12x128xf32, #tpu.memory_space<vmem>>, vector<8x8x128xf32>
      %272 = vector.shape_cast %271 : vector<8x8x128xf32> to vector<64x128xf32>
      %273 = arith.truncf %272 : vector<64x128xf32> to vector<64x128xbf16>
      %c11_238 = arith.constant 11 : index
      %c0_239 = arith.constant 0 : index
      %c0_240 = arith.constant 0 : index
      %274 = vector.load %arg4[%c11_238, %c0_239, %c0_240] : memref<25x128x128xbf16, #tpu.memory_space<vmem>>, vector<1x128x128xbf16>
      %275 = vector.shape_cast %274 : vector<1x128x128xbf16> to vector<128x128xbf16>
      %cst_241 = arith.constant dense<0.000000e+00> : vector<64x128xf32>
      %276 = tpu.matmul %273, %275, %cst_241 {dimension_numbers = #tpu.dot_dimension_numbers<[1], [0], [0], [1], [0, 0, 1, 1], [], []>} : vector<64x128xbf16>, vector<128x128xbf16>, vector<64x128xf32> -> vector<64x128xf32>
      %277 = arith.addf %270, %276 : vector<64x128xf32>
      %c2_242 = arith.constant 2 : index
      %c2_243 = arith.constant 2 : index
      %c0_244 = arith.constant 0 : index
      %278 = vector.load %arg14[%c2_242, %c2_243, %c0_244] : memref<12x12x128xf32, #tpu.memory_space<vmem>>, vector<8x8x128xf32>
      %279 = vector.shape_cast %278 : vector<8x8x128xf32> to vector<64x128xf32>
      %280 = arith.truncf %279 : vector<64x128xf32> to vector<64x128xbf16>
      %c12_245 = arith.constant 12 : index
      %c0_246 = arith.constant 0 : index
      %c0_247 = arith.constant 0 : index
      %281 = vector.load %arg4[%c12_245, %c0_246, %c0_247] : memref<25x128x128xbf16, #tpu.memory_space<vmem>>, vector<1x128x128xbf16>
      %282 = vector.shape_cast %281 : vector<1x128x128xbf16> to vector<128x128xbf16>
      %cst_248 = arith.constant dense<0.000000e+00> : vector<64x128xf32>
      %283 = tpu.matmul %280, %282, %cst_248 {dimension_numbers = #tpu.dot_dimension_numbers<[1], [0], [0], [1], [0, 0, 1, 1], [], []>} : vector<64x128xbf16>, vector<128x128xbf16>, vector<64x128xf32> -> vector<64x128xf32>
      %284 = arith.addf %277, %283 : vector<64x128xf32>
      %c2_249 = arith.constant 2 : index
      %c3_250 = arith.constant 3 : index
      %c0_251 = arith.constant 0 : index
      %285 = vector.load %arg14[%c2_249, %c3_250, %c0_251] : memref<12x12x128xf32, #tpu.memory_space<vmem>>, vector<8x8x128xf32>
      %286 = vector.shape_cast %285 : vector<8x8x128xf32> to vector<64x128xf32>
      %287 = arith.truncf %286 : vector<64x128xf32> to vector<64x128xbf16>
      %c13_252 = arith.constant 13 : index
      %c0_253 = arith.constant 0 : index
      %c0_254 = arith.constant 0 : index
      %288 = vector.load %arg4[%c13_252, %c0_253, %c0_254] : memref<25x128x128xbf16, #tpu.memory_space<vmem>>, vector<1x128x128xbf16>
      %289 = vector.shape_cast %288 : vector<1x128x128xbf16> to vector<128x128xbf16>
      %cst_255 = arith.constant dense<0.000000e+00> : vector<64x128xf32>
      %290 = tpu.matmul %287, %289, %cst_255 {dimension_numbers = #tpu.dot_dimension_numbers<[1], [0], [0], [1], [0, 0, 1, 1], [], []>} : vector<64x128xbf16>, vector<128x128xbf16>, vector<64x128xf32> -> vector<64x128xf32>
      %291 = arith.addf %284, %290 : vector<64x128xf32>
      %c2_256 = arith.constant 2 : index
      %c4_257 = arith.constant 4 : index
      %c0_258 = arith.constant 0 : index
      %292 = vector.load %arg14[%c2_256, %c4_257, %c0_258] : memref<12x12x128xf32, #tpu.memory_space<vmem>>, vector<8x8x128xf32>
      %293 = vector.shape_cast %292 : vector<8x8x128xf32> to vector<64x128xf32>
      %294 = arith.truncf %293 : vector<64x128xf32> to vector<64x128xbf16>
      %c14_259 = arith.constant 14 : index
      %c0_260 = arith.constant 0 : index
      %c0_261 = arith.constant 0 : index
      %295 = vector.load %arg4[%c14_259, %c0_260, %c0_261] : memref<25x128x128xbf16, #tpu.memory_space<vmem>>, vector<1x128x128xbf16>
      %296 = vector.shape_cast %295 : vector<1x128x128xbf16> to vector<128x128xbf16>
      %cst_262 = arith.constant dense<0.000000e+00> : vector<64x128xf32>
      %297 = tpu.matmul %294, %296, %cst_262 {dimension_numbers = #tpu.dot_dimension_numbers<[1], [0], [0], [1], [0, 0, 1, 1], [], []>} : vector<64x128xbf16>, vector<128x128xbf16>, vector<64x128xf32> -> vector<64x128xf32>
      %298 = arith.addf %291, %297 : vector<64x128xf32>
      %c3_263 = arith.constant 3 : index
      %c0_264 = arith.constant 0 : index
      %c0_265 = arith.constant 0 : index
      %299 = vector.load %arg14[%c3_263, %c0_264, %c0_265] : memref<12x12x128xf32, #tpu.memory_space<vmem>>, vector<8x8x128xf32>
      %300 = vector.shape_cast %299 : vector<8x8x128xf32> to vector<64x128xf32>
      %301 = arith.truncf %300 : vector<64x128xf32> to vector<64x128xbf16>
      %c15_266 = arith.constant 15 : index
      %c0_267 = arith.constant 0 : index
      %c0_268 = arith.constant 0 : index
      %302 = vector.load %arg4[%c15_266, %c0_267, %c0_268] : memref<25x128x128xbf16, #tpu.memory_space<vmem>>, vector<1x128x128xbf16>
      %303 = vector.shape_cast %302 : vector<1x128x128xbf16> to vector<128x128xbf16>
      %cst_269 = arith.constant dense<0.000000e+00> : vector<64x128xf32>
      %304 = tpu.matmul %301, %303, %cst_269 {dimension_numbers = #tpu.dot_dimension_numbers<[1], [0], [0], [1], [0, 0, 1, 1], [], []>} : vector<64x128xbf16>, vector<128x128xbf16>, vector<64x128xf32> -> vector<64x128xf32>
      %305 = arith.addf %298, %304 : vector<64x128xf32>
      %c3_270 = arith.constant 3 : index
      %c1_271 = arith.constant 1 : index
      %c0_272 = arith.constant 0 : index
      %306 = vector.load %arg14[%c3_270, %c1_271, %c0_272] : memref<12x12x128xf32, #tpu.memory_space<vmem>>, vector<8x8x128xf32>
      %307 = vector.shape_cast %306 : vector<8x8x128xf32> to vector<64x128xf32>
      %308 = arith.truncf %307 : vector<64x128xf32> to vector<64x128xbf16>
      %c16 = arith.constant 16 : index
      %c0_273 = arith.constant 0 : index
      %c0_274 = arith.constant 0 : index
      %309 = vector.load %arg4[%c16, %c0_273, %c0_274] : memref<25x128x128xbf16, #tpu.memory_space<vmem>>, vector<1x128x128xbf16>
      %310 = vector.shape_cast %309 : vector<1x128x128xbf16> to vector<128x128xbf16>
      %cst_275 = arith.constant dense<0.000000e+00> : vector<64x128xf32>
      %311 = tpu.matmul %308, %310, %cst_275 {dimension_numbers = #tpu.dot_dimension_numbers<[1], [0], [0], [1], [0, 0, 1, 1], [], []>} : vector<64x128xbf16>, vector<128x128xbf16>, vector<64x128xf32> -> vector<64x128xf32>
      %312 = arith.addf %305, %311 : vector<64x128xf32>
      %c3_276 = arith.constant 3 : index
      %c2_277 = arith.constant 2 : index
      %c0_278 = arith.constant 0 : index
      %313 = vector.load %arg14[%c3_276, %c2_277, %c0_278] : memref<12x12x128xf32, #tpu.memory_space<vmem>>, vector<8x8x128xf32>
      %314 = vector.shape_cast %313 : vector<8x8x128xf32> to vector<64x128xf32>
      %315 = arith.truncf %314 : vector<64x128xf32> to vector<64x128xbf16>
      %c17 = arith.constant 17 : index
      %c0_279 = arith.constant 0 : index
      %c0_280 = arith.constant 0 : index
      %316 = vector.load %arg4[%c17, %c0_279, %c0_280] : memref<25x128x128xbf16, #tpu.memory_space<vmem>>, vector<1x128x128xbf16>
      %317 = vector.shape_cast %316 : vector<1x128x128xbf16> to vector<128x128xbf16>
      %cst_281 = arith.constant dense<0.000000e+00> : vector<64x128xf32>
      %318 = tpu.matmul %315, %317, %cst_281 {dimension_numbers = #tpu.dot_dimension_numbers<[1], [0], [0], [1], [0, 0, 1, 1], [], []>} : vector<64x128xbf16>, vector<128x128xbf16>, vector<64x128xf32> -> vector<64x128xf32>
      %319 = arith.addf %312, %318 : vector<64x128xf32>
      %c3_282 = arith.constant 3 : index
      %c3_283 = arith.constant 3 : index
      %c0_284 = arith.constant 0 : index
      %320 = vector.load %arg14[%c3_282, %c3_283, %c0_284] : memref<12x12x128xf32, #tpu.memory_space<vmem>>, vector<8x8x128xf32>
      %321 = vector.shape_cast %320 : vector<8x8x128xf32> to vector<64x128xf32>
      %322 = arith.truncf %321 : vector<64x128xf32> to vector<64x128xbf16>
      %c18 = arith.constant 18 : index
      %c0_285 = arith.constant 0 : index
      %c0_286 = arith.constant 0 : index
      %323 = vector.load %arg4[%c18, %c0_285, %c0_286] : memref<25x128x128xbf16, #tpu.memory_space<vmem>>, vector<1x128x128xbf16>
      %324 = vector.shape_cast %323 : vector<1x128x128xbf16> to vector<128x128xbf16>
      %cst_287 = arith.constant dense<0.000000e+00> : vector<64x128xf32>
      %325 = tpu.matmul %322, %324, %cst_287 {dimension_numbers = #tpu.dot_dimension_numbers<[1], [0], [0], [1], [0, 0, 1, 1], [], []>} : vector<64x128xbf16>, vector<128x128xbf16>, vector<64x128xf32> -> vector<64x128xf32>
      %326 = arith.addf %319, %325 : vector<64x128xf32>
      %c3_288 = arith.constant 3 : index
      %c4_289 = arith.constant 4 : index
      %c0_290 = arith.constant 0 : index
      %327 = vector.load %arg14[%c3_288, %c4_289, %c0_290] : memref<12x12x128xf32, #tpu.memory_space<vmem>>, vector<8x8x128xf32>
      %328 = vector.shape_cast %327 : vector<8x8x128xf32> to vector<64x128xf32>
      %329 = arith.truncf %328 : vector<64x128xf32> to vector<64x128xbf16>
      %c19 = arith.constant 19 : index
      %c0_291 = arith.constant 0 : index
      %c0_292 = arith.constant 0 : index
      %330 = vector.load %arg4[%c19, %c0_291, %c0_292] : memref<25x128x128xbf16, #tpu.memory_space<vmem>>, vector<1x128x128xbf16>
      %331 = vector.shape_cast %330 : vector<1x128x128xbf16> to vector<128x128xbf16>
      %cst_293 = arith.constant dense<0.000000e+00> : vector<64x128xf32>
      %332 = tpu.matmul %329, %331, %cst_293 {dimension_numbers = #tpu.dot_dimension_numbers<[1], [0], [0], [1], [0, 0, 1, 1], [], []>} : vector<64x128xbf16>, vector<128x128xbf16>, vector<64x128xf32> -> vector<64x128xf32>
      %333 = arith.addf %326, %332 : vector<64x128xf32>
      %c4_294 = arith.constant 4 : index
      %c0_295 = arith.constant 0 : index
      %c0_296 = arith.constant 0 : index
      %334 = vector.load %arg14[%c4_294, %c0_295, %c0_296] : memref<12x12x128xf32, #tpu.memory_space<vmem>>, vector<8x8x128xf32>
      %335 = vector.shape_cast %334 : vector<8x8x128xf32> to vector<64x128xf32>
      %336 = arith.truncf %335 : vector<64x128xf32> to vector<64x128xbf16>
      %c20 = arith.constant 20 : index
      %c0_297 = arith.constant 0 : index
      %c0_298 = arith.constant 0 : index
      %337 = vector.load %arg4[%c20, %c0_297, %c0_298] : memref<25x128x128xbf16, #tpu.memory_space<vmem>>, vector<1x128x128xbf16>
      %338 = vector.shape_cast %337 : vector<1x128x128xbf16> to vector<128x128xbf16>
      %cst_299 = arith.constant dense<0.000000e+00> : vector<64x128xf32>
      %339 = tpu.matmul %336, %338, %cst_299 {dimension_numbers = #tpu.dot_dimension_numbers<[1], [0], [0], [1], [0, 0, 1, 1], [], []>} : vector<64x128xbf16>, vector<128x128xbf16>, vector<64x128xf32> -> vector<64x128xf32>
      %340 = arith.addf %333, %339 : vector<64x128xf32>
      %c4_300 = arith.constant 4 : index
      %c1_301 = arith.constant 1 : index
      %c0_302 = arith.constant 0 : index
      %341 = vector.load %arg14[%c4_300, %c1_301, %c0_302] : memref<12x12x128xf32, #tpu.memory_space<vmem>>, vector<8x8x128xf32>
      %342 = vector.shape_cast %341 : vector<8x8x128xf32> to vector<64x128xf32>
      %343 = arith.truncf %342 : vector<64x128xf32> to vector<64x128xbf16>
      %c21 = arith.constant 21 : index
      %c0_303 = arith.constant 0 : index
      %c0_304 = arith.constant 0 : index
      %344 = vector.load %arg4[%c21, %c0_303, %c0_304] : memref<25x128x128xbf16, #tpu.memory_space<vmem>>, vector<1x128x128xbf16>
      %345 = vector.shape_cast %344 : vector<1x128x128xbf16> to vector<128x128xbf16>
      %cst_305 = arith.constant dense<0.000000e+00> : vector<64x128xf32>
      %346 = tpu.matmul %343, %345, %cst_305 {dimension_numbers = #tpu.dot_dimension_numbers<[1], [0], [0], [1], [0, 0, 1, 1], [], []>} : vector<64x128xbf16>, vector<128x128xbf16>, vector<64x128xf32> -> vector<64x128xf32>
      %347 = arith.addf %340, %346 : vector<64x128xf32>
      %c4_306 = arith.constant 4 : index
      %c2_307 = arith.constant 2 : index
      %c0_308 = arith.constant 0 : index
      %348 = vector.load %arg14[%c4_306, %c2_307, %c0_308] : memref<12x12x128xf32, #tpu.memory_space<vmem>>, vector<8x8x128xf32>
      %349 = vector.shape_cast %348 : vector<8x8x128xf32> to vector<64x128xf32>
      %350 = arith.truncf %349 : vector<64x128xf32> to vector<64x128xbf16>
      %c22 = arith.constant 22 : index
      %c0_309 = arith.constant 0 : index
      %c0_310 = arith.constant 0 : index
      %351 = vector.load %arg4[%c22, %c0_309, %c0_310] : memref<25x128x128xbf16, #tpu.memory_space<vmem>>, vector<1x128x128xbf16>
      %352 = vector.shape_cast %351 : vector<1x128x128xbf16> to vector<128x128xbf16>
      %cst_311 = arith.constant dense<0.000000e+00> : vector<64x128xf32>
      %353 = tpu.matmul %350, %352, %cst_311 {dimension_numbers = #tpu.dot_dimension_numbers<[1], [0], [0], [1], [0, 0, 1, 1], [], []>} : vector<64x128xbf16>, vector<128x128xbf16>, vector<64x128xf32> -> vector<64x128xf32>
      %354 = arith.addf %347, %353 : vector<64x128xf32>
      %c4_312 = arith.constant 4 : index
      %c3_313 = arith.constant 3 : index
      %c0_314 = arith.constant 0 : index
      %355 = vector.load %arg14[%c4_312, %c3_313, %c0_314] : memref<12x12x128xf32, #tpu.memory_space<vmem>>, vector<8x8x128xf32>
      %356 = vector.shape_cast %355 : vector<8x8x128xf32> to vector<64x128xf32>
      %357 = arith.truncf %356 : vector<64x128xf32> to vector<64x128xbf16>
      %c23 = arith.constant 23 : index
      %c0_315 = arith.constant 0 : index
      %c0_316 = arith.constant 0 : index
      %358 = vector.load %arg4[%c23, %c0_315, %c0_316] : memref<25x128x128xbf16, #tpu.memory_space<vmem>>, vector<1x128x128xbf16>
      %359 = vector.shape_cast %358 : vector<1x128x128xbf16> to vector<128x128xbf16>
      %cst_317 = arith.constant dense<0.000000e+00> : vector<64x128xf32>
      %360 = tpu.matmul %357, %359, %cst_317 {dimension_numbers = #tpu.dot_dimension_numbers<[1], [0], [0], [1], [0, 0, 1, 1], [], []>} : vector<64x128xbf16>, vector<128x128xbf16>, vector<64x128xf32> -> vector<64x128xf32>
      %361 = arith.addf %354, %360 : vector<64x128xf32>
      %c4_318 = arith.constant 4 : index
      %c4_319 = arith.constant 4 : index
      %c0_320 = arith.constant 0 : index
      %362 = vector.load %arg14[%c4_318, %c4_319, %c0_320] : memref<12x12x128xf32, #tpu.memory_space<vmem>>, vector<8x8x128xf32>
      %363 = vector.shape_cast %362 : vector<8x8x128xf32> to vector<64x128xf32>
      %364 = arith.truncf %363 : vector<64x128xf32> to vector<64x128xbf16>
      %c24 = arith.constant 24 : index
      %c0_321 = arith.constant 0 : index
      %c0_322 = arith.constant 0 : index
      %365 = vector.load %arg4[%c24, %c0_321, %c0_322] : memref<25x128x128xbf16, #tpu.memory_space<vmem>>, vector<1x128x128xbf16>
      %366 = vector.shape_cast %365 : vector<1x128x128xbf16> to vector<128x128xbf16>
      %cst_323 = arith.constant dense<0.000000e+00> : vector<64x128xf32>
      %367 = tpu.matmul %364, %366, %cst_323 {dimension_numbers = #tpu.dot_dimension_numbers<[1], [0], [0], [1], [0, 0, 1, 1], [], []>} : vector<64x128xbf16>, vector<128x128xbf16>, vector<64x128xf32> -> vector<64x128xf32>
      %368 = arith.addf %361, %367 : vector<64x128xf32>
      %c0_324 = arith.constant 0 : index
      %c0_325 = arith.constant 0 : index
      %369 = vector.load %arg5[%c0_324, %c0_325] : memref<1x128xf32, #tpu.memory_space<vmem>>, vector<1x128xf32>
      %370 = vector.broadcast %369 : vector<1x128xf32> to vector<64x128xf32>
      %371 = arith.addf %368, %370 : vector<64x128xf32>
      %cst_326 = arith.constant 0.000000e+00 : f32
      %372 = vector.broadcast %cst_326 : f32 to vector<64x128xf32>
      %373 = arith.maximumf %371, %372 : vector<64x128xf32>
      %374 = vector.shape_cast %373 : vector<64x128xf32> to vector<4x2x8x128xf32>
      %375 = vector.extract_strided_slice %374 {offsets = [0, 0, 0, 0], sizes = [4, 1, 8, 128], strides = [1, 1, 1, 1]} : vector<4x2x8x128xf32> to vector<4x1x8x128xf32>
      %376 = vector.shape_cast %375 : vector<4x1x8x128xf32> to vector<4x8x128xf32>
      %377 = vector.extract_strided_slice %374 {offsets = [0, 1, 0, 0], sizes = [4, 1, 8, 128], strides = [1, 1, 1, 1]} : vector<4x2x8x128xf32> to vector<4x1x8x128xf32>
      %378 = vector.shape_cast %377 : vector<4x1x8x128xf32> to vector<4x8x128xf32>
      %379 = arith.maximumf %376, %378 : vector<4x8x128xf32>
      %380 = vector.shape_cast %379 : vector<4x8x128xf32> to vector<32x128xf32>
      %c0_327 = arith.constant 0 : index
      %c0_328 = arith.constant 0 : index
      %381 = vector.load %arg15[%c0_327, %c0_328] : memref<32x128xf32, #tpu.memory_space<vmem>>, vector<32x128xf32>
      tpu.vector_store %arg15[%c0_327, %c0_328], %380 {strides = array<i32>} : memref<32x128xf32, #tpu.memory_space<vmem>>, vector<32x128xf32>,
      %c0_329 = arith.constant 0 : index
      %c0_330 = arith.constant 0 : index
      %382 = tpu.strided_load %arg15[%c0_329, %c0_330] {strides = array<i32: 2, 1>} : memref<32x128xf32, #tpu.memory_space<vmem>>, vector<16x128xf32>
      %c1_331 = arith.constant 1 : index
      %c0_332 = arith.constant 0 : index
      %383 = tpu.strided_load %arg15[%c1_331, %c0_332] {strides = array<i32: 2, 1>} : memref<32x128xf32, #tpu.memory_space<vmem>>, vector<16x128xf32>
      %384 = arith.maximumf %382, %383 : vector<16x128xf32>
      %c16_i32 = arith.constant 16 : i32
      %385 = arith.muli %arg17, %c16_i32 : i32
      %386 = tpu.assume_multiple %385, 16 : i32
      %387 = arith.index_cast %386 : i32 to index
      %c0_333 = arith.constant 0 : index
      %388 = vector.load %arg16[%387, %c0_333] : memref<128x128xf32, #tpu.memory_space<vmem>>, vector<16x128xf32>
      tpu.vector_store %arg16[%387, %c0_333], %384 {strides = array<i32>} : memref<128x128xf32, #tpu.memory_space<vmem>>, vector<16x128xf32>,
    }
    %c8_i32_0 = arith.constant 8 : i32
    %cst = arith.constant 0.000000e+00 : f32
    %1 = vector.broadcast %cst : f32 to vector<8x128xf32>
    %c0 = arith.constant 0 : index
    %c0_1 = arith.constant 0 : index
    %2 = tpu.strided_load %arg16[%c0, %c0_1] {strides = array<i32: 16, 1>} : memref<128x128xf32, #tpu.memory_space<vmem>>, vector<8x128xf32>
    %3 = arith.truncf %2 : vector<8x128xf32> to vector<8x128xbf16>
    %c0_2 = arith.constant 0 : index
    %c0_3 = arith.constant 0 : index
    %c0_4 = arith.constant 0 : index
    %4 = vector.load %arg6[%c0_2, %c0_3, %c0_4] : memref<16x128x128xbf16, #tpu.memory_space<vmem>>, vector<1x128x128xbf16>
    %5 = vector.shape_cast %4 : vector<1x128x128xbf16> to vector<128x128xbf16>
    %cst_5 = arith.constant dense<0.000000e+00> : vector<8x128xf32>
    %6 = tpu.matmul %3, %5, %cst_5 {dimension_numbers = #tpu.dot_dimension_numbers<[1], [0], [0], [1], [0, 0, 1, 1], [], []>} : vector<8x128xbf16>, vector<128x128xbf16>, vector<8x128xf32> -> vector<8x128xf32>
    %7 = arith.addf %1, %6 : vector<8x128xf32>
    %c1 = arith.constant 1 : index
    %c0_6 = arith.constant 0 : index
    %8 = tpu.strided_load %arg16[%c1, %c0_6] {strides = array<i32: 16, 1>} : memref<128x128xf32, #tpu.memory_space<vmem>>, vector<8x128xf32>
    %9 = arith.truncf %8 : vector<8x128xf32> to vector<8x128xbf16>
    %c1_7 = arith.constant 1 : index
    %c0_8 = arith.constant 0 : index
    %c0_9 = arith.constant 0 : index
    %10 = vector.load %arg6[%c1_7, %c0_8, %c0_9] : memref<16x128x128xbf16, #tpu.memory_space<vmem>>, vector<1x128x128xbf16>
    %11 = vector.shape_cast %10 : vector<1x128x128xbf16> to vector<128x128xbf16>
    %cst_10 = arith.constant dense<0.000000e+00> : vector<8x128xf32>
    %12 = tpu.matmul %9, %11, %cst_10 {dimension_numbers = #tpu.dot_dimension_numbers<[1], [0], [0], [1], [0, 0, 1, 1], [], []>} : vector<8x128xbf16>, vector<128x128xbf16>, vector<8x128xf32> -> vector<8x128xf32>
    %13 = arith.addf %7, %12 : vector<8x128xf32>
    %c2 = arith.constant 2 : index
    %c0_11 = arith.constant 0 : index
    %14 = tpu.strided_load %arg16[%c2, %c0_11] {strides = array<i32: 16, 1>} : memref<128x128xf32, #tpu.memory_space<vmem>>, vector<8x128xf32>
    %15 = arith.truncf %14 : vector<8x128xf32> to vector<8x128xbf16>
    %c2_12 = arith.constant 2 : index
    %c0_13 = arith.constant 0 : index
    %c0_14 = arith.constant 0 : index
    %16 = vector.load %arg6[%c2_12, %c0_13, %c0_14] : memref<16x128x128xbf16, #tpu.memory_space<vmem>>, vector<1x128x128xbf16>
    %17 = vector.shape_cast %16 : vector<1x128x128xbf16> to vector<128x128xbf16>
    %cst_15 = arith.constant dense<0.000000e+00> : vector<8x128xf32>
    %18 = tpu.matmul %15, %17, %cst_15 {dimension_numbers = #tpu.dot_dimension_numbers<[1], [0], [0], [1], [0, 0, 1, 1], [], []>} : vector<8x128xbf16>, vector<128x128xbf16>, vector<8x128xf32> -> vector<8x128xf32>
    %19 = arith.addf %13, %18 : vector<8x128xf32>
    %c3 = arith.constant 3 : index
    %c0_16 = arith.constant 0 : index
    %20 = tpu.strided_load %arg16[%c3, %c0_16] {strides = array<i32: 16, 1>} : memref<128x128xf32, #tpu.memory_space<vmem>>, vector<8x128xf32>
    %21 = arith.truncf %20 : vector<8x128xf32> to vector<8x128xbf16>
    %c3_17 = arith.constant 3 : index
    %c0_18 = arith.constant 0 : index
    %c0_19 = arith.constant 0 : index
    %22 = vector.load %arg6[%c3_17, %c0_18, %c0_19] : memref<16x128x128xbf16, #tpu.memory_space<vmem>>, vector<1x128x128xbf16>
    %23 = vector.shape_cast %22 : vector<1x128x128xbf16> to vector<128x128xbf16>
    %cst_20 = arith.constant dense<0.000000e+00> : vector<8x128xf32>
    %24 = tpu.matmul %21, %23, %cst_20 {dimension_numbers = #tpu.dot_dimension_numbers<[1], [0], [0], [1], [0, 0, 1, 1], [], []>} : vector<8x128xbf16>, vector<128x128xbf16>, vector<8x128xf32> -> vector<8x128xf32>
    %25 = arith.addf %19, %24 : vector<8x128xf32>
    %c4 = arith.constant 4 : index
    %c0_21 = arith.constant 0 : index
    %26 = tpu.strided_load %arg16[%c4, %c0_21] {strides = array<i32: 16, 1>} : memref<128x128xf32, #tpu.memory_space<vmem>>, vector<8x128xf32>
    %27 = arith.truncf %26 : vector<8x128xf32> to vector<8x128xbf16>
    %c4_22 = arith.constant 4 : index
    %c0_23 = arith.constant 0 : index
    %c0_24 = arith.constant 0 : index
    %28 = vector.load %arg6[%c4_22, %c0_23, %c0_24] : memref<16x128x128xbf16, #tpu.memory_space<vmem>>, vector<1x128x128xbf16>
    %29 = vector.shape_cast %28 : vector<1x128x128xbf16> to vector<128x128xbf16>
    %cst_25 = arith.constant dense<0.000000e+00> : vector<8x128xf32>
    %30 = tpu.matmul %27, %29, %cst_25 {dimension_numbers = #tpu.dot_dimension_numbers<[1], [0], [0], [1], [0, 0, 1, 1], [], []>} : vector<8x128xbf16>, vector<128x128xbf16>, vector<8x128xf32> -> vector<8x128xf32>
    %31 = arith.addf %25, %30 : vector<8x128xf32>
    %c5 = arith.constant 5 : index
    %c0_26 = arith.constant 0 : index
    %32 = tpu.strided_load %arg16[%c5, %c0_26] {strides = array<i32: 16, 1>} : memref<128x128xf32, #tpu.memory_space<vmem>>, vector<8x128xf32>
    %33 = arith.truncf %32 : vector<8x128xf32> to vector<8x128xbf16>
    %c5_27 = arith.constant 5 : index
    %c0_28 = arith.constant 0 : index
    %c0_29 = arith.constant 0 : index
    %34 = vector.load %arg6[%c5_27, %c0_28, %c0_29] : memref<16x128x128xbf16, #tpu.memory_space<vmem>>, vector<1x128x128xbf16>
    %35 = vector.shape_cast %34 : vector<1x128x128xbf16> to vector<128x128xbf16>
    %cst_30 = arith.constant dense<0.000000e+00> : vector<8x128xf32>
    %36 = tpu.matmul %33, %35, %cst_30 {dimension_numbers = #tpu.dot_dimension_numbers<[1], [0], [0], [1], [0, 0, 1, 1], [], []>} : vector<8x128xbf16>, vector<128x128xbf16>, vector<8x128xf32> -> vector<8x128xf32>
    %37 = arith.addf %31, %36 : vector<8x128xf32>
    %c6 = arith.constant 6 : index
    %c0_31 = arith.constant 0 : index
    %38 = tpu.strided_load %arg16[%c6, %c0_31] {strides = array<i32: 16, 1>} : memref<128x128xf32, #tpu.memory_space<vmem>>, vector<8x128xf32>
    %39 = arith.truncf %38 : vector<8x128xf32> to vector<8x128xbf16>
    %c6_32 = arith.constant 6 : index
    %c0_33 = arith.constant 0 : index
    %c0_34 = arith.constant 0 : index
    %40 = vector.load %arg6[%c6_32, %c0_33, %c0_34] : memref<16x128x128xbf16, #tpu.memory_space<vmem>>, vector<1x128x128xbf16>
    %41 = vector.shape_cast %40 : vector<1x128x128xbf16> to vector<128x128xbf16>
    %cst_35 = arith.constant dense<0.000000e+00> : vector<8x128xf32>
    %42 = tpu.matmul %39, %41, %cst_35 {dimension_numbers = #tpu.dot_dimension_numbers<[1], [0], [0], [1], [0, 0, 1, 1], [], []>} : vector<8x128xbf16>, vector<128x128xbf16>, vector<8x128xf32> -> vector<8x128xf32>
    %43 = arith.addf %37, %42 : vector<8x128xf32>
    %c7 = arith.constant 7 : index
    %c0_36 = arith.constant 0 : index
    %44 = tpu.strided_load %arg16[%c7, %c0_36] {strides = array<i32: 16, 1>} : memref<128x128xf32, #tpu.memory_space<vmem>>, vector<8x128xf32>
    %45 = arith.truncf %44 : vector<8x128xf32> to vector<8x128xbf16>
    %c7_37 = arith.constant 7 : index
    %c0_38 = arith.constant 0 : index
    %c0_39 = arith.constant 0 : index
    %46 = vector.load %arg6[%c7_37, %c0_38, %c0_39] : memref<16x128x128xbf16, #tpu.memory_space<vmem>>, vector<1x128x128xbf16>
    %47 = vector.shape_cast %46 : vector<1x128x128xbf16> to vector<128x128xbf16>
    %cst_40 = arith.constant dense<0.000000e+00> : vector<8x128xf32>
    %48 = tpu.matmul %45, %47, %cst_40 {dimension_numbers = #tpu.dot_dimension_numbers<[1], [0], [0], [1], [0, 0, 1, 1], [], []>} : vector<8x128xbf16>, vector<128x128xbf16>, vector<8x128xf32> -> vector<8x128xf32>
    %49 = arith.addf %43, %48 : vector<8x128xf32>
    %c8 = arith.constant 8 : index
    %c0_41 = arith.constant 0 : index
    %50 = tpu.strided_load %arg16[%c8, %c0_41] {strides = array<i32: 16, 1>} : memref<128x128xf32, #tpu.memory_space<vmem>>, vector<8x128xf32>
    %51 = arith.truncf %50 : vector<8x128xf32> to vector<8x128xbf16>
    %c8_42 = arith.constant 8 : index
    %c0_43 = arith.constant 0 : index
    %c0_44 = arith.constant 0 : index
    %52 = vector.load %arg6[%c8_42, %c0_43, %c0_44] : memref<16x128x128xbf16, #tpu.memory_space<vmem>>, vector<1x128x128xbf16>
    %53 = vector.shape_cast %52 : vector<1x128x128xbf16> to vector<128x128xbf16>
    %cst_45 = arith.constant dense<0.000000e+00> : vector<8x128xf32>
    %54 = tpu.matmul %51, %53, %cst_45 {dimension_numbers = #tpu.dot_dimension_numbers<[1], [0], [0], [1], [0, 0, 1, 1], [], []>} : vector<8x128xbf16>, vector<128x128xbf16>, vector<8x128xf32> -> vector<8x128xf32>
    %55 = arith.addf %49, %54 : vector<8x128xf32>
    %c9 = arith.constant 9 : index
    %c0_46 = arith.constant 0 : index
    %56 = tpu.strided_load %arg16[%c9, %c0_46] {strides = array<i32: 16, 1>} : memref<128x128xf32, #tpu.memory_space<vmem>>, vector<8x128xf32>
    %57 = arith.truncf %56 : vector<8x128xf32> to vector<8x128xbf16>
    %c9_47 = arith.constant 9 : index
    %c0_48 = arith.constant 0 : index
    %c0_49 = arith.constant 0 : index
    %58 = vector.load %arg6[%c9_47, %c0_48, %c0_49] : memref<16x128x128xbf16, #tpu.memory_space<vmem>>, vector<1x128x128xbf16>
    %59 = vector.shape_cast %58 : vector<1x128x128xbf16> to vector<128x128xbf16>
    %cst_50 = arith.constant dense<0.000000e+00> : vector<8x128xf32>
    %60 = tpu.matmul %57, %59, %cst_50 {dimension_numbers = #tpu.dot_dimension_numbers<[1], [0], [0], [1], [0, 0, 1, 1], [], []>} : vector<8x128xbf16>, vector<128x128xbf16>, vector<8x128xf32> -> vector<8x128xf32>
    %61 = arith.addf %55, %60 : vector<8x128xf32>
    %c10 = arith.constant 10 : index
    %c0_51 = arith.constant 0 : index
    %62 = tpu.strided_load %arg16[%c10, %c0_51] {strides = array<i32: 16, 1>} : memref<128x128xf32, #tpu.memory_space<vmem>>, vector<8x128xf32>
    %63 = arith.truncf %62 : vector<8x128xf32> to vector<8x128xbf16>
    %c10_52 = arith.constant 10 : index
    %c0_53 = arith.constant 0 : index
    %c0_54 = arith.constant 0 : index
    %64 = vector.load %arg6[%c10_52, %c0_53, %c0_54] : memref<16x128x128xbf16, #tpu.memory_space<vmem>>, vector<1x128x128xbf16>
    %65 = vector.shape_cast %64 : vector<1x128x128xbf16> to vector<128x128xbf16>
    %cst_55 = arith.constant dense<0.000000e+00> : vector<8x128xf32>
    %66 = tpu.matmul %63, %65, %cst_55 {dimension_numbers = #tpu.dot_dimension_numbers<[1], [0], [0], [1], [0, 0, 1, 1], [], []>} : vector<8x128xbf16>, vector<128x128xbf16>, vector<8x128xf32> -> vector<8x128xf32>
    %67 = arith.addf %61, %66 : vector<8x128xf32>
    %c11 = arith.constant 11 : index
    %c0_56 = arith.constant 0 : index
    %68 = tpu.strided_load %arg16[%c11, %c0_56] {strides = array<i32: 16, 1>} : memref<128x128xf32, #tpu.memory_space<vmem>>, vector<8x128xf32>
    %69 = arith.truncf %68 : vector<8x128xf32> to vector<8x128xbf16>
    %c11_57 = arith.constant 11 : index
    %c0_58 = arith.constant 0 : index
    %c0_59 = arith.constant 0 : index
    %70 = vector.load %arg6[%c11_57, %c0_58, %c0_59] : memref<16x128x128xbf16, #tpu.memory_space<vmem>>, vector<1x128x128xbf16>
    %71 = vector.shape_cast %70 : vector<1x128x128xbf16> to vector<128x128xbf16>
    %cst_60 = arith.constant dense<0.000000e+00> : vector<8x128xf32>
    %72 = tpu.matmul %69, %71, %cst_60 {dimension_numbers = #tpu.dot_dimension_numbers<[1], [0], [0], [1], [0, 0, 1, 1], [], []>} : vector<8x128xbf16>, vector<128x128xbf16>, vector<8x128xf32> -> vector<8x128xf32>
    %73 = arith.addf %67, %72 : vector<8x128xf32>
    %c12 = arith.constant 12 : index
    %c0_61 = arith.constant 0 : index
    %74 = tpu.strided_load %arg16[%c12, %c0_61] {strides = array<i32: 16, 1>} : memref<128x128xf32, #tpu.memory_space<vmem>>, vector<8x128xf32>
    %75 = arith.truncf %74 : vector<8x128xf32> to vector<8x128xbf16>
    %c12_62 = arith.constant 12 : index
    %c0_63 = arith.constant 0 : index
    %c0_64 = arith.constant 0 : index
    %76 = vector.load %arg6[%c12_62, %c0_63, %c0_64] : memref<16x128x128xbf16, #tpu.memory_space<vmem>>, vector<1x128x128xbf16>
    %77 = vector.shape_cast %76 : vector<1x128x128xbf16> to vector<128x128xbf16>
    %cst_65 = arith.constant dense<0.000000e+00> : vector<8x128xf32>
    %78 = tpu.matmul %75, %77, %cst_65 {dimension_numbers = #tpu.dot_dimension_numbers<[1], [0], [0], [1], [0, 0, 1, 1], [], []>} : vector<8x128xbf16>, vector<128x128xbf16>, vector<8x128xf32> -> vector<8x128xf32>
    %79 = arith.addf %73, %78 : vector<8x128xf32>
    %c13 = arith.constant 13 : index
    %c0_66 = arith.constant 0 : index
    %80 = tpu.strided_load %arg16[%c13, %c0_66] {strides = array<i32: 16, 1>} : memref<128x128xf32, #tpu.memory_space<vmem>>, vector<8x128xf32>
    %81 = arith.truncf %80 : vector<8x128xf32> to vector<8x128xbf16>
    %c13_67 = arith.constant 13 : index
    %c0_68 = arith.constant 0 : index
    %c0_69 = arith.constant 0 : index
    %82 = vector.load %arg6[%c13_67, %c0_68, %c0_69] : memref<16x128x128xbf16, #tpu.memory_space<vmem>>, vector<1x128x128xbf16>
    %83 = vector.shape_cast %82 : vector<1x128x128xbf16> to vector<128x128xbf16>
    %cst_70 = arith.constant dense<0.000000e+00> : vector<8x128xf32>
    %84 = tpu.matmul %81, %83, %cst_70 {dimension_numbers = #tpu.dot_dimension_numbers<[1], [0], [0], [1], [0, 0, 1, 1], [], []>} : vector<8x128xbf16>, vector<128x128xbf16>, vector<8x128xf32> -> vector<8x128xf32>
    %85 = arith.addf %79, %84 : vector<8x128xf32>
    %c14 = arith.constant 14 : index
    %c0_71 = arith.constant 0 : index
    %86 = tpu.strided_load %arg16[%c14, %c0_71] {strides = array<i32: 16, 1>} : memref<128x128xf32, #tpu.memory_space<vmem>>, vector<8x128xf32>
    %87 = arith.truncf %86 : vector<8x128xf32> to vector<8x128xbf16>
    %c14_72 = arith.constant 14 : index
    %c0_73 = arith.constant 0 : index
    %c0_74 = arith.constant 0 : index
    %88 = vector.load %arg6[%c14_72, %c0_73, %c0_74] : memref<16x128x128xbf16, #tpu.memory_space<vmem>>, vector<1x128x128xbf16>
    %89 = vector.shape_cast %88 : vector<1x128x128xbf16> to vector<128x128xbf16>
    %cst_75 = arith.constant dense<0.000000e+00> : vector<8x128xf32>
    %90 = tpu.matmul %87, %89, %cst_75 {dimension_numbers = #tpu.dot_dimension_numbers<[1], [0], [0], [1], [0, 0, 1, 1], [], []>} : vector<8x128xbf16>, vector<128x128xbf16>, vector<8x128xf32> -> vector<8x128xf32>
    %91 = arith.addf %85, %90 : vector<8x128xf32>
    %c15 = arith.constant 15 : index
    %c0_76 = arith.constant 0 : index
    %92 = tpu.strided_load %arg16[%c15, %c0_76] {strides = array<i32: 16, 1>} : memref<128x128xf32, #tpu.memory_space<vmem>>, vector<8x128xf32>
    %93 = arith.truncf %92 : vector<8x128xf32> to vector<8x128xbf16>
    %c15_77 = arith.constant 15 : index
    %c0_78 = arith.constant 0 : index
    %c0_79 = arith.constant 0 : index
    %94 = vector.load %arg6[%c15_77, %c0_78, %c0_79] : memref<16x128x128xbf16, #tpu.memory_space<vmem>>, vector<1x128x128xbf16>
    %95 = vector.shape_cast %94 : vector<1x128x128xbf16> to vector<128x128xbf16>
    %cst_80 = arith.constant dense<0.000000e+00> : vector<8x128xf32>
    %96 = tpu.matmul %93, %95, %cst_80 {dimension_numbers = #tpu.dot_dimension_numbers<[1], [0], [0], [1], [0, 0, 1, 1], [], []>} : vector<8x128xbf16>, vector<128x128xbf16>, vector<8x128xf32> -> vector<8x128xf32>
    %97 = arith.addf %91, %96 : vector<8x128xf32>
    %c0_81 = arith.constant 0 : index
    %c0_82 = arith.constant 0 : index
    %98 = vector.load %arg7[%c0_81, %c0_82] : memref<1x128xf32, #tpu.memory_space<vmem>>, vector<1x128xf32>
    %99 = vector.broadcast %98 : vector<1x128xf32> to vector<8x128xf32>
    %100 = arith.addf %97, %99 : vector<8x128xf32>
    %cst_83 = arith.constant 0.000000e+00 : f32
    %101 = vector.broadcast %cst_83 : f32 to vector<8x128xf32>
    %102 = arith.maximumf %100, %101 : vector<8x128xf32>
    %103 = arith.truncf %102 : vector<8x128xf32> to vector<8x128xbf16>
    %c0_84 = arith.constant 0 : index
    %c0_85 = arith.constant 0 : index
    %104 = vector.load %arg8[%c0_84, %c0_85] : memref<128x128xbf16, #tpu.memory_space<vmem>>, vector<128x128xbf16>
    %cst_86 = arith.constant dense<0.000000e+00> : vector<8x128xf32>
    %105 = tpu.matmul %103, %104, %cst_86 {dimension_numbers = #tpu.dot_dimension_numbers<[1], [0], [0], [1], [0, 0, 1, 1], [], []>} : vector<8x128xbf16>, vector<128x128xbf16>, vector<8x128xf32> -> vector<8x128xf32>
    %c0_87 = arith.constant 0 : index
    %c0_88 = arith.constant 0 : index
    %106 = vector.load %arg9[%c0_87, %c0_88] : memref<1x128xf32, #tpu.memory_space<vmem>>, vector<1x128xf32>
    %107 = vector.broadcast %106 : vector<1x128xf32> to vector<8x128xf32>
    %108 = arith.addf %105, %107 : vector<8x128xf32>
    %cst_89 = arith.constant 0.000000e+00 : f32
    %109 = vector.broadcast %cst_89 : f32 to vector<8x128xf32>
    %110 = arith.maximumf %108, %109 : vector<8x128xf32>
    %111 = arith.truncf %110 : vector<8x128xf32> to vector<8x128xbf16>
    %c0_90 = arith.constant 0 : index
    %c0_91 = arith.constant 0 : index
    %112 = vector.load %arg10[%c0_90, %c0_91] : memref<128x128xbf16, #tpu.memory_space<vmem>>, vector<128x128xbf16>
    %cst_92 = arith.constant dense<0.000000e+00> : vector<8x128xf32>
    %113 = tpu.matmul %111, %112, %cst_92 {dimension_numbers = #tpu.dot_dimension_numbers<[1], [0], [0], [1], [0, 0, 1, 1], [], []>} : vector<8x128xbf16>, vector<128x128xbf16>, vector<8x128xf32> -> vector<8x128xf32>
    %c0_93 = arith.constant 0 : index
    %c0_94 = arith.constant 0 : index
    %114 = vector.load %arg11[%c0_93, %c0_94] : memref<1x128xf32, #tpu.memory_space<vmem>>, vector<1x128xf32>
    %115 = vector.broadcast %114 : vector<1x128xf32> to vector<8x128xf32>
    %116 = arith.addf %113, %115 : vector<8x128xf32>
    %cst_95 = arith.constant dense<0xFF800000> : vector<8xf32>
    %117 = vector.multi_reduction <maximumf>, %116, %cst_95 [1] : vector<8x128xf32> to vector<8xf32>
    %118 = vector.shape_cast %117 : vector<8xf32> to vector<8x1xf32>
    %119 = vector.broadcast %118 : vector<8x1xf32> to vector<8x128xf32>
    %120 = arith.subf %116, %119 : vector<8x128xf32>
    %121 = math.exp %120 : vector<8x128xf32>
    %cst_96 = arith.constant dense<0.000000e+00> : vector<8xf32>
    %122 = vector.multi_reduction <add>, %121, %cst_96 [1] : vector<8x128xf32> to vector<8xf32>
    %123 = vector.shape_cast %122 : vector<8xf32> to vector<8x1xf32>
    %124 = vector.broadcast %123 : vector<8x1xf32> to vector<8x128xf32>
    %125 = arith.divf %121, %124 : vector<8x128xf32>
    %c0_97 = arith.constant 0 : index
    %c0_98 = arith.constant 0 : index
    %126 = vector.load %arg12[%c0_97, %c0_98] : memref<8x128xf32, #tpu.memory_space<vmem>>, vector<8x128xf32>
    tpu.vector_store %arg12[%c0_97, %c0_98], %125 {strides = array<i32>} : memref<8x128xf32, #tpu.memory_space<vmem>>, vector<8x128xf32>,
    return
  }
  func.func @transform_0(%arg0: i32) -> (i32, i32, i32) {
    %c0_i32 = arith.constant 0 : i32
    %c0_i32_0 = arith.constant 0 : i32
    %c0_i32_1 = arith.constant 0 : i32
    return %arg0, %c0_i32, %c0_i32_0 : i32, i32, i32
  }
  func.func @transform_1(%arg0: i32) -> (i32, i32) {
    %c0_i32 = arith.constant 0 : i32
    %c0_i32_0 = arith.constant 0 : i32
    %c0_i32_1 = arith.constant 0 : i32
    return %c0_i32, %c0_i32_0 : i32, i32
  }
  func.func @transform_2(%arg0: i32) -> (i32, i32) {
    %c0_i32 = arith.constant 0 : i32
    %c0_i32_0 = arith.constant 0 : i32
    %c0_i32_1 = arith.constant 0 : i32
    return %c0_i32, %c0_i32_0 : i32, i32
  }
  func.func @transform_3(%arg0: i32) -> (i32, i32, i32) {
    %c0_i32 = arith.constant 0 : i32
    %c0_i32_0 = arith.constant 0 : i32
    %c0_i32_1 = arith.constant 0 : i32
    %c0_i32_2 = arith.constant 0 : i32
    return %c0_i32, %c0_i32_0, %c0_i32_1 : i32, i32, i32
  }
  func.func @transform_4(%arg0: i32) -> (i32, i32) {
    %c0_i32 = arith.constant 0 : i32
    %c0_i32_0 = arith.constant 0 : i32
    %c0_i32_1 = arith.constant 0 : i32
    return %c0_i32, %c0_i32_0 : i32, i32
  }
  func.func @transform_5(%arg0: i32) -> (i32, i32, i32) {
    %c0_i32 = arith.constant 0 : i32
    %c0_i32_0 = arith.constant 0 : i32
    %c0_i32_1 = arith.constant 0 : i32
    %c0_i32_2 = arith.constant 0 : i32
    return %c0_i32, %c0_i32_0, %c0_i32_1 : i32, i32, i32
  }
  func.func @transform_6(%arg0: i32) -> (i32, i32) {
    %c0_i32 = arith.constant 0 : i32
    %c0_i32_0 = arith.constant 0 : i32
    %c0_i32_1 = arith.constant 0 : i32
    return %c0_i32, %c0_i32_0 : i32, i32
  }
  func.func @transform_7(%arg0: i32) -> (i32, i32) {
    %c0_i32 = arith.constant 0 : i32
    %c0_i32_0 = arith.constant 0 : i32
    %c0_i32_1 = arith.constant 0 : i32
    return %c0_i32, %c0_i32_0 : i32, i32
  }
  func.func @transform_8(%arg0: i32) -> (i32, i32) {
    %c0_i32 = arith.constant 0 : i32
    %c0_i32_0 = arith.constant 0 : i32
    %c0_i32_1 = arith.constant 0 : i32
    return %c0_i32, %c0_i32_0 : i32, i32
  }
  func.func @transform_9(%arg0: i32) -> (i32, i32) {
    %c0_i32 = arith.constant 0 : i32
    %c0_i32_0 = arith.constant 0 : i32
    %c0_i32_1 = arith.constant 0 : i32
    return %c0_i32, %c0_i32_0 : i32, i32
  }
  func.func @transform_10(%arg0: i32) -> (i32, i32) {
    %c0_i32 = arith.constant 0 : i32
    %c0_i32_0 = arith.constant 0 : i32
    %c0_i32_1 = arith.constant 0 : i32
    return %c0_i32, %c0_i32_0 : i32, i32
  }
  func.func @transform_11(%arg0: i32) -> (i32, i32) {
    %c0_i32 = arith.constant 0 : i32
    %c0_i32_0 = arith.constant 0 : i32
    return %arg0, %c0_i32 : i32, i32
  }
}

</mosaic_0001>

<bundles_post_ra>
// kernel: network_forward.1
= control target key start
LH: loop header
LB: loop body
LE: loop exit
PB: predicated region body
PF: predicated region fallthrough
CT: control target
= control target key end

     0   :  { %s12561_s0 = inlined_call_operand.vmem [shape: bf16[16,576,32], index: 0, kind: input, shape index: {}]   ;;  %s12562_s1 = inlined_call_operand.vmem [shape: bf16[32,128], index: 1, kind: input, shape index: {}]   ;;  %s12563_s2 = inlined_call_operand.vmem [shape: f32[1,128], index: 2, kind: input, shape index: {}]   ;;  %s12564_s3 = inlined_call_operand.vmem [shape: bf16[25,128,128], index: 3, kind: input, shape index: {}]   ;;  %s12565_s4 = inlined_call_operand.vmem [shape: f32[1,128], index: 4, kind: input, shape index: {}]   ;;  %s12566_s5 = inlined_call_operand.vmem [shape: bf16[16,128,128], index: 5, kind: input, shape index: {}]   ;;  %s12567_s6 = inlined_call_operand.vmem [shape: f32[1,128], index: 6, kind: input, shape index: {}]   ;;  %s12568_s7 = inlined_call_operand.vmem [shape: bf16[128,128], index: 7, kind: input, shape index: {}]   ;;  %s12569_s8 = inlined_call_operand.vmem [shape: f32[1,128], index: 8, kind: input, shape index: {}]   ;;  %s12570_s9 = inlined_call_operand.vmem [shape: bf16[128,128], index: 9, kind: input, shape index: {}]   ;;  %s12571_s10 = inlined_call_operand.vmem [shape: f32[1,128], index: 10, kind: input, shape index: {}]   ;;  %s12572_s11 = inlined_call_operand.hbm [shape: f32[16,128], index: 11, kind: output, shape index: {}]  }
   0x1   :  { %12575 = sst [smem:[#allocation11_spill]] %s12561_s0 }
   0x2   :  { %16 = vsyncpa [#allocation7], 0 }
   0x3   :  { %18 = vsyncpa [#allocation7 + $0x1], 0  ;;  %s10792_s17 = smov 0   ;;  %s10794_s18 = smov 0  }
   0x4   :  { %s10796_s19 = smov 0   ;;  %s10798_s20 = smov 0  }
   0x5 LB: > { %12576 = sst [smem:[#allocation9_spill]] %s10719_s19  ;;  %s10813_s21 = sadd.s32 4294967295, %s10723_s20   ;;  %s10723_s20 = sphi %s10798_s20, %s12588_s20   ;;  %s10719_s19 = sphi %s10796_s19, %s12585_s19   ;;  %s10715_s18 = sphi %s10794_s18, %s12587_s18   ;;  %s10711_s17 = sphi %s10792_s17, %s12586_s17  }
   0x6   : > { %s7392_s22 = sadd.s32 4294967294, %s10723_s20   ;;  %s10817_s23 = sadd.s32 1, %s10723_s20  }
   0x7   : > { %s267_s24 = sadd.s32 1, %s10719_s19  ;;  %s264_s25 = ssub.s32 %s10723_s20, %s10817_s23 }
   0x8   : > { %p277_p0 = scmp.ne.s32.totalorder %s10719_s19, %s10715_s18  ;;  %p265_p1 = scmp.eq.s32.totalorder %s264_s25, 0 }
   0x9   : > { %p278_p2 = scmp.eq.s32.totalorder %s10813_s21, 1  ;;  %p283_p3 = scmp.ne.s32.totalorder %s10715_s18, %s10711_s17 }
   0xa   : > { %p284_p4 = scmp.eq.s32.totalorder %s7392_s22, 1  ;;  %p7395_p7 = scmp.ge.s32.totalorder %s10723_s20, 1 }
   0xb   : > { %s10828_s26 = scalar_select %p265_p1, %s10719_s19, %s267_s24  }
   0xc   : > { %p10830_p5 = por %p278_p2, %p277_p0  ;;  %p10834_p6 = por %p284_p4, %p283_p3 }
   0xd   : > { %12577 = sst [smem:[#allocation10_spill]] %s10828_s26  ;;  %p342_p8 = scmp.lt.s32.totalorder %s10723_s20, 3 }
   0xf   : > { %p343_p9 = pnand %p7395_p7, %p342_p8 }
  0x10   : > { %s12573_s29 = sand.u32 (!%p343_p9), 1, %s10715_s18   ;;  %s7397_s30 = sshll.u32 (!%p343_p9), %s10813_s21, 3 }
  0x11   : > { %346 = sbr.rel (%p343_p9) target bundleno = 2214 (0x8a6), region = 64  ;;  %s10844_s12 = sshll.u32 (!%p343_p9), %s12573_s29, 3 }
  0x12   : > { %p384_p10 = scmp.lt.s32.totalorder (!%p343_p9), %s7397_s30, 15  ;;  %s12580_s0 = sld [smem:[#allocation11_spill]] (!%p343_p9) }
  0x13   : > { %s10852_s24 = smov (!%p343_p9), 0  }
  0x18   : > { %s12590_s30 = smov (!%p384_p10, %s7397_s30), 15 }
  0x19   : > { %s10203_s13 = smul.u32 288, %s12590_s30 }
  0x1b   : > { %s10849_s16 = scalar_lea.vmem %s12580_s0, %s10203_s13 }
  0x1c LB: >> { %v10253_v0 = vld [vmem:[%s12562_s1] sm:$0xff]   ;;  %v10254_v1 = vld [vmem:[%s12562_s1 + $0x8] sm:$0xff]   ;;  %s8458_s13 = smul.u32 288, %s10727_s24  ;;  %vm500_vm0 = vcmask 261120   ;;  %v10297_v44 = vld [vmem:[%s12564_s3 + $0x50] sm:$0xff]   ;;  %s8066_s15 = sshll.u32 %s10727_s24, 4  ;;  %s10727_s24 = sphi %s10852_s24, %s396_s24  }
  0x1d   : >> { %8963 = vmatprep.subr.bf16.mxu0 %v10253_v0  ;;  %v10257_v2 = vld [vmem:[%s12562_s1] sm:$0xff]   ;;  %v10264_v3 = vld [vmem:[%s12562_s1 + $0x8] sm:$0xff]   ;;  %v10298_v45 = vld [vmem:[%s12564_s3 + $0x58] sm:$0xff]   ;;  %s5227_s0 = scalar_lea.vmem [#allocation5], %s8066_s15  ;;  %s396_s24 = sadd.s32 1, %s10727_s24  }
  0x1e   : >> { %8964 = vmatpush3.bf16.msra.mxu0 %v10253_v0  ;;  %s10871_s19 = scalar_lea.vmem %s10849_s16, %s8458_s13  ;;  %10007 = vmatprep.subr.bf16.mxu1 %v10257_v2  ;;  %v10276_v7 = vld [vmem:[%s12562_s1] sm:$0xff]   ;;  %v10281_v28 = vld [vmem:[%s12562_s1 + $0x8] sm:$0xff]   ;;  %v10303_v50 = vld [vmem:[%s12564_s3 + $0x70] sm:$0xff]   ;;  %p393_p11 = scmp.ge.s32.totalorder %s396_s24, 8  }
  0x1f   : >> { %8965 = vmatprep.subr.bf16.mxu0 %v10254_v1  ;;  %v10255_v4 = vld [vmem:[%s10871_s19] sm:$0xff]   ;;  %10009 = vmatpush3.bf16.msra.mxu1 %v10257_v2  ;;  %v10256_v5 = vld [vmem:[%s10871_s19 + $0x8] sm:$0xff]   ;;  %v10258_v6 = vld [vmem:[%s10871_s19 + $0x10] sm:$0xff]   ;;  %vm10730_vm1 = vmmov (%p393_p11), 0   ;;  %s8455_s16 = sshll.u32 (%p393_p11), %s10813_s21, 7  ;;  %s12581_s24 = scalar_lea.vmem (%p393_p11), [#allocation6], %s10844_s12 }
  0x20   : >> { %10008 = vmatprep.subr.bf16.mxu1 %v10264_v3  ;;  %8967 = vmatprep.mubr.msk.bf16.mxu0 %vm500_vm0, %v10255_v4  ;;  %v10259_v8 = vld [vmem:[%s10871_s19 + $0x18] sm:$0xff]   ;;  %v10260_v9 = vld [vmem:[%s10871_s19 + $0x20] sm:$0xff]   ;;  %v10268_v11 = vld [vmem:[%s10871_s19 + $0x88] sm:$0xff]   ;;  %s7324_s13 = sshll.u32 (%p393_p11), %s12581_s24, 4  ;;  %s12583_s26 = sand.u32 (%p393_p11), 1, %s10715_s18   ;;  %s12517_s13 = int_to_ptr.vmem [resolvable:$true] %s7324_s13 }
  0x21   : >> { %v10267_v10 = vld [vmem:[%s10871_s19 + $0x80] sm:$0xff]   ;;  %v10271_v12 = vld [vmem:[%s10871_s19 + $0x90] sm:$0xff]   ;;  %v10261_v13 = vld [vmem:[%s10871_s19 + $0x28] sm:$0xff]   ;;  %s7311_s29 = scalar_lea.sflag (%p393_p11), [#allocation7], %s12583_s26  ;;  %s10657_s22 = scalar_lea.vmem (%p393_p11), %s12517_s13, 128 }
  0x22   : >> { %8966 = vmatpush3.bf16.msra.mxu0 %v10254_v1  ;;  %9003 = vmatprep.mubr.msk.bf16.mxu1 %vm500_vm0, %v10267_v10  ;;  %v10262_v14 = vld [vmem:[%s10871_s19 + $0x30] sm:$0xff]   ;;  %v10272_v15 = vld [vmem:[%s10871_s19 + $0x98] sm:$0xff]   ;;  %v10275_v16 = vld [vmem:[%s10871_s19 + $0xa0] sm:$0xff]   ;;  %p10658_p12 = scmp.ne.s32.totalorder (%p393_p11), %s12517_s13, %s10657_s22  ;;  %s10731_s21 = smov (%p393_p11), [#allocation6]  }
  0x23   : >> { %8991 = vmatprep.subr.bf16.mxu0 %v10257_v2  ;;  %10010 = vmatpush3.bf16.msra.mxu1 %v10264_v3  ;;  %v10263_v17 = vld [vmem:[%s10871_s19 + $0x38] sm:$0xff]   ;;  %v10265_v18 = vld [vmem:[%s10871_s19 + $0x40] sm:$0xff]   ;;  %v10277_v19 = vld [vmem:[%s10871_s19 + $0xa8] sm:$0xff]   ;;  %s10661_s25 = sshll.u32 (%p393_p11), %s10731_s21, 4  ;;  %s10662_s25 = int_to_ptr.vmem [resolvable:$false] %s10661_s25 }
  0x24   : >> { %v10280_v20 = vld [vmem:[%s10871_s19 + $0xb0] sm:$0xff]   ;;  %v10266_v21 = vld [vmem:[%s10871_s19 + $0x48] sm:$0xff]   ;;  %v10282_v22 = vld [vmem:[%s10871_s19 + $0xb8] sm:$0xff]   ;;  %p10659_p13 = pnand (%p393_p11), %p10658_p12, %p10830_p5  ;;  %s10663_s30 = scalar_lea.vmem (%p393_p11), %s10662_s25, 256 }
  0x25   : >> { %8968 = vmatmul.mubr.msk.bf16.vlgmr.msra.gmra.mrb[0].mxu0 %vm500_vm0, %v10256_v5  ;;  %v10269_v23 = vld [vmem:[%s10871_s19 + $0x50] sm:$0xff]   ;;  %v10270_v24 = vld [vmem:[%s10871_s19 + $0x58] sm:$0xff]   ;;  %v10273_v25 = vld [vmem:[%s10871_s19 + $0x60] sm:$0xff]   ;;  %p10664_p1 = scmp.lt.s32.totalorder (%p393_p11), %s12517_s13, %s10662_s25  ;;  %p10665_p2 = scmp.lt.s32.totalorder (%p393_p11), %s10663_s30, %s10657_s22 }
  0x26   : >> { %8992 = vmatpush3.bf16.msra.mxu0 %v10257_v2  ;;  %8971 = vmatprep.mubr.msk.bf16.mxu0 %vm500_vm0, %v10258_v6  ;;  %v10274_v26 = vld [vmem:[%s10871_s19 + $0x68] sm:$0xff]   ;;  %v10278_v27 = vld [vmem:[%s10871_s19 + $0x70] sm:$0xff]   ;;  %v10279_v29 = vld [vmem:[%s10871_s19 + $0x78] sm:$0xff]   ;;  %p10660_p0 = pneg (%p393_p11), %p10659_p13 }
  0x27   : >> { %8993 = vmatprep.subr.bf16.mxu0 %v10264_v3  ;;  %9004 = vmatmul.mubr.msk.bf16.vlgmr.msra.gmra.mrb[0].mxu1 %vm500_vm0, %v10268_v11  ;;  %v10283_v30 = vld [vmem:[%s10871_s19 + $0xc0] sm:$0xff]   ;;  %v10284_v31 = vld [vmem:[%s10871_s19 + $0xc8] sm:$0xff]   ;;  %v10285_v32 = vld [vmem:[%s10871_s19 + $0xd0] sm:$0xff]   ;;  %p10666_p3 = por (%p393_p11), %p10665_p2, %p10664_p1 }
  0x28   : >> { %9007 = vmatprep.mubr.msk.bf16.mxu1 %vm500_vm0, %v10271_v12  ;;  %v10286_v33 = vld [vmem:[%s10871_s19 + $0xd8] sm:$0xff]   ;;  %v10287_v34 = vld [vmem:[%s10871_s19 + $0xe0] sm:$0xff]   ;;  %v10288_v35 = vld [vmem:[%s10871_s19 + $0xe8] sm:$0xff]  }
  0x29   : >> { %v10289_v36 = vld [vmem:[%s10871_s19 + $0xf0] sm:$0xff]   ;;  %v10290_v37 = vld [vmem:[%s10871_s19 + $0xf8] sm:$0xff]   ;;  %v10291_v38 = vld [vmem:[%s10871_s19 + $0x100] sm:$0xff]   ;;  %p10667_p4 = pnand (%p393_p11), %p10666_p3, %p10660_p0 }
  0x2a   : >> { %8994 = vmatpush3.bf16.msra.mxu0 %v10264_v3  ;;  %v10292_v39 = vld [vmem:[%s10871_s19 + $0x108] sm:$0xff]   ;;  %v10293_v40 = vld [vmem:[%s10871_s19 + $0x110] sm:$0xff]   ;;  %v10294_v41 = vld [vmem:[%s10871_s19 + $0x118] sm:$0xff]   ;;  %s12582_s19 = smov (%p393_p11), %s12581_s24 }
  0x2b   : >> { %9019 = vmatprep.subr.bf16.mxu0 %v10276_v7  ;;  %v10295_v42 = vld [vmem:[%s12564_s3 + $0x40] sm:$0xff]   ;;  %v10296_v43 = vld [vmem:[%s12564_s3 + $0x48] sm:$0xff]   ;;  %v10304_v51 = vld [vmem:[%s12564_s3 + $0x2d0] sm:$0xff]  }
  0x2c   : >> { %v10299_v46 = vld [vmem:[%s12564_s3 + $0x60] sm:$0xff]   ;;  %v10301_v48 = vld [vmem:[%s12564_s3 + $0x68] sm:$0xff]   ;;  %v10305_v52 = vld [vmem:[%s12564_s3 + $0x78] sm:$0xff]  }
  0x2d   : >> { %8972 = vmatmul.mubr.msk.bf16.gmra.mrb[4].mxu0 %vm500_vm0, %v10259_v8  ;;  %v10300_v47 = vld [vmem:[%s12564_s3 + $0x2c0] sm:$0xff]   ;;  %v10302_v49 = vld [vmem:[%s12564_s3 + $0x2c8] sm:$0xff]   ;;  %v10306_v53 = vld [vmem:[%s12564_s3 + $0x2d8] sm:$0xff]  }
  0x2e   : >> { %8975 = vmatprep.mubr.msk.bf16.mxu0 %vm500_vm0, %v10260_v9  ;;  %9311 = vmatprep.subr.bf16.mxu1 %v10300_v47  ;;  %v10990_v54 = vld [vmem:[%s12564_s3] sm:$0xff]   ;;  %v10310_v56 = vld [vmem:[%s12564_s3 + $0x2e8] sm:$0xff]   ;;  %v10312_v57 = vld [vmem:[%s12564_s3 + $0x2f0] sm:$0xff]  }
  0x2f   : >> { %9008 = vmatmul.mubr.msk.bf16.gmra.mrb[4].mxu1 %vm500_vm0, %v10272_v15  ;;  %v10308_v55 = vld [vmem:[%s12564_s3 + $0x2e0] sm:$0xff]   ;;  %v10314_v58 = vld [vmem:[%s12564_s3 + $0x2f8] sm:$0xff]  }
  0x30   : >> { %9011 = vmatprep.mubr.msk.bf16.mxu1 %vm500_vm0, %v10275_v16  ;;  %9312 = vmatpush3.bf16.msra.mxu1 %v10300_v47  ;;  %v11008_v59 = vld [vmem:[%s12564_s3 + $0x300] sm:$0xff]  }
  0x31   : >> { %9313 = vmatprep.subr.bf16.mxu1 %v10302_v49 }
  0x34   : >> { %9314 = vmatpush3.bf16.msra.mxu1 %v10302_v49 }
  0x35   : >> { %8976 = vmatmul.mubr.msk.bf16.gmra.mrb[8].mxu0 %vm500_vm0, %v10261_v13  ;;  %9315 = vmatprep.subr.bf16.mxu1 %v10304_v51 }
  0x36   : >> { %8979 = vmatprep.mubr.msk.bf16.mxu0 %vm500_vm0, %v10262_v14 }
  0x37   : >> { %9012 = vmatmul.mubr.msk.bf16.gmra.mrb[8].mxu1 %vm500_vm0, %v10277_v19 }
  0x38   : >> { %9015 = vmatprep.mubr.msk.bf16.mxu1 %vm500_vm0, %v10280_v20  ;;  %9316 = vmatpush3.bf16.msra.mxu1 %v10304_v51 }
  0x39   : >> { %9317 = vmatprep.subr.bf16.mxu1 %v10306_v53 }
  0x3c   : >> { %9318 = vmatpush3.bf16.msra.mxu1 %v10306_v53 }
  0x3d   : >> { %8980 = vmatmul.mubr.msk.bf16.gmra.mrb[12].mxu0 %vm500_vm0, %v10263_v17  ;;  %9319 = vmatprep.subr.bf16.mxu1 %v10308_v55  ;;  %v11022_v17 = vld [vmem:[%s12563_s2] ss:$0 sm:$0xff] }
  0x3e   : >> { %8983 = vmatprep.mubr.msk.bf16.mxu0 %vm500_vm0, %v10265_v18 }
  0x3f   : >> { %9016 = vmatmul.mubr.msk.bf16.gmra.mrb[12].mxu1 %vm500_vm0, %v10282_v22 }
  0x40   : >> { %9320 = vmatpush3.bf16.msra.mxu1 %v10308_v55 }
  0x41   : >> { %9321 = vmatprep.subr.bf16.mxu1 %v10310_v56 }
  0x44   : >> { %9322 = vmatpush3.bf16.msra.mxu1 %v10310_v56 }
  0x45   : >> { %8984 = vmatmul.mubr.msk.bf16.gmra.mrb[16].mxu0 %vm500_vm0, %v10266_v21  ;;  %9323 = vmatprep.subr.bf16.mxu1 %v10312_v57 }
  0x46   : >> { %8987 = vmatprep.mubr.msk.bf16.mxu0 %vm500_vm0, %v10269_v23 }
  0x48   : >> { %9324 = vmatpush3.bf16.msra.mxu1 %v10312_v57 }
  0x49   : >> { %9325 = vmatprep.subr.bf16.mxu1 %v10314_v58 }
  0x4c   : >> { %9326 = vmatpush3.bf16.msra.mxu1 %v10314_v58 }
  0x4d   : >> { %8988 = vmatmul.mubr.msk.bf16.gmra.mrb[20].mxu0 %vm500_vm0, %v10270_v24  ;;  %9335 = vmatprep.subr.bf16.mxu1 %v11008_v59 }
  0x4e   : >> { %8995 = vmatprep.mubr.msk.bf16.mxu0 %vm500_vm0, %v10273_v25 }
  0x55   : >> { %8996 = vmatmul.mubr.msk.bf16.vlgmr.msra.gmra.mrb[24].mxu0 %vm500_vm0, %v10274_v26 }
  0x56   : >> { %9020 = vmatpush3.bf16.msra.mxu0 %v10276_v7  ;;  %8999 = vmatprep.mubr.msk.bf16.mxu0 %vm500_vm0, %v10278_v27 }
  0x57   : >> { %9021 = vmatprep.subr.bf16.mxu0 %v10281_v28 }
  0x5a   : >> { %9022 = vmatpush3.bf16.msra.mxu0 %v10281_v28 }
  0x5b   : >> { %9047 = vmatprep.subr.bf16.mxu0 %v10295_v42 }
  0x5d   : >> { %9000 = vmatmul.mubr.msk.bf16.gmra.mrb[28].mxu0 %vm500_vm0, %v10279_v29 }
  0x5e   : >> { %9023 = vmatprep.mubr.msk.bf16.mxu0 %vm500_vm0, %v10283_v30 }
  0x65   : >> { %9024 = vmatmul.mubr.msk.bf16.vlgmr.msra.gmra.mrb[32].mxu0 %vm500_vm0, %v10284_v31 }
  0x66   : >> { %9027 = vmatprep.mubr.msk.bf16.mxu0 %vm500_vm0, %v10285_v32  ;;  %9048 = vmatpush3.bf16.msra.mxu0 %v10295_v42 }
  0x67   : >> { %9049 = vmatprep.subr.bf16.mxu0 %v10296_v43 }
  0x6a   : >> { %9050 = vmatpush3.bf16.msra.mxu0 %v10296_v43 }
  0x6b   : >> { %9051 = vmatprep.subr.bf16.mxu0 %v10297_v44 }
  0x6d   : >> { %9028 = vmatmul.mubr.msk.bf16.gmra.mrb[36].mxu0 %vm500_vm0, %v10286_v33 }
  0x6e   : >> { %9031 = vmatprep.mubr.msk.bf16.mxu0 %vm500_vm0, %v10287_v34  ;;  %9052 = vmatpush3.bf16.msra.mxu0 %v10297_v44 }
  0x6f   : >> { %9053 = vmatprep.subr.bf16.mxu0 %v10298_v45 }
  0x72   : >> { %9054 = vmatpush3.bf16.msra.mxu0 %v10298_v45 }
  0x73   : >> { %9055 = vmatprep.subr.bf16.mxu0 %v10299_v46 }
  0x75   : >> { %9032 = vmatmul.mubr.msk.bf16.gmra.mrb[40].mxu0 %vm500_vm0, %v10288_v35 }
  0x76   : >> { %9035 = vmatprep.mubr.msk.bf16.mxu0 %vm500_vm0, %v10289_v36  ;;  %9056 = vmatpush3.bf16.msra.mxu0 %v10299_v46 }
  0x77   : >> { %9057 = vmatprep.subr.bf16.mxu0 %v10301_v48 }
  0x7a   : >> { %9058 = vmatpush3.bf16.msra.mxu0 %v10301_v48 }
  0x7b   : >> { %9059 = vmatprep.subr.bf16.mxu0 %v10303_v50 }
  0x7d   : >> { %9036 = vmatmul.mubr.msk.bf16.gmra.mrb[44].mxu0 %vm500_vm0, %v10290_v37 }
  0x7e   : >> { %9039 = vmatprep.mubr.msk.bf16.mxu0 %vm500_vm0, %v10291_v38  ;;  %9060 = vmatpush3.bf16.msra.mxu0 %v10303_v50 }
  0x7f   : >> { %9061 = vmatprep.subr.bf16.mxu0 %v10305_v52 }
  0x82   : >> { %9062 = vmatpush3.bf16.msra.mxu0 %v10305_v52 }
  0x83   : >> { %9071 = vmatprep.subr.bf16.mxu0 %v10990_v54 }
  0x85   : >> { %9040 = vmatmul.mubr.msk.bf16.gmra.mrb[48].mxu0 %vm500_vm0, %v10292_v39 }
  0x86   : >> { %9043 = vmatprep.mubr.msk.bf16.mxu0 %vm500_vm0, %v10293_v40 }
  0x8d   : >> { %9044 = vmatmul.mubr.msk.bf16.gmra.mrb[52].mxu0 %vm500_vm0, %v10294_v41 }
  0xf8   : >> { %v8969_v60 = vpop.f32.mrb[0].mxu0 }
  0xf9   : >> { %v571_v61 = vpop.f32.mrb[1].mxu0 }
  0xfa   : >> { %v8970_v62 = vpop.f32.mrb[2].mxu0  ;;  %v11011_v2 = vpop.f32.mrb[0].mxu1 }
  0xfb   : >> { %v666_v63 = vmax.f32 %v571_v61, %v8970_v62  ;;  %v574_v0 = vpop.f32.mrb[3].mxu0  ;;  %v962_v4 = vpop.f32.mrb[1].mxu1 }
  0xfc   : >> { %v9006_v7 = vpop.f32.mrb[2].mxu1 }
  0xfd   : >> { %678 = vst [vmem:[#allocation2] sm:$0xff] %v666_v63  ;;  %v1030_v9 = vmax.f32 %v962_v4, %v9006_v7  ;;  %v11013_v10 = vpop.f32.mrb[3].mxu1 }
 0x100   : >> { %v8973_v1 = vpop.f32.mrb[4].mxu0 }
 0x101   : >> { %v587_v3 = vpop.f32.mrb[5].mxu0 }
 0x102   : >> { %v667_v5 = vmax.f32 %v574_v0, %v587_v3  ;;  %v8974_v6 = vpop.f32.mrb[6].mxu0  ;;  %v11015_v13 = vpop.f32.mrb[4].mxu1 }
 0x103   : >> { %v590_v8 = vpop.f32.mrb[7].mxu0  ;;  %v11017_v16 = vpop.f32.mrb[5].mxu1 }
 0x104   : >> { %679 = vst [vmem:[#allocation2 + $0x8] sm:$0xff] %v667_v5  ;;  %v668_v11 = vmax.f32 %v8969_v60, %v590_v8  ;;  %v11024_v19 = vpop.f32.mrb[6].mxu1 }
 0x105   : >> { %v1031_v24 = vmax.f32 %v11017_v16, %v11024_v19  ;;  %v11028_v25 = vpop.f32.mrb[7].mxu1 }
 0x106   : >> { %680 = vst [vmem:[#allocation2 + $0x10] sm:$0xff] %v668_v11 }
 0x108   : >> { %v8977_v12 = vpop.f32.mrb[8].mxu0 }
 0x109   : >> { %v670_v14 = vmax.f32 %v8974_v6, %v8977_v12  ;;  %v603_v15 = vpop.f32.mrb[9].mxu0 }
 0x10a   : >> { %v8978_v18 = vpop.f32.mrb[10].mxu0  ;;  %v11035_v35 = vpop.f32.mrb[8].mxu1 }
 0x10b   : >> { %v690_v20 = vld [vmem:[#allocation2] ss:$2 sm:$0xff]  ;;  %v706_v21 = vld [vmem:[#allocation2 + $0x1] ss:$2 sm:$0xff]  ;;  %682 = vst [vmem:[#allocation2 + $0x20] sm:$0xff] %v670_v14  ;;  %v671_v22 = vmax.f32 %v603_v15, %v8978_v18  ;;  %v606_v23 = vpop.f32.mrb[11].mxu0 }
 0x10c   : >> { %v721_v26 = vmax.f32 %v690_v20, %v706_v21  ;;  %v669_v27 = vmax.f32 %v8973_v1, %v606_v23  ;;  %v994_v37 = vpop.f32.mrb[9].mxu1 }
 0x10d   : >> { %v692_v28 = vld [vmem:[#allocation2 + $0x10] ss:$2 sm:$0xf]  ;;  %v708_v29 = vld [vmem:[#allocation2 + $0x11] ss:$2 sm:$0xf]  ;;  %v1032_v40 = vmax.f32 %v11028_v25, %v994_v37 }
 0x10e   : >> { %683 = vst [vmem:[#allocation2 + $0x28] sm:$0xff] %v671_v22  ;;  %v722_v30 = vmax.f32 %v692_v28, %v708_v29  ;;  %681 = vst [vmem:[#allocation2 + $0x18] sm:$0xff] %v669_v27  ;;  %v11031_v31 = vadd.f32 %v11022_v17, %v721_v26  ;;  %v11040_v41 = vpop.f32.mrb[10].mxu1 }
 0x10f   : >> { %v997_v44 = vpop.f32.mrb[11].mxu1 }
 0x110   : >> { %v737_v32 = vadd.f32 %v11022_v17, %v722_v30  ;;  %v8981_v33 = vpop.f32.mrb[12].mxu0  ;;  %v744_v34 = vmax.f32 %v11031_v31, 0.0  ;;  %v1033_v47 = vmax.f32 %v11015_v13, %v997_v44  ;;  %v10320_v31 = vld [vmem:[%s12564_s3 + $0x310] sm:$0xff]  }
 0x111   : >> { %v619_v36 = vpop.f32.mrb[13].mxu0 }
 0x112   : >> { %v8982_v38 = vpop.f32.mrb[14].mxu0  ;;  %v745_v39 = vmax.f32 %v737_v32, 0.0  ;;  %752 = vst [vmem:[#allocation3] sm:$0xff] %v744_v34  ;;  %v11047_v56 = vpop.f32.mrb[12].mxu1 }
 0x113   : >> { %v672_v42 = vmax.f32 %v619_v36, %v8982_v38  ;;  %v622_v43 = vpop.f32.mrb[15].mxu0  ;;  %v1035_v60 = vmax.f32 %v11040_v41, %v11047_v56  ;;  %v11051_v61 = vpop.f32.mrb[13].mxu1 }
 0x114   : >> { %753 = vst [vmem:[#allocation3 + $0x8] sm:$0xf] %v745_v39  ;;  %v9018_v1 = vpop.f32.mrb[14].mxu1 }
 0x115   : >> { %v696_v45 = vld [vmem:[#allocation2 + $0x28] ss:$2 sm:$0xf]  ;;  %v712_v46 = vld [vmem:[#allocation2 + $0x29] ss:$2 sm:$0xf]  ;;  %v1036_v4 = vmax.f32 %v11051_v61, %v9018_v1 }
 0x116   : >> { %v724_v48 = vmax.f32 %v696_v45, %v712_v46  ;;  %v694_v49 = vld [vmem:[#allocation2 + $0x18] ss:$2 sm:$0xff]  ;;  %v710_v50 = vld [vmem:[#allocation2 + $0x19] ss:$2 sm:$0xff]  ;;  %684 = vst [vmem:[#allocation2 + $0x30] sm:$0xff] %v672_v42  ;;  %1042 = vst [vmem:[#allocation2 + $0x28] sm:$0xff] %v1030_v9 }
 0x117   : >> { %v723_v51 = vmax.f32 %v694_v49, %v710_v50  ;;  %v11055_v5 = vpop.f32.mrb[15].mxu1 }
 0x118   : >> { %v739_v52 = vadd.f32 %v11022_v17, %v724_v48  ;;  %v8985_v53 = vpop.f32.mrb[16].mxu0  ;;  %v1034_v7 = vmax.f32 %v11035_v35, %v11055_v5 }
 0x119   : >> { %v11045_v55 = vadd.f32 %v11022_v17, %v723_v51  ;;  %v635_v57 = vpop.f32.mrb[17].mxu0 }
 0x11a   : >> { %v747_v58 = vmax.f32 %v739_v52, 0.0  ;;  %v673_v62 = vmax.f32 %v622_v43, %v635_v57  ;;  %v8986_v63 = vpop.f32.mrb[18].mxu0 }
 0x11b   : >> { %v746_v0 = vmax.f32 %v11045_v55, 0.0  ;;  %v638_v3 = vpop.f32.mrb[19].mxu0  ;;  %v1478_v21 = vld [vmem:[#allocation3 + $0x1] sm:$0xff] }
 0x11c   : >> { %755 = vst [vmem:[#allocation3 + $0x18] sm:$0xf] %v747_v58  ;;  %685 = vst [vmem:[#allocation2 + $0x38] sm:$0xff] %v673_v62  ;;  %v674_v6 = vmax.f32 %v8981_v33, %v638_v3 }
 0x11d   : >> { %754 = vst [vmem:[#allocation3 + $0x10] sm:$0xff] %v746_v0  ;;  %v1052_v8 = vld [vmem:[#allocation2 + $0x28] ss:$2 sm:$0xf] }
 0x11e   : >> { %v1060_v9 = vld [vmem:[#allocation2 + $0x29] ss:$2 sm:$0xf]  ;;  %686 = vst [vmem:[#allocation2 + $0x40] sm:$0xff] %v674_v6 }
 0x11f   : >> { %v1068_v11 = vmax.f32 %v1052_v8, %v1060_v9 }
 0x120   : >> { %v8989_v13 = vpop.f32.mrb[20].mxu0 }
 0x121   : >> { %v1083_v12 = vadd.f32 %v11022_v17, %v1068_v11  ;;  %v676_v14 = vmax.f32 %v8986_v63, %v8989_v13  ;;  %v651_v15 = vpop.f32.mrb[21].mxu0 }
 0x122   : >> { %v8990_v20 = vpop.f32.mrb[22].mxu0 }
 0x123   : >> { %v1091_v18 = vmax.f32 %v1083_v12, 0.0  ;;  %688 = vst [vmem:[#allocation2 + $0x50] sm:$0xff] %v676_v14  ;;  %v677_v22 = vmax.f32 %v651_v15, %v8990_v20  ;;  %v654_v23 = vpop.f32.mrb[23].mxu0  ;;  %v698_v26 = vld [vmem:[#allocation2 + $0x30] ss:$2 sm:$0xff] }
 0x124   : >> { %v1479_v25 = vld [vmem:[#allocation3 + $0x11] sm:$0xff]  ;;  %v675_v28 = vmax.f32 %v8985_v53, %v654_v23 }
 0x125   : >> { %v714_v27 = vld [vmem:[#allocation2 + $0x31] ss:$2 sm:$0xff]  ;;  %1100 = vst [vmem:[#allocation3 + $0x58] sm:$0xf] %v1091_v18  ;;  %v1486_v29 = vpack.c.bf16 %v1479_v25, %v1478_v21  ;;  %689 = vst [vmem:[#allocation2 + $0x58] sm:$0xff] %v677_v22 }
 0x126   : >> { %v725_v30 = vmax.f32 %v698_v26, %v714_v27  ;;  %1043 = vst [vmem:[#allocation2 + $0x30] sm:$0xff] %v1031_v24  ;;  %1044 = vst [vmem:[#allocation2 + $0x38] sm:$0xff] %v1032_v40  ;;  %v700_v32 = vld [vmem:[#allocation2 + $0x40] ss:$2 sm:$0xf] }
 0x127   : >> { %v716_v33 = vld [vmem:[#allocation2 + $0x41] ss:$2 sm:$0xf]  ;;  %687 = vst [vmem:[#allocation2 + $0x48] sm:$0xff] %v675_v28  ;;  %9063 = vmatprep.mubr.bf16.mxu0 %v1486_v29 }
 0x128   : >> { %v11066_v35 = vadd.f32 %v11022_v17, %v725_v30  ;;  %v726_v36 = vmax.f32 %v700_v32, %v716_v33  ;;  %1045 = vst [vmem:[#allocation2 + $0x40] sm:$0xff] %v1033_v47  ;;  %v8997_v37 = vpop.f32.mrb[24].mxu0  ;;  %v10309_v32 = vld [vmem:[%s12564_s3 + $0x8] sm:$0xff]  }
 0x129   : >> { %v930_v42 = vpop.f32.mrb[25].mxu0 }
 0x12a   : >> { %v748_v38 = vmax.f32 %v11066_v35, 0.0  ;;  %v741_v39 = vadd.f32 %v11022_v17, %v726_v36  ;;  %v8998_v43 = vpop.f32.mrb[26].mxu0  ;;  %v10328_v35 = vld [vmem:[%s12564_s3 + $0x330] sm:$0xff]  }
 0x12b   : >> { %v1025_v19 = vmax.f32 %v930_v42, %v8998_v43  ;;  %v933_v24 = vpop.f32.mrb[27].mxu0 }
 0x12c   : >> { %756 = vst [vmem:[#allocation3 + $0x20] sm:$0xff] %v748_v38  ;;  %v749_v16 = vmax.f32 %v741_v39, 0.0  ;;  %v704_v45 = vld [vmem:[#allocation2 + $0x58] ss:$2 sm:$0xf] }
 0x12d   : >> { %v1053_v40 = vld [vmem:[#allocation2 + $0x30] ss:$2 sm:$0xff]  ;;  %v1061_v44 = vld [vmem:[#allocation2 + $0x31] ss:$2 sm:$0xff]  ;;  %1037 = vst [vmem:[#allocation2] sm:$0xff] %v1025_v19 }
 0x12e   : >> { %757 = vst [vmem:[#allocation3 + $0x28] sm:$0xf] %v749_v16  ;;  %v720_v46 = vld [vmem:[#allocation2 + $0x59] ss:$2 sm:$0xf]  ;;  %v1069_v48 = vmax.f32 %v1053_v40, %v1061_v44 }
 0x12f   : >> { %v1054_v47 = vld [vmem:[#allocation2 + $0x40] ss:$2 sm:$0xf]  ;;  %v1062_v49 = vld [vmem:[#allocation2 + $0x41] ss:$2 sm:$0xf]  ;;  %v728_v50 = vmax.f32 %v704_v45, %v720_v46 }
 0x130   : >> { %1048 = vst [vmem:[#allocation2 + $0x58] sm:$0xff] %v1036_v4  ;;  %v702_v51 = vld [vmem:[#allocation2 + $0x48] ss:$2 sm:$0xff]  ;;  %v718_v52 = vld [vmem:[#allocation2 + $0x49] ss:$2 sm:$0xff]  ;;  %v1070_v53 = vmax.f32 %v1054_v47, %v1062_v49  ;;  %v1084_v57 = vadd.f32 %v11022_v17, %v1069_v48  ;;  %v9001_v62 = vpop.f32.mrb[28].mxu0 }
 0x131   : >> { %v727_v58 = vmax.f32 %v702_v51, %v718_v52  ;;  %1047 = vst [vmem:[#allocation2 + $0x50] sm:$0xff] %v1035_v60  ;;  %v743_v61 = vadd.f32 %v11022_v17, %v728_v50  ;;  %1046 = vst [vmem:[#allocation2 + $0x48] sm:$0xff] %v1034_v7  ;;  %v1028_v3 = vmax.f32 %v9001_v62, %v11013_v10  ;;  %v946_v4 = vpop.f32.mrb[29].mxu0  ;;  %v10311_v50 = vld [vmem:[%s12564_s3 + $0x10] sm:$0xff]  }
 0x132   : >> { %v1085_v63 = vadd.f32 %v11022_v17, %v1070_v53  ;;  %v11078_v1 = vmax.f32 %v1084_v57, 0.0  ;;  %v1026_v8 = vmax.f32 %v933_v24, %v946_v4  ;;  %v9002_v9 = vpop.f32.mrb[30].mxu0 }
 0x133   : >> { %v11082_v5 = vadd.f32 %v11022_v17, %v727_v58  ;;  %v751_v6 = vmax.f32 %v743_v61, 0.0  ;;  %1040 = vst [vmem:[#allocation2 + $0x18] sm:$0xff] %v1028_v3  ;;  %v1029_v56 = vmax.f32 %v9002_v9, %v11011_v2  ;;  %v949_v60 = vpop.f32.mrb[31].mxu0  ;;  %v10313_v61 = vld [vmem:[%s12564_s3 + $0x18] sm:$0xff]  }
 0x134   : >> { %v1093_v11 = vmax.f32 %v1085_v63, 0.0  ;;  %1101 = vst [vmem:[#allocation3 + $0x60] sm:$0xff] %v11078_v1  ;;  %1038 = vst [vmem:[#allocation2 + $0x8] sm:$0xff] %v1026_v8  ;;  %v1027_v7 = vmax.f32 %v8997_v37, %v949_v60 }
 0x135   : >> { %v750_v41 = vmax.f32 %v11082_v5, 0.0  ;;  %759 = vst [vmem:[#allocation3 + $0x38] sm:$0xf] %v751_v6  ;;  %1041 = vst [vmem:[#allocation2 + $0x20] sm:$0xff] %v1029_v56  ;;  %v1480_v26 = vld [vmem:[#allocation3 + $0x21] sm:$0xff]  ;;  %v10327_v5 = vld [vmem:[%s12564_s3 + $0x90] sm:$0xff]  }
 0x136   : >> { %1102 = vst [vmem:[#allocation3 + $0x68] sm:$0xf] %v1093_v11  ;;  %1039 = vst [vmem:[#allocation2 + $0x10] sm:$0xff] %v1027_v7 }
 0x137   : >> { %v1056_v10 = vld [vmem:[#allocation2 + $0x58] ss:$2 sm:$0xf]  ;;  %v1064_v12 = vld [vmem:[#allocation2 + $0x59] ss:$2 sm:$0xf] }
 0x138   : >> { %758 = vst [vmem:[#allocation3 + $0x30] sm:$0xff] %v750_v41  ;;  %v1072_v13 = vmax.f32 %v1056_v10, %v1064_v12  ;;  %v1055_v14 = vld [vmem:[#allocation2 + $0x48] ss:$2 sm:$0xff]  ;;  %v1063_v15 = vld [vmem:[#allocation2 + $0x49] ss:$2 sm:$0xff]  ;;  %v9025_v21 = vpop.f32.mrb[32].mxu0 }
 0x139   : >> { %v1071_v18 = vmax.f32 %v1055_v14, %v1063_v15  ;;  %v1275_v2 = vpop.f32.mrb[33].mxu0 }
 0x13a   : >> { %v1087_v20 = vadd.f32 %v11022_v17, %v1072_v13  ;;  %v9026_v25 = vpop.f32.mrb[34].mxu0 }
 0x13b   : >> { %v1086_v22 = vadd.f32 %v11022_v17, %v1071_v18  ;;  %v1049_v27 = vld [vmem:[#allocation2] ss:$2 sm:$0xff]  ;;  %v1057_v28 = vld [vmem:[#allocation2 + $0x1] ss:$2 sm:$0xff]  ;;  %v1370_v29 = vmax.f32 %v1275_v2, %v9026_v25  ;;  %v1278_v30 = vpop.f32.mrb[35].mxu0 }
 0x13c   : >> { %v1095_v23 = vmax.f32 %v1087_v20, 0.0  ;;  %v1065_v36 = vmax.f32 %v1049_v27, %v1057_v28  ;;  %v1051_v39 = vld [vmem:[#allocation2 + $0x18] ss:$2 sm:$0xff]  ;;  %v1059_v42 = vld [vmem:[#allocation2 + $0x19] ss:$2 sm:$0xff] }
 0x13d   : >> { %v11094_v33 = vmax.f32 %v1086_v22, 0.0  ;;  %1382 = vst [vmem:[#allocation2] sm:$0xff] %v1370_v29  ;;  %v1050_v16 = vld [vmem:[#allocation2 + $0x10] ss:$2 sm:$0xf]  ;;  %v1067_v24 = vmax.f32 %v1051_v39, %v1059_v42  ;;  %v11117_v62 = vld [vmem:[#allocation3 + $0x60] sm:$0xff] }
 0x13e   : >> { %1104 = vst [vmem:[#allocation3 + $0x78] sm:$0xf] %v1095_v23  ;;  %v1058_v19 = vld [vmem:[#allocation2 + $0x11] ss:$2 sm:$0xf]  ;;  %v11098_v40 = vadd.f32 %v11022_v17, %v1065_v36  ;;  %v11121_v3 = vld [vmem:[#allocation3 + $0x62] sm:$0xff] }
 0x13f   : >> { %v1481_v37 = vld [vmem:[#allocation3 + $0x31] sm:$0xff]  ;;  %1103 = vst [vmem:[#allocation3 + $0x70] sm:$0xff] %v11094_v33  ;;  %v1066_v44 = vmax.f32 %v1050_v16, %v1058_v19  ;;  %v11101_v45 = vadd.f32 %v11022_v17, %v1067_v24  ;;  %v11125_v6 = vld [vmem:[#allocation3 + $0x63] sm:$0xff] }
 0x140   : >> { %v1487_v43 = vpack.c.bf16 %v1481_v37, %v1480_v26  ;;  %v1088_v46 = vmax.f32 %v11098_v40, 0.0  ;;  %v9029_v48 = vpop.f32.mrb[36].mxu0  ;;  %v1484_v11 = vld [vmem:[#allocation3 + $0x61] sm:$0xff] }
 0x141   : >> { %v1081_v47 = vadd.f32 %v11022_v17, %v1066_v44  ;;  %v1291_v49 = vpop.f32.mrb[37].mxu0  ;;  %v1090_v51 = vmax.f32 %v11101_v45, 0.0  ;;  %v11135_v12 = vld [vmem:[#allocation3 + $0x64] sm:$0xff]  ;;  %v10319_v44 = vld [vmem:[%s12564_s3 + $0x30] sm:$0xff]  }
 0x142   : >> { %9064 = vmatmul.mubr.bf16.vlgmr.msra.gmra.mrb[56].mxu0 %v1487_v43  ;;  %9327 = vmatprep.mubr.bf16.mxu1 %v1487_v43  ;;  %1097 = vst [vmem:[#allocation3 + $0x40] sm:$0xff] %v1088_v46  ;;  %v1371_v52 = vmax.f32 %v1278_v30, %v1291_v49  ;;  %v9030_v53 = vpop.f32.mrb[38].mxu0  ;;  %v10315_v18 = vld [vmem:[%s12564_s3 + $0x20] sm:$0xff]   ;;  %v10318_v36 = vld [vmem:[%s12564_s3 + $0x308] sm:$0xff]   ;;  %v1458_v43 = vpack.c.bf16 %v746_v0, %v744_v34 }
 0x143   : >> { %9072 = vmatpush3.bf16.msra.mxu0 %v10990_v54  ;;  %v1089_v57 = vmax.f32 %v1081_v47, 0.0  ;;  %v1294_v58 = vpop.f32.mrb[39].mxu0  ;;  %1099 = vst [vmem:[#allocation3 + $0x50] sm:$0xff] %v1090_v51 }
 0x144   : >> { %9073 = vmatprep.subr.bf16.mxu0 %v10309_v32  ;;  %1383 = vst [vmem:[#allocation2 + $0x8] sm:$0xff] %v1371_v52  ;;  %v1372_v54 = vmax.f32 %v9025_v21, %v1294_v58 }
 0x145   : >> { %1098 = vst [vmem:[#allocation3 + $0x48] sm:$0xf] %v1089_v57 }
 0x146   : >> { %v11119_v63 = vld [vmem:[#allocation3 + $0x70] sm:$0xff]  ;;  %1384 = vst [vmem:[#allocation2 + $0x10] sm:$0xff] %v1372_v54 }
 0x147   : >> { %9074 = vmatpush3.bf16.msra.mxu0 %v10309_v32  ;;  %v11123_v4 = vld [vmem:[#allocation3 + $0x72] sm:$0xff]  ;;  %v4445_v9 = vpack.c.bf16 %v11119_v63, %v11117_v62  ;;  %v10317_v32 = vld [vmem:[%s12564_s3 + $0x28] sm:$0xff]  }
 0x148   : >> { %9075 = vmatprep.subr.bf16.mxu0 %v10311_v50  ;;  %v11127_v8 = vld [vmem:[#allocation3 + $0x73] sm:$0xff]  ;;  %v4745_v56 = vpack.c.bf16 %v11123_v4, %v11121_v3  ;;  %v9033_v7 = vpop.f32.mrb[40].mxu0  ;;  %v10483_v4 = vld [vmem:[%s12564_s3 + $0x5e0] sm:$0xff]  }
 0x149   : >> { %v4895_v60 = vpack.c.bf16 %v11127_v8, %v11125_v6  ;;  %v1485_v10 = vld [vmem:[#allocation3 + $0x71] sm:$0xff]  ;;  %v1374_v14 = vmax.f32 %v9030_v53, %v9033_v7  ;;  %v1307_v15 = vpop.f32.mrb[41].mxu0  ;;  %v10491_v8 = vld [vmem:[%s12564_s3 + $0x620] sm:$0xff]  }
 0x14a   : >> { %v11137_v13 = vld [vmem:[#allocation3 + $0x74] sm:$0xff]  ;;  %v9034_v21 = vpop.f32.mrb[42].mxu0  ;;  %v1489_v26 = vpack.c.bf16 %v1485_v10, %v1484_v11 }
 0x14b   : >> { %9076 = vmatpush3.bf16.msra.mxu0 %v10311_v50  ;;  %v5045_v20 = vpack.c.bf16 %v11137_v13, %v11135_v12  ;;  %v1483_v2 = vld [vmem:[#allocation3 + $0x51] sm:$0xff]  ;;  %1386 = vst [vmem:[#allocation2 + $0x20] sm:$0xff] %v1374_v14  ;;  %v1375_v22 = vmax.f32 %v1307_v15, %v9034_v21  ;;  %v1310_v23 = vpop.f32.mrb[43].mxu0  ;;  %v1394_v27 = vld [vmem:[#allocation2] ss:$2 sm:$0xff] }
 0x14c   : >> { %9077 = vmatprep.subr.bf16.mxu0 %v10313_v61  ;;  %v1482_v25 = vld [vmem:[#allocation3 + $0x41] sm:$0xff]  ;;  %v1373_v29 = vmax.f32 %v9029_v48, %v1310_v23  ;;  %v11167_v0 = vld [vmem:[#allocation3 + $0x52] sm:$0xff]  ;;  %v8065_v12 = vld [vmem:[%s12565_s4] ss:$0 sm:$0xff] }
 0x14d   : >> { %v1402_v28 = vld [vmem:[#allocation2 + $0x1] ss:$2 sm:$0xff]  ;;  %v1488_v30 = vpack.c.bf16 %v1483_v2, %v1482_v25  ;;  %1387 = vst [vmem:[#allocation2 + $0x28] sm:$0xff] %v1375_v22  ;;  %v1395_v39 = vld [vmem:[#allocation2 + $0x10] ss:$2 sm:$0xf] }
 0x14e   : >> { %v1410_v37 = vmax.f32 %v1394_v27, %v1402_v28  ;;  %v1403_v42 = vld [vmem:[#allocation2 + $0x11] ss:$2 sm:$0xf]  ;;  %1385 = vst [vmem:[#allocation2 + $0x18] sm:$0xff] %v1373_v29  ;;  %v11169_v48 = vld [vmem:[#allocation3 + $0x42] sm:$0xff]  ;;  %v10322_v11 = vld [vmem:[%s12564_s3 + $0x318] sm:$0xff]  }
 0x14f   : >> { %9078 = vmatpush3.bf16.msra.mxu0 %v10313_v61  ;;  %9067 = vmatprep.mubr.bf16.mxu0 %v1488_v30  ;;  %v1411_v16 = vmax.f32 %v1395_v39, %v1403_v42  ;;  %v11171_v47 = vld [vmem:[#allocation3 + $0x53] sm:$0xff]  ;;  %v11176_v53 = vld [vmem:[#allocation3 + $0x43] sm:$0xff]  ;;  %v4744_v2 = vpack.c.bf16 %v11167_v0, %v11169_v48 }
 0x150   : >> { %9079 = vmatprep.subr.bf16.mxu0 %v10315_v18  ;;  %9328 = vmatmul.mubr.bf16.vlgmr.msra.gmra.mrb[16].mxu1 %v1488_v30  ;;  %v1425_v19 = vadd.f32 %v11022_v17, %v1410_v37  ;;  %v11156_v24 = vpop.f32.mrb[44].mxu0  ;;  %v11178_v57 = vld [vmem:[#allocation3 + $0x54] sm:$0xff]  ;;  %v11180_v58 = vld [vmem:[#allocation3 + $0x44] sm:$0xff]  ;;  %v4894_v22 = vpack.c.bf16 %v11171_v47, %v11176_v53 }
 0x151   : >> { %9336 = vmatpush3.bf16.msra.mxu1 %v11008_v59  ;;  %9068 = vmatmul.mubr.bf16.gmra.mrb[60].mxu0 %v1489_v26  ;;  %v1426_v34 = vadd.f32 %v11022_v17, %v1411_v16  ;;  %v1323_v59 = vpop.f32.mrb[45].mxu0  ;;  %v10321_v14 = vld [vmem:[%s12564_s3 + $0x38] sm:$0xff]   ;;  %v5044_v23 = vpack.c.bf16 %v11178_v57, %v11180_v58  ;;  %v10324_v28 = vld [vmem:[%s12564_s3 + $0x320] sm:$0xff]  }
 0x152   : >> { %9087 = vmatprep.mubr.bf16.mxu0 %v1458_v43  ;;  %v11165_v55 = vmax.f32 %v1425_v19, 0.0  ;;  %9337 = vmatprep.subr.bf16.mxu1 %v10318_v36  ;;  %v9038_v49 = vpop.f32.mrb[46].mxu0  ;;  %v1459_v19 = vpack.c.bf16 %v750_v41, %v748_v38  ;;  %v10479_v48 = vld [vmem:[%s12564_s3 + $0x5c0] sm:$0xff]   ;;  %v10482_v3 = vld [vmem:[%s12564_s3 + $0x5d8] sm:$0xff]  }
 0x153   : >> { %9080 = vmatpush3.bf16.msra.mxu0 %v10315_v18  ;;  %9331 = vmatprep.mubr.bf16.mxu1 %v1489_v26  ;;  %v1434_v50 = vmax.f32 %v1426_v34, 0.0  ;;  %v1376_v54 = vmax.f32 %v1323_v59, %v9038_v49  ;;  %v1326_v61 = vpop.f32.mrb[47].mxu0  ;;  %v1734_v34 = vld [vmem:[#allocation3 + $0x12] sm:$0xff]  ;;  %v3235_v49 = vld [vmem:[#allocation3 + $0x22] sm:$0xff] }
 0x154   : >> { %9081 = vmatprep.subr.bf16.mxu0 %v10317_v32  ;;  %1442 = vst [vmem:[#allocation3 + $0x80] sm:$0xff] %v11165_v55  ;;  %v3696_v52 = vpack.c.bf16 %v11165_v55, %v11094_v33  ;;  %v1397_v7 = vld [vmem:[#allocation2 + $0x28] ss:$2 sm:$0xf]  ;;  %v10486_v47 = vld [vmem:[%s12564_s3 + $0x5f8] sm:$0xff]   ;;  %v10487_v53 = vld [vmem:[%s12564_s3 + $0x600] sm:$0xff]  }
 0x155   : >> { %9338 = vmatpush3.bf16.msra.mxu1 %v10318_v36  ;;  %v1405_v10 = vld [vmem:[#allocation2 + $0x29] ss:$2 sm:$0xf]  ;;  %1443 = vst [vmem:[#allocation3 + $0x88] sm:$0xf] %v1434_v50  ;;  %1388 = vst [vmem:[#allocation2 + $0x30] sm:$0xff] %v1376_v54 }
 0x156   : >> { %9339 = vmatprep.subr.bf16.mxu1 %v10320_v31  ;;  %v1396_v15 = vld [vmem:[#allocation2 + $0x18] ss:$2 sm:$0xff]  ;;  %v1404_v18 = vld [vmem:[#allocation2 + $0x19] ss:$2 sm:$0xff]  ;;  %v1413_v21 = vmax.f32 %v1397_v7, %v1405_v10 }
 0x157   : >> { %9082 = vmatpush3.bf16.msra.mxu0 %v10317_v32  ;;  %v1412_v25 = vmax.f32 %v1396_v15, %v1404_v18  ;;  %v10323_v32 = vld [vmem:[%s12564_s3 + $0x80] sm:$0xff]   ;;  %v3236_v50 = vld [vmem:[#allocation3 + $0x32] sm:$0xff] }
 0x158   : >> { %9083 = vmatprep.subr.bf16.mxu0 %v10319_v44  ;;  %v1428_v26 = vadd.f32 %v11022_v17, %v1413_v21  ;;  %v11195_v27 = vpop.f32.mrb[48].mxu0  ;;  %v10329_v54 = vld [vmem:[%s12564_s3 + $0x98] sm:$0xff]   ;;  %v1461_v21 = vpack.c.bf16 %v11094_v33, %v11078_v1 }
 0x159   : >> { %9340 = vmatpush3.bf16.msra.mxu1 %v10320_v31  ;;  %v11201_v29 = vadd.f32 %v11022_v17, %v1412_v25  ;;  %v1339_v30 = vpop.f32.mrb[49].mxu0  ;;  %v10326_v31 = vld [vmem:[%s12564_s3 + $0x328] sm:$0xff]   ;;  %v10330_v10 = vld [vmem:[%s12564_s3 + $0x338] sm:$0xff]  }
 0x15a   : >> { %9341 = vmatprep.subr.bf16.mxu1 %v10322_v11  ;;  %v1436_v36 = vmax.f32 %v1428_v26, 0.0  ;;  %v1377_v37 = vmax.f32 %v1326_v61, %v1339_v30  ;;  %v9042_v39 = vpop.f32.mrb[50].mxu0  ;;  %v10386_v33 = vld [vmem:[%s12564_s3 + $0x418] sm:$0xff]  }
 0x15b   : >> { %9084 = vmatpush3.bf16.msra.mxu0 %v10319_v44  ;;  %v1435_v42 = vmax.f32 %v11201_v29, 0.0  ;;  %v1342_v43 = vpop.f32.mrb[51].mxu0  ;;  %v10325_v44 = vld [vmem:[%s12564_s3 + $0x88] sm:$0xff]   ;;  %v10490_v6 = vld [vmem:[%s12564_s3 + $0x618] sm:$0xff]  }
 0x15c   : >> { %9085 = vmatprep.subr.bf16.mxu0 %v10321_v14  ;;  %1445 = vst [vmem:[#allocation3 + $0x98] sm:$0xf] %v1436_v36  ;;  %1389 = vst [vmem:[#allocation2 + $0x38] sm:$0xff] %v1377_v37  ;;  %v1378_v16 = vmax.f32 %v11156_v24, %v1342_v43  ;;  %v1460_v24 = vpack.c.bf16 %v1090_v51, %v1088_v46  ;;  %v1733_v46 = vld [vmem:[#allocation3 + $0x2] sm:$0xff]  ;;  %v11244_v36 = vpack.c.bf16 %v3236_v50, %v3235_v49  ;;  %v10494_v57 = vld [vmem:[%s12564_s3 + $0x638] sm:$0xff]  }
 0x15d   : >> { %9342 = vmatpush3.bf16.msra.mxu1 %v10322_v11  ;;  %1444 = vst [vmem:[#allocation3 + $0x90] sm:$0xff] %v1435_v42  ;;  %v11230_v51 = vld [vmem:[#allocation3 + $0x81] sm:$0xff] }
 0x15e   : >> { %9343 = vmatprep.subr.bf16.mxu1 %v10324_v28  ;;  %1390 = vst [vmem:[#allocation2 + $0x40] sm:$0xff] %v1378_v16  ;;  %v11239_v18 = vld [vmem:[#allocation3 + $0x82] sm:$0xff] }
 0x15f   : >> { %9086 = vmatpush3.bf16.msra.mxu0 %v10321_v14  ;;  %v11248_v43 = vld [vmem:[#allocation3 + $0x83] sm:$0xff] }
 0x160   : >> { %9095 = vmatprep.subr.bf16.mxu0 %v10323_v32  ;;  %v9045_v38 = vpop.f32.mrb[52].mxu0 }
 0x161   : >> { %9344 = vmatpush3.bf16.msra.mxu1 %v10324_v28  ;;  %v1380_v41 = vmax.f32 %v9042_v39, %v9045_v38  ;;  %v1355_v40 = vpop.f32.mrb[53].mxu0  ;;  %v10332_v38 = vld [vmem:[%s12564_s3 + $0x340] sm:$0xff]  }
 0x162   : >> { %9088 = vmatmul.mubr.bf16.vlgmr.msra.gmra.mrb[56].mxu0 %v1459_v19  ;;  %9345 = vmatprep.subr.bf16.mxu1 %v10326_v31  ;;  %v9046_v45 = vpop.f32.mrb[54].mxu0 }
 0x163   : >> { %9091 = vmatprep.mubr.bf16.mxu0 %v1460_v24  ;;  %9096 = vmatpush3.bf16.msra.mxu0 %v10323_v32  ;;  %1392 = vst [vmem:[#allocation2 + $0x50] sm:$0xff] %v1380_v41  ;;  %v1381_v61 = vmax.f32 %v1355_v40, %v9046_v45  ;;  %v1358_v11 = vpop.f32.mrb[55].mxu0  ;;  %v1398_v14 = vld [vmem:[#allocation2 + $0x30] ss:$2 sm:$0xff]  ;;  %v1406_v15 = vld [vmem:[#allocation2 + $0x31] ss:$2 sm:$0xff]  ;;  %v1741_v32 = vpack.c.bf16 %v1734_v34, %v1733_v46 }
 0x164   : >> { %9097 = vmatprep.subr.bf16.mxu0 %v10325_v44  ;;  %v3092_v59 = vld [vmem:[#allocation3 + $0x91] sm:$0xff]  ;;  %v1379_v25 = vmax.f32 %v11195_v27, %v1358_v11  ;;  %v1414_v26 = vmax.f32 %v1398_v14, %v1406_v15  ;;  %v11253_v27 = vld [vmem:[#allocation3 + $0x84] sm:$0xff] }
 0x165   : >> { %9346 = vmatpush3.bf16.msra.mxu1 %v10326_v31  ;;  %v3096_v7 = vpack.c.bf16 %v3092_v59, %v11230_v51  ;;  %1393 = vst [vmem:[#allocation2 + $0x58] sm:$0xff] %v1381_v61  ;;  %v1399_v28 = vld [vmem:[#allocation2 + $0x40] ss:$2 sm:$0xf]  ;;  %v11246_v39 = vld [vmem:[#allocation3 + $0x92] sm:$0xff]  ;;  %v10334_v11 = vld [vmem:[%s12564_s3 + $0x348] sm:$0xff]  }
 0x166   : >> { %9347 = vmatprep.subr.bf16.mxu1 %v10328_v35  ;;  %v1407_v30 = vld [vmem:[#allocation2 + $0x41] ss:$2 sm:$0xf]  ;;  %v11250_v16 = vld [vmem:[#allocation3 + $0x93] sm:$0xff]  ;;  %1391 = vst [vmem:[#allocation2 + $0x48] sm:$0xff] %v1379_v25  ;;  %v1429_v19 = vadd.f32 %v11022_v17, %v1414_v26  ;;  %v4746_v31 = vpack.c.bf16 %v11246_v39, %v11239_v18 }
 0x167   : >> { %9098 = vmatpush3.bf16.msra.mxu0 %v10325_v44  ;;  %9332 = vmatmul.mubr.bf16.gmra.mrb[20].mxu1 %v3096_v7  ;;  %v1415_v37 = vmax.f32 %v1399_v28, %v1407_v30  ;;  %v11255_v44 = vld [vmem:[#allocation3 + $0x94] sm:$0xff]  ;;  %v4896_v24 = vpack.c.bf16 %v11250_v16, %v11248_v43  ;;  %v10331_v40 = vld [vmem:[%s12564_s3 + $0xa0] sm:$0xff]  }
 0x168   : >> { %9099 = vmatprep.subr.bf16.mxu0 %v10327_v5  ;;  %v5046_v41 = vpack.c.bf16 %v11255_v44, %v11253_v27  ;;  %9351 = vmatprep.mubr.bf16.mxu1 %v11244_v36  ;;  %v11271_v34 = vld [vmem:[#allocation3 + $0x42] sm:$0xff]  ;;  %v1437_v45 = vmax.f32 %v1429_v19, 0.0  ;;  %v3240_v59 = vld [vmem:[#allocation3 + $0x72] sm:$0xff] }
 0x169   : >> { %9348 = vmatpush3.bf16.msra.mxu1 %v10328_v35  ;;  %v1430_v35 = vadd.f32 %v11022_v17, %v1415_v37  ;;  %v3239_v46 = vld [vmem:[#allocation3 + $0x62] sm:$0xff]  ;;  %v10336_v25 = vld [vmem:[%s12564_s3 + $0x350] sm:$0xff]  }
 0x16a   : >> { %9092 = vmatmul.mubr.bf16.gmra.mrb[60].mxu0 %v1461_v21  ;;  %9349 = vmatprep.subr.bf16.mxu1 %v10330_v10  ;;  %1446 = vst [vmem:[#allocation3 + $0xa0] sm:$0xff] %v1437_v45  ;;  %v11275_v50 = vpack.c.bf16 %v1437_v45, %v1435_v42  ;;  %v11281_v14 = vpack.c.bf16 %v3240_v59, %v3239_v46  ;;  %v10335_v28 = vld [vmem:[%s12564_s3 + $0xb0] sm:$0xff]   ;;  %v10338_v45 = vld [vmem:[%s12564_s3 + $0x358] sm:$0xff]   ;;  %v10340_v59 = vld [vmem:[%s12564_s3 + $0x360] sm:$0xff]  }
 0x16b   : >> { %9100 = vmatpush3.bf16.msra.mxu0 %v10327_v5  ;;  %9111 = vmatprep.mubr.bf16.mxu0 %v1741_v32  ;;  %v3238_v5 = vld [vmem:[#allocation3 + $0x52] sm:$0xff]  ;;  %v1438_v49 = vmax.f32 %v1430_v35, 0.0 }
 0x16c   : >> { %9101 = vmatprep.subr.bf16.mxu0 %v10329_v54  ;;  %v3244_v61 = vpack.c.bf16 %v3238_v5, %v11271_v34  ;;  %v1401_v7 = vld [vmem:[#allocation2 + $0x58] ss:$2 sm:$0xf]  ;;  %v1409_v29 = vld [vmem:[#allocation2 + $0x59] ss:$2 sm:$0xf] }
 0x16d   : >> { %9350 = vmatpush3.bf16.msra.mxu1 %v10330_v10  ;;  %1447 = vst [vmem:[#allocation3 + $0xa8] sm:$0xf] %v1438_v49  ;;  %v10333_v10 = vld [vmem:[%s12564_s3 + $0xa8] sm:$0xff]   ;;  %v1417_v15 = vmax.f32 %v1401_v7, %v1409_v29  ;;  %v3242_v30 = vld [vmem:[#allocation3 + $0x92] sm:$0xff]  ;;  %v10339_v49 = vld [vmem:[%s12564_s3 + $0xc0] sm:$0xff]  }
 0x16e   : >> { %9359 = vmatprep.subr.bf16.mxu1 %v10332_v38  ;;  %v1400_v42 = vld [vmem:[#allocation2 + $0x48] ss:$2 sm:$0xff] }
 0x16f   : >> { %9102 = vmatpush3.bf16.msra.mxu0 %v10329_v54  ;;  %v1408_v54 = vld [vmem:[#allocation2 + $0x49] ss:$2 sm:$0xff]  ;;  %v1432_v26 = vadd.f32 %v11022_v17, %v1417_v15 }
 0x170   : >> { %9103 = vmatprep.subr.bf16.mxu0 %v10331_v40  ;;  %9352 = vmatmul.mubr.bf16.vlgmr.msra.gmra.mrb[16].mxu1 %v3244_v61  ;;  %v1416_v21 = vmax.f32 %v1400_v42, %v1408_v54  ;;  %v3386_v37 = vld [vmem:[#allocation3 + $0x33] sm:$0xff]  ;;  %v3385_v5 = vld [vmem:[#allocation3 + $0x23] sm:$0xff] }
 0x171   : >> { %9360 = vmatpush3.bf16.msra.mxu1 %v10332_v38  ;;  %9355 = vmatprep.mubr.bf16.mxu1 %v11281_v14  ;;  %v1440_v19 = vmax.f32 %v1432_v26, 0.0  ;;  %v3241_v38 = vld [vmem:[#allocation3 + $0x82] sm:$0xff]  ;;  %v11298_v46 = vpack.c.bf16 %v3386_v37, %v3385_v5  ;;  %v10343_v29 = vld [vmem:[%s12564_s3 + $0xd0] sm:$0xff]  }
 0x172   : >> { %9361 = vmatprep.subr.bf16.mxu1 %v10334_v11  ;;  %v1431_v32 = vadd.f32 %v11022_v17, %v1416_v21  ;;  %v10337_v17 = vld [vmem:[%s12564_s3 + $0xb8] sm:$0xff]   ;;  %v10342_v7 = vld [vmem:[%s12564_s3 + $0x368] sm:$0xff]   ;;  %v10348_v21 = vld [vmem:[%s12564_s3 + $0x380] sm:$0xff]  }
 0x173   : >> { %9104 = vmatpush3.bf16.msra.mxu0 %v10331_v40  ;;  %v3246_v40 = vpack.c.bf16 %v3242_v30, %v3241_v38  ;;  %1449 = vst [vmem:[#allocation3 + $0xb8] sm:$0xf] %v1440_v19  ;;  %v1884_v42 = vld [vmem:[#allocation3 + $0x13] sm:$0xff]  ;;  %v1883_v54 = vld [vmem:[#allocation3 + $0x3] sm:$0xff] }
 0x174   : >> { %9105 = vmatprep.subr.bf16.mxu0 %v10333_v10  ;;  %v1439_v35 = vmax.f32 %v1431_v32, 0.0  ;;  %v1891_v15 = vpack.c.bf16 %v1884_v42, %v1883_v54  ;;  %v11336_v26 = vld [vmem:[#allocation3 + $0x43] sm:$0xff]  ;;  %v3390_v32 = vld [vmem:[#allocation3 + $0x73] sm:$0xff] }
 0x175   : >> { %9362 = vmatpush3.bf16.msra.mxu1 %v10334_v11  ;;  %v10341_v11 = vld [vmem:[%s12564_s3 + $0xc8] sm:$0xff]   ;;  %v3392_v5 = vld [vmem:[#allocation3 + $0x93] sm:$0xff]  ;;  %v10355_v42 = vld [vmem:[%s12564_s3 + $0x100] sm:$0xff]  }
 0x176   : >> { %9363 = vmatprep.subr.bf16.mxu1 %v10336_v25  ;;  %1448 = vst [vmem:[#allocation3 + $0xb0] sm:$0xff] %v1439_v35  ;;  %v3389_v30 = vld [vmem:[#allocation3 + $0x63] sm:$0xff]  ;;  %v10352_v35 = vld [vmem:[%s12564_s3 + $0x390] sm:$0xff]  }
 0x177   : >> { %9106 = vmatpush3.bf16.msra.mxu0 %v10333_v10  ;;  %v10344_v10 = vld [vmem:[%s12564_s3 + $0x370] sm:$0xff]   ;;  %v10350_v37 = vld [vmem:[%s12564_s3 + $0x388] sm:$0xff]   ;;  %v3395_v19 = vpack.c.bf16 %v3390_v32, %v3389_v30  ;;  %v10364_v32 = vld [vmem:[%s12564_s3 + $0x3c0] sm:$0xff]  }
 0x178   : >> { %9107 = vmatprep.subr.bf16.mxu0 %v10335_v28  ;;  %9356 = vmatmul.mubr.bf16.gmra.mrb[20].mxu1 %v3246_v40  ;;  %v10349_v38 = vld [vmem:[%s12564_s3 + $0xe8] sm:$0xff]   ;;  %v10351_v40 = vld [vmem:[%s12564_s3 + $0xf0] sm:$0xff]  }
 0x179   : >> { %9364 = vmatpush3.bf16.msra.mxu1 %v10336_v25  ;;  %9375 = vmatprep.mubr.bf16.mxu1 %v11298_v46  ;;  %v10347_v25 = vld [vmem:[%s12564_s3 + $0xe0] sm:$0xff]   ;;  %v10357_v54 = vld [vmem:[%s12564_s3 + $0x108] sm:$0xff]  }
 0x17a   : >> { %9365 = vmatprep.subr.bf16.mxu1 %v10338_v45 }
 0x17b   : >> { %9108 = vmatpush3.bf16.msra.mxu0 %v10335_v28  ;;  %v3388_v28 = vld [vmem:[#allocation3 + $0x53] sm:$0xff] }
 0x17c   : >> { %9109 = vmatprep.subr.bf16.mxu0 %v10337_v17 }
 0x17d   : >> { %9366 = vmatpush3.bf16.msra.mxu1 %v10338_v45  ;;  %v3536_v45 = vld [vmem:[#allocation3 + $0x34] sm:$0xff] }
 0x17e   : >> { %9367 = vmatprep.subr.bf16.mxu1 %v10340_v59  ;;  %v5043_v58 = vld [vmem:[#allocation3 + $0xb4] sm:$0xff] }
 0x17f   : >> { %9110 = vmatpush3.bf16.msra.mxu0 %v10337_v17  ;;  %v3391_v17 = vld [vmem:[#allocation3 + $0x83] sm:$0xff] }
 0x180   : >> { %9119 = vmatprep.subr.bf16.mxu0 %v10339_v49 }
 0x181   : >> { %9368 = vmatpush3.bf16.msra.mxu1 %v10340_v59  ;;  %v3396_v59 = vpack.c.bf16 %v3392_v5, %v3391_v17  ;;  %v10366_v5 = vld [vmem:[%s12564_s3 + $0x3c8] sm:$0xff]  }
 0x182   : >> { %9112 = vmatmul.mubr.bf16.vlgmr.msra.gmra.mrb[56].mxu0 %v11244_v36  ;;  %9369 = vmatprep.subr.bf16.mxu1 %v10342_v7  ;;  %v10345_v36 = vld [vmem:[%s12564_s3 + $0xd8] sm:$0xff]   ;;  %v10365_v17 = vld [vmem:[%s12564_s3 + $0x128] sm:$0xff]  }
 0x183   : >> { %9115 = vmatprep.mubr.bf16.mxu0 %v3244_v61  ;;  %9120 = vmatpush3.bf16.msra.mxu0 %v10339_v49  ;;  %v10346_v61 = vld [vmem:[%s12564_s3 + $0x378] sm:$0xff]   ;;  %v3535_v49 = vld [vmem:[#allocation3 + $0x24] sm:$0xff] }
 0x184   : >> { %9121 = vmatprep.subr.bf16.mxu0 %v10341_v11 }
 0x185   : >> { %9370 = vmatpush3.bf16.msra.mxu1 %v10342_v7  ;;  %v11354_v7 = vpack.c.bf16 %v3536_v45, %v3535_v49  ;;  %v10367_v49 = vld [vmem:[%s12564_s3 + $0x130] sm:$0xff]  }
 0x186   : >> { %9371 = vmatprep.subr.bf16.mxu1 %v10344_v10 }
 0x187   : >> { %9122 = vmatpush3.bf16.msra.mxu0 %v10341_v11  ;;  %v10354_v11 = vld [vmem:[%s12564_s3 + $0x398] sm:$0xff]  }
 0x188   : >> { %9123 = vmatprep.subr.bf16.mxu0 %v10343_v29 }
 0x189   : >> { %9372 = vmatpush3.bf16.msra.mxu1 %v10344_v10  ;;  %v10353_v10 = vld [vmem:[%s12564_s3 + $0xf8] sm:$0xff]  }
 0x18a   : >> { %9116 = vmatmul.mubr.bf16.gmra.mrb[60].mxu0 %v11281_v14  ;;  %9373 = vmatprep.subr.bf16.mxu1 %v10346_v61  ;;  %v3394_v14 = vpack.c.bf16 %v3388_v28, %v11336_v26  ;;  %v10362_v28 = vld [vmem:[%s12564_s3 + $0x3b8] sm:$0xff]  }
 0x18b   : >> { %9124 = vmatpush3.bf16.msra.mxu0 %v10343_v29  ;;  %9135 = vmatprep.mubr.bf16.mxu0 %v1891_v15  ;;  %v10356_v29 = vld [vmem:[%s12564_s3 + $0x3a0] sm:$0xff]   ;;  %v10359_v15 = vld [vmem:[%s12564_s3 + $0x110] sm:$0xff]  }
 0x18c   : >> { %9125 = vmatprep.subr.bf16.mxu0 %v10345_v36 }
 0x18d   : >> { %9374 = vmatpush3.bf16.msra.mxu1 %v10346_v61  ;;  %v10360_v61 = vld [vmem:[%s12564_s3 + $0x3b0] sm:$0xff]  }
 0x18e   : >> { %9383 = vmatprep.subr.bf16.mxu1 %v10348_v21 }
 0x18f   : >> { %9126 = vmatpush3.bf16.msra.mxu0 %v10345_v36  ;;  %v10358_v36 = vld [vmem:[%s12564_s3 + $0x3a8] sm:$0xff]  }
 0x190   : >> { %9127 = vmatprep.subr.bf16.mxu0 %v10347_v25  ;;  %9376 = vmatmul.mubr.bf16.vlgmr.msra.gmra.mrb[16].mxu1 %v3394_v14 }
 0x191   : >> { %9379 = vmatprep.mubr.bf16.mxu1 %v3395_v19  ;;  %9384 = vmatpush3.bf16.msra.mxu1 %v10348_v21  ;;  %v2034_v21 = vld [vmem:[#allocation3 + $0x14] sm:$0xff] }
 0x192   : >> { %9385 = vmatprep.subr.bf16.mxu1 %v10350_v37 }
 0x193   : >> { %9128 = vmatpush3.bf16.msra.mxu0 %v10347_v25  ;;  %v2033_v25 = vld [vmem:[#allocation3 + $0x4] sm:$0xff] }
 0x194   : >> { %9129 = vmatprep.subr.bf16.mxu0 %v10349_v38  ;;  %v2041_v30 = vpack.c.bf16 %v2034_v21, %v2033_v25  ;;  %v10372_v21 = vld [vmem:[%s12564_s3 + $0x3e0] sm:$0xff]  }
 0x195   : >> { %9386 = vmatpush3.bf16.msra.mxu1 %v10350_v37  ;;  %v11391_v37 = vld [vmem:[#allocation3 + $0x44] sm:$0xff] }
 0x196   : >> { %9387 = vmatprep.subr.bf16.mxu1 %v10352_v35  ;;  %v10371_v25 = vld [vmem:[%s12564_s3 + $0x140] sm:$0xff]  }
 0x197   : >> { %9130 = vmatpush3.bf16.msra.mxu0 %v10349_v38  ;;  %v3538_v38 = vld [vmem:[#allocation3 + $0x54] sm:$0xff] }
 0x198   : >> { %9131 = vmatprep.subr.bf16.mxu0 %v10351_v40  ;;  %9380 = vmatmul.mubr.bf16.gmra.mrb[20].mxu1 %v3396_v59  ;;  %v10368_v59 = vld [vmem:[%s12564_s3 + $0x3d0] sm:$0xff]  }
 0x199   : >> { %9388 = vmatpush3.bf16.msra.mxu1 %v10352_v35  ;;  %9399 = vmatprep.mubr.bf16.mxu1 %v11354_v7  ;;  %v3539_v35 = vld [vmem:[#allocation3 + $0x64] sm:$0xff] }
 0x19a   : >> { %9389 = vmatprep.subr.bf16.mxu1 %v10354_v11 }
 0x19b   : >> { %9132 = vmatpush3.bf16.msra.mxu0 %v10351_v40  ;;  %v3540_v40 = vld [vmem:[#allocation3 + $0x74] sm:$0xff] }
 0x19c   : >> { %9133 = vmatprep.subr.bf16.mxu0 %v10353_v10  ;;  %v3545_v45 = vpack.c.bf16 %v3540_v40, %v3539_v35  ;;  %v10378_v35 = vld [vmem:[%s12564_s3 + $0x3f8] sm:$0xff]  }
 0x19d   : >> { %9390 = vmatpush3.bf16.msra.mxu1 %v10354_v11  ;;  %v3542_v11 = vld [vmem:[#allocation3 + $0x94] sm:$0xff] }
 0x19e   : >> { %9391 = vmatprep.subr.bf16.mxu1 %v10356_v29 }
 0x19f   : >> { %9134 = vmatpush3.bf16.msra.mxu0 %v10353_v10  ;;  %v3687_v10 = vld [vmem:[#allocation3 + $0x40] sm:$0xff] }
 0x1a0   : >> { %9143 = vmatprep.subr.bf16.mxu0 %v10355_v42 }
 0x1a1   : >> { %9392 = vmatpush3.bf16.msra.mxu1 %v10356_v29  ;;  %v3541_v29 = vld [vmem:[#allocation3 + $0x84] sm:$0xff] }
 0x1a2   : >> { %9136 = vmatmul.mubr.bf16.vlgmr.msra.gmra.mrb[56].mxu0 %v11298_v46  ;;  %9393 = vmatprep.subr.bf16.mxu1 %v10358_v36  ;;  %v10361_v46 = vld [vmem:[%s12564_s3 + $0x118] sm:$0xff]  }
 0x1a3   : >> { %9139 = vmatprep.mubr.bf16.mxu0 %v3394_v14  ;;  %9144 = vmatpush3.bf16.msra.mxu0 %v10355_v42  ;;  %v10363_v14 = vld [vmem:[%s12564_s3 + $0x120] sm:$0xff]   ;;  %v3546_v42 = vpack.c.bf16 %v3542_v11, %v3541_v29  ;;  %v10383_v11 = vld [vmem:[%s12564_s3 + $0x170] sm:$0xff]  }
 0x1a4   : >> { %9145 = vmatprep.subr.bf16.mxu0 %v10357_v54  ;;  %v3836_v29 = vld [vmem:[#allocation3 + $0x31] sm:$0xff] }
 0x1a5   : >> { %9394 = vmatpush3.bf16.msra.mxu1 %v10358_v36  ;;  %v10370_v36 = vld [vmem:[%s12564_s3 + $0x3d8] sm:$0xff]  }
 0x1a6   : >> { %9395 = vmatprep.subr.bf16.mxu1 %v10360_v61 }
 0x1a7   : >> { %9146 = vmatpush3.bf16.msra.mxu0 %v10357_v54  ;;  %v3686_v54 = vld [vmem:[#allocation3 + $0x30] sm:$0xff] }
 0x1a8   : >> { %9147 = vmatprep.subr.bf16.mxu0 %v10359_v15 }
 0x1a9   : >> { %9396 = vmatpush3.bf16.msra.mxu1 %v10360_v61  ;;  %v11409_v61 = vpack.c.bf16 %v3687_v10, %v3686_v54  ;;  %v3837_v10 = vld [vmem:[#allocation3 + $0x41] sm:$0xff] }
 0x1aa   : >> { %9140 = vmatmul.mubr.bf16.gmra.mrb[60].mxu0 %v3395_v19  ;;  %9397 = vmatprep.subr.bf16.mxu1 %v10362_v28  ;;  %v3544_v19 = vpack.c.bf16 %v3538_v38, %v11391_v37  ;;  %v2184_v38 = vld [vmem:[#allocation3 + $0x10] sm:$0xff]  ;;  %v10388_v54 = vld [vmem:[%s12564_s3 + $0x420] sm:$0xff]  }
 0x1ab   : >> { %9148 = vmatpush3.bf16.msra.mxu0 %v10359_v15  ;;  %9159 = vmatprep.mubr.bf16.mxu0 %v2041_v30  ;;  %v10369_v15 = vld [vmem:[%s12564_s3 + $0x138] sm:$0xff]   ;;  %v10376_v30 = vld [vmem:[%s12564_s3 + $0x3f0] sm:$0xff]  }
 0x1ac   : >> { %9149 = vmatprep.subr.bf16.mxu0 %v10361_v46 }
 0x1ad   : >> { %9398 = vmatpush3.bf16.msra.mxu1 %v10362_v28  ;;  %v10374_v28 = vld [vmem:[%s12564_s3 + $0x3e8] sm:$0xff]  }
 0x1ae   : >> { %9407 = vmatprep.subr.bf16.mxu1 %v10364_v32 }
 0x1af   : >> { %9150 = vmatpush3.bf16.msra.mxu0 %v10361_v46  ;;  %v10373_v46 = vld [vmem:[%s12564_s3 + $0x148] sm:$0xff]  }
 0x1b0   : >> { %9151 = vmatprep.subr.bf16.mxu0 %v10363_v14  ;;  %9400 = vmatmul.mubr.bf16.vlgmr.msra.gmra.mrb[16].mxu1 %v3544_v19 }
 0x1b1   : >> { %9403 = vmatprep.mubr.bf16.mxu1 %v3545_v45  ;;  %9408 = vmatpush3.bf16.msra.mxu1 %v10364_v32  ;;  %v10375_v32 = vld [vmem:[%s12564_s3 + $0x150] sm:$0xff]  }
 0x1b2   : >> { %9409 = vmatprep.subr.bf16.mxu1 %v10366_v5 }
 0x1b3   : >> { %9152 = vmatpush3.bf16.msra.mxu0 %v10363_v14  ;;  %v2185_v14 = vld [vmem:[#allocation3 + $0x20] sm:$0xff] }
 0x1b4   : >> { %9153 = vmatprep.subr.bf16.mxu0 %v10365_v17  ;;  %v2192_v40 = vpack.c.bf16 %v2185_v14, %v2184_v38  ;;  %v10394_v14 = vld [vmem:[%s12564_s3 + $0x438] sm:$0xff]  }
 0x1b5   : >> { %9410 = vmatpush3.bf16.msra.mxu1 %v10366_v5  ;;  %v10379_v5 = vld [vmem:[%s12564_s3 + $0x160] sm:$0xff]  }
 0x1b6   : >> { %9411 = vmatprep.subr.bf16.mxu1 %v10368_v59 }
 0x1b7   : >> { %9154 = vmatpush3.bf16.msra.mxu0 %v10365_v17  ;;  %v11446_v17 = vld [vmem:[#allocation3 + $0x50] sm:$0xff] }
 0x1b8   : >> { %9155 = vmatprep.subr.bf16.mxu0 %v10367_v49  ;;  %9404 = vmatmul.mubr.bf16.gmra.mrb[20].mxu1 %v3546_v42  ;;  %v10385_v42 = vld [vmem:[%s12564_s3 + $0x178] sm:$0xff]  }
 0x1b9   : >> { %9412 = vmatpush3.bf16.msra.mxu1 %v10368_v59  ;;  %9423 = vmatprep.mubr.bf16.mxu1 %v11409_v61  ;;  %v10382_v59 = vld [vmem:[%s12564_s3 + $0x408] sm:$0xff]  }
 0x1ba   : >> { %9413 = vmatprep.subr.bf16.mxu1 %v10370_v36 }
 0x1bb   : >> { %9156 = vmatpush3.bf16.msra.mxu0 %v10367_v49  ;;  %v10381_v49 = vld [vmem:[%s12564_s3 + $0x168] sm:$0xff]  }
 0x1bc   : >> { %9157 = vmatprep.subr.bf16.mxu0 %v10369_v15 }
 0x1bd   : >> { %9414 = vmatpush3.bf16.msra.mxu1 %v10370_v36  ;;  %v10387_v36 = vld [vmem:[%s12564_s3 + $0x180] sm:$0xff]  }
 0x1be   : >> { %9415 = vmatprep.subr.bf16.mxu1 %v10372_v21 }
 0x1bf   : >> { %9158 = vmatpush3.bf16.msra.mxu0 %v10369_v15  ;;  %v10390_v15 = vld [vmem:[%s12564_s3 + $0x428] sm:$0xff]  }
 0x1c0   : >> { %9167 = vmatprep.subr.bf16.mxu0 %v10371_v25 }
 0x1c1   : >> { %9416 = vmatpush3.bf16.msra.mxu1 %v10372_v21  ;;  %v2194_v21 = vpack.c.bf16 %v11117_v62, %v11446_v17 }
 0x1c2   : >> { %9160 = vmatmul.mubr.bf16.vlgmr.msra.gmra.mrb[56].mxu0 %v11354_v7  ;;  %9417 = vmatprep.subr.bf16.mxu1 %v10374_v28  ;;  %v10377_v7 = vld [vmem:[%s12564_s3 + $0x158] sm:$0xff]  }
 0x1c3   : >> { %9163 = vmatprep.mubr.bf16.mxu0 %v3544_v19  ;;  %9168 = vmatpush3.bf16.msra.mxu0 %v10371_v25  ;;  %v10380_v19 = vld [vmem:[%s12564_s3 + $0x400] sm:$0xff]   ;;  %v10392_v25 = vld [vmem:[%s12564_s3 + $0x430] sm:$0xff]  }
 0x1c4   : >> { %9169 = vmatprep.subr.bf16.mxu0 %v10373_v46 }
 0x1c5   : >> { %9418 = vmatpush3.bf16.msra.mxu1 %v10374_v28  ;;  %v2335_v28 = vld [vmem:[#allocation3 + $0x21] sm:$0xff] }
 0x1c6   : >> { %9419 = vmatprep.subr.bf16.mxu1 %v10376_v30 }
 0x1c7   : >> { %9170 = vmatpush3.bf16.msra.mxu0 %v10373_v46  ;;  %v10391_v46 = vld [vmem:[%s12564_s3 + $0x190] sm:$0xff]  }
 0x1c8   : >> { %9171 = vmatprep.subr.bf16.mxu0 %v10375_v32 }
 0x1c9   : >> { %9420 = vmatpush3.bf16.msra.mxu1 %v10376_v30  ;;  %v2334_v30 = vld [vmem:[#allocation3 + $0x11] sm:$0xff] }
 0x1ca   : >> { %9164 = vmatmul.mubr.bf16.gmra.mrb[60].mxu0 %v3545_v45  ;;  %9421 = vmatprep.subr.bf16.mxu1 %v10378_v35  ;;  %v3695_v45 = vpack.c.bf16 %v11078_v1, %v11446_v17  ;;  %v10384_v1 = vld [vmem:[%s12564_s3 + $0x410] sm:$0xff]   ;;  %v2342_v38 = vpack.c.bf16 %v2335_v28, %v2334_v30  ;;  %v11555_v28 = vld [vmem:[#allocation3 + $0x81] sm:$0xff] }
 0x1cb   : >> { %9172 = vmatpush3.bf16.msra.mxu0 %v10375_v32  ;;  %9183 = vmatprep.mubr.bf16.mxu0 %v2192_v40  ;;  %v10393_v32 = vld [vmem:[%s12564_s3 + $0x198] sm:$0xff]   ;;  %v3839_v40 = vld [vmem:[#allocation3 + $0x61] sm:$0xff] }
 0x1cc   : >> { %9173 = vmatprep.subr.bf16.mxu0 %v10377_v7  ;;  %v2484_v30 = vld [vmem:[#allocation3 + $0x12] sm:$0xff] }
 0x1cd   : >> { %9422 = vmatpush3.bf16.msra.mxu1 %v10378_v35  ;;  %v11510_v35 = vld [vmem:[#allocation3 + $0x51] sm:$0xff] }
 0x1ce   : >> { %9431 = vmatprep.subr.bf16.mxu1 %v10380_v19 }
 0x1cf   : >> { %9174 = vmatpush3.bf16.msra.mxu0 %v10377_v7  ;;  %v10396_v7 = vld [vmem:[%s12564_s3 + $0x440] sm:$0xff]  }
 0x1d0   : >> { %9175 = vmatprep.subr.bf16.mxu0 %v10379_v5  ;;  %9424 = vmatmul.mubr.bf16.vlgmr.msra.gmra.mrb[16].mxu1 %v3695_v45  ;;  %v10398_v45 = vld [vmem:[%s12564_s3 + $0x448] sm:$0xff]  }
 0x1d1   : >> { %9427 = vmatprep.mubr.bf16.mxu1 %v3696_v52  ;;  %9432 = vmatpush3.bf16.msra.mxu1 %v10380_v19  ;;  %v11468_v52 = vpack.c.bf16 %v3837_v10, %v3836_v29  ;;  %v3845_v19 = vpack.c.bf16 %v3839_v40, %v11510_v35  ;;  %v3843_v10 = vld [vmem:[#allocation3 + $0xa1] sm:$0xff] }
 0x1d2   : >> { %9433 = vmatprep.subr.bf16.mxu1 %v10382_v59  ;;  %v10495_v40 = vld [vmem:[#allocation3 + $0x62] sm:$0xff] }
 0x1d3   : >> { %9176 = vmatpush3.bf16.msra.mxu0 %v10379_v5  ;;  %v3840_v5 = vld [vmem:[#allocation3 + $0x71] sm:$0xff] }
 0x1d4   : >> { %9177 = vmatprep.subr.bf16.mxu0 %v10381_v49 }
 0x1d5   : >> { %9434 = vmatpush3.bf16.msra.mxu1 %v10382_v59  ;;  %v3846_v59 = vpack.c.bf16 %v11230_v51, %v3840_v5  ;;  %v3842_v51 = vld [vmem:[#allocation3 + $0x91] sm:$0xff] }
 0x1d6   : >> { %9435 = vmatprep.subr.bf16.mxu1 %v10384_v1  ;;  %v3847_v29 = vpack.c.bf16 %v3843_v10, %v3842_v51  ;;  %v11584_v10 = vld [vmem:[#allocation3 + $0xa2] sm:$0xff] }
 0x1d7   : >> { %9178 = vmatpush3.bf16.msra.mxu0 %v10381_v49  ;;  %v10397_v49 = vld [vmem:[%s12564_s3 + $0x1a8] sm:$0xff]   ;;  %v3997_v51 = vpack.c.bf16 %v11584_v10, %v11246_v39  ;;  %v10489_v39 = vld [vmem:[%s12564_s3 + $0x610] sm:$0xff]  }
 0x1d8   : >> { %9179 = vmatprep.subr.bf16.mxu0 %v10383_v11  ;;  %9428 = vmatmul.mubr.bf16.gmra.mrb[20].mxu1 %v11275_v50  ;;  %v10389_v50 = vld [vmem:[%s12564_s3 + $0x188] sm:$0xff]  }
 0x1d9   : >> { %9436 = vmatpush3.bf16.msra.mxu1 %v10384_v1  ;;  %9447 = vmatprep.mubr.bf16.mxu1 %v11468_v52  ;;  %v10400_v1 = vld [vmem:[%s12564_s3 + $0x450] sm:$0xff]  }
 0x1da   : >> { %9437 = vmatprep.subr.bf16.mxu1 %v10386_v33 }
 0x1db   : >> { %9180 = vmatpush3.bf16.msra.mxu0 %v10383_v11  ;;  %v10399_v11 = vld [vmem:[%s12564_s3 + $0x1b0] sm:$0xff]  }
 0x1dc   : >> { %9181 = vmatprep.subr.bf16.mxu0 %v10385_v42 }
 0x1dd   : >> { %9438 = vmatpush3.bf16.msra.mxu1 %v10386_v33  ;;  %v11526_v33 = vld [vmem:[#allocation3 + $0x32] sm:$0xff] }
 0x1de   : >> { %9439 = vmatprep.subr.bf16.mxu1 %v10388_v54 }
 0x1df   : >> { %9182 = vmatpush3.bf16.msra.mxu0 %v10385_v42  ;;  %v10402_v42 = vld [vmem:[%s12564_s3 + $0x458] sm:$0xff]  }
 0x1e0   : >> { %9191 = vmatprep.subr.bf16.mxu0 %v10387_v36 }
 0x1e1   : >> { %9440 = vmatpush3.bf16.msra.mxu1 %v10388_v54  ;;  %v3994_v54 = vpack.c.bf16 %v11271_v34, %v11526_v33  ;;  %v10405_v34 = vld [vmem:[%s12564_s3 + $0x1c8] sm:$0xff]  }
 0x1e2   : >> { %9184 = vmatmul.mubr.bf16.vlgmr.msra.gmra.mrb[56].mxu0 %v11409_v61  ;;  %9441 = vmatprep.subr.bf16.mxu1 %v10390_v15  ;;  %v2195_v61 = vpack.c.bf16 %v11165_v55, %v11119_v63  ;;  %v10395_v55 = vld [vmem:[%s12564_s3 + $0x1a0] sm:$0xff]   ;;  %v10466_v63 = vld [vmem:[%s12564_s3 + $0x558] sm:$0xff]  }
 0x1e3   : >> { %9187 = vmatprep.mubr.bf16.mxu0 %v2194_v21  ;;  %9192 = vmatpush3.bf16.msra.mxu0 %v10387_v36  ;;  %v10401_v36 = vld [vmem:[%s12564_s3 + $0x1b8] sm:$0xff]   ;;  %v10406_v21 = vld [vmem:[%s12564_s3 + $0x468] sm:$0xff]  }
 0x1e4   : >> { %9193 = vmatprep.subr.bf16.mxu0 %v10389_v50 }
 0x1e5   : >> { %9442 = vmatpush3.bf16.msra.mxu1 %v10390_v15  ;;  %v10403_v15 = vld [vmem:[%s12564_s3 + $0x1c0] sm:$0xff]  }
 0x1e6   : >> { %9443 = vmatprep.subr.bf16.mxu1 %v10392_v25 }
 0x1e7   : >> { %9194 = vmatpush3.bf16.msra.mxu0 %v10389_v50  ;;  %v10404_v50 = vld [vmem:[%s12564_s3 + $0x460] sm:$0xff]  }
 0x1e8   : >> { %9195 = vmatprep.subr.bf16.mxu0 %v10391_v46 }
 0x1e9   : >> { %9444 = vmatpush3.bf16.msra.mxu1 %v10392_v25  ;;  %v10408_v25 = vld [vmem:[%s12564_s3 + $0x470] sm:$0xff]  }
 0x1ea   : >> { %9188 = vmatmul.mubr.bf16.gmra.mrb[60].mxu0 %v2195_v61  ;;  %9445 = vmatprep.subr.bf16.mxu1 %v10394_v14  ;;  %v2485_v61 = vld [vmem:[#allocation3 + $0x22] sm:$0xff] }
 0x1eb   : >> { %9196 = vmatpush3.bf16.msra.mxu0 %v10391_v46  ;;  %9207 = vmatprep.mubr.bf16.mxu0 %v2342_v38  ;;  %v10407_v46 = vld [vmem:[%s12564_s3 + $0x1d0] sm:$0xff]   ;;  %v2492_v38 = vpack.c.bf16 %v2485_v61, %v2484_v30  ;;  %v2635_v61 = vld [vmem:[#allocation3 + $0x23] sm:$0xff]  ;;  %v10425_v30 = vld [vmem:[%s12564_s3 + $0x218] sm:$0xff]  }
 0x1ec   : >> { %9197 = vmatprep.subr.bf16.mxu0 %v10393_v32 }
 0x1ed   : >> { %9446 = vmatpush3.bf16.msra.mxu1 %v10394_v14  ;;  %v10410_v14 = vld [vmem:[%s12564_s3 + $0x478] sm:$0xff]  }
 0x1ee   : >> { %9455 = vmatprep.subr.bf16.mxu1 %v10396_v7 }
 0x1ef   : >> { %9198 = vmatpush3.bf16.msra.mxu0 %v10393_v32  ;;  %v10409_v32 = vld [vmem:[%s12564_s3 + $0x1d8] sm:$0xff]  }
 0x1f0   : >> { %9199 = vmatprep.subr.bf16.mxu0 %v10395_v55  ;;  %9448 = vmatmul.mubr.bf16.vlgmr.msra.gmra.mrb[16].mxu1 %v3845_v19 }
 0x1f1   : >> { %9451 = vmatprep.mubr.bf16.mxu1 %v3846_v59  ;;  %9456 = vmatpush3.bf16.msra.mxu1 %v10396_v7  ;;  %v10412_v7 = vld [vmem:[%s12564_s3 + $0x480] sm:$0xff]  }
 0x1f2   : >> { %9457 = vmatprep.subr.bf16.mxu1 %v10398_v45 }
 0x1f3   : >> { %9200 = vmatpush3.bf16.msra.mxu0 %v10395_v55  ;;  %v10411_v55 = vld [vmem:[%s12564_s3 + $0x1e0] sm:$0xff]  }
 0x1f4   : >> { %9201 = vmatprep.subr.bf16.mxu0 %v10397_v49 }
 0x1f5   : >> { %9458 = vmatpush3.bf16.msra.mxu1 %v10398_v45  ;;  %v10496_v45 = vld [vmem:[#allocation3 + $0x72] sm:$0xff] }
 0x1f6   : >> { %9459 = vmatprep.subr.bf16.mxu1 %v10400_v1  ;;  %v3996_v59 = vpack.c.bf16 %v11239_v18, %v10496_v45  ;;  %v10500_v45 = vld [vmem:[#allocation3 + $0x73] sm:$0xff] }
 0x1f7   : >> { %9202 = vmatpush3.bf16.msra.mxu0 %v10397_v49  ;;  %v10413_v49 = vld [vmem:[%s12564_s3 + $0x1e8] sm:$0xff]   ;;  %v10485_v18 = vld [vmem:[%s12564_s3 + $0x5f0] sm:$0xff]  }
 0x1f8   : >> { %9203 = vmatprep.subr.bf16.mxu0 %v10399_v11  ;;  %9452 = vmatmul.mubr.bf16.gmra.mrb[20].mxu1 %v3847_v29  ;;  %v11588_v29 = vld [vmem:[#allocation3 + $0x33] sm:$0xff] }
 0x1f9   : >> { %9460 = vmatpush3.bf16.msra.mxu1 %v10400_v1  ;;  %9471 = vmatprep.mubr.bf16.mxu1 %v3994_v54  ;;  %v10416_v1 = vld [vmem:[%s12564_s3 + $0x490] sm:$0xff]   ;;  %v4144_v54 = vpack.c.bf16 %v11336_v26, %v11588_v29  ;;  %v10497_v26 = vld [vmem:[#allocation3 + $0x42] sm:$0xff] }
 0x1fa   : >> { %9461 = vmatprep.subr.bf16.mxu1 %v10402_v42 }
 0x1fb   : >> { %9204 = vmatpush3.bf16.msra.mxu0 %v10399_v11  ;;  %v10415_v11 = vld [vmem:[%s12564_s3 + $0x1f0] sm:$0xff]  }
 0x1fc   : >> { %9205 = vmatprep.subr.bf16.mxu0 %v10401_v36 }
 0x1fd   : >> { %9462 = vmatpush3.bf16.msra.mxu1 %v10402_v42  ;;  %v10418_v42 = vld [vmem:[%s12564_s3 + $0x498] sm:$0xff]  }
 0x1fe   : >> { %9463 = vmatprep.subr.bf16.mxu1 %v10404_v50 }
 0x1ff   : >> { %9206 = vmatpush3.bf16.msra.mxu0 %v10401_v36  ;;  %v10417_v36 = vld [vmem:[%s12564_s3 + $0x1f8] sm:$0xff]  }
 0x200   : >> { %9215 = vmatprep.subr.bf16.mxu0 %v10403_v15 }
 0x201   : >> { %9464 = vmatpush3.bf16.msra.mxu1 %v10404_v50  ;;  %v10420_v50 = vld [vmem:[%s12564_s3 + $0x4a0] sm:$0xff]  }
 0x202   : >> { %9208 = vmatmul.mubr.bf16.vlgmr.msra.gmra.mrb[56].mxu0 %v11468_v52  ;;  %9465 = vmatprep.subr.bf16.mxu1 %v10406_v21  ;;  %v2345_v52 = vpack.c.bf16 %v11555_v28, %v3840_v5  ;;  %v10414_v5 = vld [vmem:[%s12564_s3 + $0x488] sm:$0xff]  }
 0x203   : >> { %9211 = vmatprep.mubr.bf16.mxu0 %v3845_v19  ;;  %9216 = vmatpush3.bf16.msra.mxu0 %v10403_v15  ;;  %v3995_v19 = vpack.c.bf16 %v10495_v40, %v11167_v0  ;;  %v10419_v15 = vld [vmem:[%s12564_s3 + $0x200] sm:$0xff]   ;;  %v10499_v40 = vld [vmem:[#allocation3 + $0x53] sm:$0xff] }
 0x204   : >> { %9217 = vmatprep.subr.bf16.mxu0 %v10405_v34  ;;  %v10478_v0 = vld [vmem:[%s12564_s3 + $0x5b8] sm:$0xff]  }
 0x205   : >> { %9466 = vmatpush3.bf16.msra.mxu1 %v10406_v21  ;;  %v10421_v21 = vld [vmem:[%s12564_s3 + $0x208] sm:$0xff]  }
 0x206   : >> { %9467 = vmatprep.subr.bf16.mxu1 %v10408_v25 }
 0x207   : >> { %9218 = vmatpush3.bf16.msra.mxu0 %v10405_v34  ;;  %v2493_v34 = vpack.c.bf16 %v10497_v26, %v11526_v33  ;;  %v10423_v33 = vld [vmem:[%s12564_s3 + $0x210] sm:$0xff]   ;;  %v10436_v26 = vld [vmem:[%s12564_s3 + $0x4e0] sm:$0xff]  }
 0x208   : >> { %9219 = vmatprep.subr.bf16.mxu0 %v10407_v46 }
 0x209   : >> { %9468 = vmatpush3.bf16.msra.mxu1 %v10408_v25  ;;  %v10422_v25 = vld [vmem:[%s12564_s3 + $0x4a8] sm:$0xff]  }
 0x20a   : >> { %9212 = vmatmul.mubr.bf16.gmra.mrb[60].mxu0 %v2345_v52  ;;  %9469 = vmatprep.subr.bf16.mxu1 %v10410_v14  ;;  %v2634_v52 = vld [vmem:[#allocation3 + $0x13] sm:$0xff] }
 0x20b   : >> { %9220 = vmatpush3.bf16.msra.mxu0 %v10407_v46  ;;  %9231 = vmatprep.mubr.bf16.mxu0 %v2492_v38  ;;  %v10424_v46 = vld [vmem:[%s12564_s3 + $0x4b0] sm:$0xff]   ;;  %v10428_v38 = vld [vmem:[%s12564_s3 + $0x4c0] sm:$0xff]  }
 0x20c   : >> { %9221 = vmatprep.subr.bf16.mxu0 %v10409_v32 }
 0x20d   : >> { %9470 = vmatpush3.bf16.msra.mxu1 %v10410_v14  ;;  %v2642_v14 = vpack.c.bf16 %v2635_v61, %v2634_v52  ;;  %v2785_v61 = vld [vmem:[#allocation3 + $0x24] sm:$0xff]  ;;  %v2784_v52 = vld [vmem:[#allocation3 + $0x14] sm:$0xff] }
 0x20e   : >> { %9479 = vmatprep.subr.bf16.mxu1 %v10412_v7 }
 0x20f   : >> { %9222 = vmatpush3.bf16.msra.mxu0 %v10409_v32  ;;  %v10426_v32 = vld [vmem:[%s12564_s3 + $0x4b8] sm:$0xff]  }
 0x210   : >> { %9223 = vmatprep.subr.bf16.mxu0 %v10411_v55  ;;  %9472 = vmatmul.mubr.bf16.vlgmr.msra.gmra.mrb[16].mxu1 %v3995_v19 }
 0x211   : >> { %9475 = vmatprep.mubr.bf16.mxu1 %v3996_v59  ;;  %9480 = vmatpush3.bf16.msra.mxu1 %v10412_v7  ;;  %v10427_v7 = vld [vmem:[%s12564_s3 + $0x220] sm:$0xff]  }
 0x212   : >> { %9481 = vmatprep.subr.bf16.mxu1 %v10414_v5 }
 0x213   : >> { %9224 = vmatpush3.bf16.msra.mxu0 %v10411_v55  ;;  %v10498_v55 = vld [vmem:[#allocation3 + $0x63] sm:$0xff] }
 0x214   : >> { %9225 = vmatprep.subr.bf16.mxu0 %v10413_v49 }
 0x215   : >> { %9482 = vmatpush3.bf16.msra.mxu1 %v10414_v5  ;;  %v10430_v5 = vld [vmem:[%s12564_s3 + $0x4c8] sm:$0xff]  }
 0x216   : >> { %9483 = vmatprep.subr.bf16.mxu1 %v10416_v1 }
 0x217   : >> { %9226 = vmatpush3.bf16.msra.mxu0 %v10413_v49  ;;  %v10429_v49 = vld [vmem:[%s12564_s3 + $0x228] sm:$0xff]  }
 0x218   : >> { %9227 = vmatprep.subr.bf16.mxu0 %v10415_v11  ;;  %9476 = vmatmul.mubr.bf16.gmra.mrb[20].mxu1 %v3997_v51  ;;  %v11642_v51 = vld [vmem:[#allocation3 + $0xa3] sm:$0xff] }
 0x219   : >> { %9484 = vmatpush3.bf16.msra.mxu1 %v10416_v1  ;;  %9495 = vmatprep.mubr.bf16.mxu1 %v4144_v54  ;;  %v10432_v1 = vld [vmem:[%s12564_s3 + $0x4d0] sm:$0xff]  }
 0x21a   : >> { %9485 = vmatprep.subr.bf16.mxu1 %v10418_v42  ;;  %v11646_v54 = vld [vmem:[#allocation3 + $0x34] sm:$0xff] }
 0x21b   : >> { %9228 = vmatpush3.bf16.msra.mxu0 %v10415_v11  ;;  %v10431_v11 = vld [vmem:[%s12564_s3 + $0x230] sm:$0xff]  }
 0x21c   : >> { %9229 = vmatprep.subr.bf16.mxu0 %v10417_v36 }
 0x21d   : >> { %9486 = vmatpush3.bf16.msra.mxu1 %v10418_v42  ;;  %v4147_v42 = vpack.c.bf16 %v11642_v51, %v11250_v16 }
 0x21e   : >> { %9487 = vmatprep.subr.bf16.mxu1 %v10420_v50 }
 0x21f   : >> { %9230 = vmatpush3.bf16.msra.mxu0 %v10417_v36  ;;  %v10434_v36 = vld [vmem:[%s12564_s3 + $0x4d8] sm:$0xff]  }
 0x220   : >> { %9239 = vmatprep.subr.bf16.mxu0 %v10419_v15 }
 0x221   : >> { %9488 = vmatpush3.bf16.msra.mxu1 %v10420_v50  ;;  %v4294_v50 = vpack.c.bf16 %v11391_v37, %v11646_v54  ;;  %v10501_v37 = vld [vmem:[#allocation3 + $0x43] sm:$0xff] }
 0x222   : >> { %9232 = vmatmul.mubr.bf16.vlgmr.msra.gmra.mrb[56].mxu0 %v2493_v34  ;;  %9489 = vmatprep.subr.bf16.mxu1 %v10422_v25  ;;  %v10435_v34 = vld [vmem:[%s12564_s3 + $0x240] sm:$0xff]  }
 0x223   : >> { %9235 = vmatprep.mubr.bf16.mxu0 %v3995_v19  ;;  %9240 = vmatpush3.bf16.msra.mxu0 %v10419_v15  ;;  %v4145_v19 = vpack.c.bf16 %v10498_v55, %v10499_v40  ;;  %v10433_v15 = vld [vmem:[%s12564_s3 + $0x238] sm:$0xff]   ;;  %v10502_v55 = vld [vmem:[#allocation3 + $0x64] sm:$0xff] }
 0x224   : >> { %9241 = vmatprep.subr.bf16.mxu0 %v10421_v21  ;;  %v10503_v40 = vld [vmem:[#allocation3 + $0x54] sm:$0xff] }
 0x225   : >> { %9490 = vmatpush3.bf16.msra.mxu1 %v10422_v25  ;;  %v10437_v25 = vld [vmem:[%s12564_s3 + $0x248] sm:$0xff]  }
 0x226   : >> { %9491 = vmatprep.subr.bf16.mxu1 %v10424_v46 }
 0x227   : >> { %9242 = vmatpush3.bf16.msra.mxu0 %v10421_v21  ;;  %v2643_v21 = vpack.c.bf16 %v10501_v37, %v11588_v29  ;;  %v10439_v29 = vld [vmem:[%s12564_s3 + $0x250] sm:$0xff]  }
 0x228   : >> { %9243 = vmatprep.subr.bf16.mxu0 %v10423_v33 }
 0x229   : >> { %9492 = vmatpush3.bf16.msra.mxu1 %v10424_v46  ;;  %v10438_v46 = vld [vmem:[%s12564_s3 + $0x4e8] sm:$0xff]  }
 0x22a   : >> { %9236 = vmatmul.mubr.bf16.gmra.mrb[60].mxu0 %v3996_v59  ;;  %9493 = vmatprep.subr.bf16.mxu1 %v10426_v32  ;;  %v4146_v59 = vpack.c.bf16 %v11248_v43, %v10500_v45  ;;  %v10504_v45 = vld [vmem:[#allocation3 + $0x74] sm:$0xff] }
 0x22b   : >> { %9244 = vmatpush3.bf16.msra.mxu0 %v10423_v33  ;;  %9255 = vmatprep.mubr.bf16.mxu0 %v2642_v14  ;;  %v10440_v33 = vld [vmem:[%s12564_s3 + $0x4f0] sm:$0xff]   ;;  %v2792_v14 = vpack.c.bf16 %v2785_v61, %v2784_v52  ;;  %v10454_v61 = vld [vmem:[%s12564_s3 + $0x528] sm:$0xff]  }
 0x22c   : >> { %9245 = vmatprep.subr.bf16.mxu0 %v10425_v30  ;;  %v10456_v52 = vld [vmem:[%s12564_s3 + $0x530] sm:$0xff]  }
 0x22d   : >> { %9494 = vmatpush3.bf16.msra.mxu1 %v10426_v32  ;;  %v10442_v32 = vld [vmem:[%s12564_s3 + $0x4f8] sm:$0xff]   ;;  %v10493_v43 = vld [vmem:[%s12564_s3 + $0x630] sm:$0xff]  }
 0x22e   : >> { %9503 = vmatprep.subr.bf16.mxu1 %v10428_v38 }
 0x22f   : >> { %9246 = vmatpush3.bf16.msra.mxu0 %v10425_v30  ;;  %v10441_v30 = vld [vmem:[%s12564_s3 + $0x258] sm:$0xff]  }
 0x230   : >> { %9247 = vmatprep.subr.bf16.mxu0 %v10427_v7  ;;  %9496 = vmatmul.mubr.bf16.vlgmr.msra.gmra.mrb[16].mxu1 %v4145_v19 }
 0x231   : >> { %9499 = vmatprep.mubr.bf16.mxu1 %v4146_v59  ;;  %9504 = vmatpush3.bf16.msra.mxu1 %v10428_v38  ;;  %v10444_v38 = vld [vmem:[%s12564_s3 + $0x500] sm:$0xff]  }
 0x232   : >> { %9505 = vmatprep.subr.bf16.mxu1 %v10430_v5 }
 0x233   : >> { %9248 = vmatpush3.bf16.msra.mxu0 %v10427_v7  ;;  %v10443_v7 = vld [vmem:[%s12564_s3 + $0x260] sm:$0xff]  }
 0x234   : >> { %9249 = vmatprep.subr.bf16.mxu0 %v10429_v49 }
 0x235   : >> { %9506 = vmatpush3.bf16.msra.mxu1 %v10430_v5  ;;  %v10446_v5 = vld [vmem:[%s12564_s3 + $0x508] sm:$0xff]  }
 0x236   : >> { %9507 = vmatprep.subr.bf16.mxu1 %v10432_v1 }
 0x237   : >> { %9250 = vmatpush3.bf16.msra.mxu0 %v10429_v49 }
 0x238   : >> { %9251 = vmatprep.subr.bf16.mxu0 %v10431_v11  ;;  %9500 = vmatmul.mubr.bf16.gmra.mrb[20].mxu1 %v4147_v42  ;;  %v10447_v42 = vld [vmem:[%s12564_s3 + $0x270] sm:$0xff]  }
 0x239   : >> { %9508 = vmatpush3.bf16.msra.mxu1 %v10432_v1  ;;  %9519 = vmatprep.mubr.bf16.mxu1 %v4294_v50  ;;  %v10445_v1 = vld [vmem:[%s12564_s3 + $0x268] sm:$0xff]   ;;  %v11701_v50 = vld [vmem:[#allocation3 + $0x40] sm:$0xff] }
 0x23a   : >> { %9509 = vmatprep.subr.bf16.mxu1 %v10434_v36  ;;  %v4444_v37 = vpack.c.bf16 %v11446_v17, %v11701_v50  ;;  %v10507_v17 = vld [vmem:[#allocation3 + $0x44] sm:$0xff] }
 0x23b   : >> { %9252 = vmatpush3.bf16.msra.mxu0 %v10431_v11  ;;  %v10448_v11 = vld [vmem:[%s12564_s3 + $0x510] sm:$0xff]  }
 0x23c   : >> { %9253 = vmatprep.subr.bf16.mxu0 %v10433_v15 }
 0x23d   : >> { %9510 = vmatpush3.bf16.msra.mxu1 %v10434_v36  ;;  %v11699_v36 = vld [vmem:[#allocation3 + $0xa4] sm:$0xff] }
 0x23e   : >> { %9511 = vmatprep.subr.bf16.mxu1 %v10436_v26 }
 0x23f   : >> { %9254 = vmatpush3.bf16.msra.mxu0 %v10433_v15  ;;  %v10506_v15 = vld [vmem:[#allocation3 + $0x94] sm:$0xff] }
 0x240   : >> { %9263 = vmatprep.subr.bf16.mxu0 %v10435_v34 }
 0x241   : >> { %9512 = vmatpush3.bf16.msra.mxu1 %v10436_v26  ;;  %v4297_v26 = vpack.c.bf16 %v11699_v36, %v10506_v15  ;;  %v4586_v15 = vld [vmem:[#allocation3 + $0x41] sm:$0xff] }
 0x242   : >> { %9256 = vmatmul.mubr.bf16.vlgmr.msra.gmra.mrb[56].mxu0 %v2643_v21  ;;  %9513 = vmatprep.subr.bf16.mxu1 %v10438_v46  ;;  %v10449_v21 = vld [vmem:[%s12564_s3 + $0x278] sm:$0xff]  }
 0x243   : >> { %9259 = vmatprep.mubr.bf16.mxu0 %v4145_v19  ;;  %9264 = vmatpush3.bf16.msra.mxu0 %v10435_v34  ;;  %v4295_v19 = vpack.c.bf16 %v10502_v55, %v10503_v40  ;;  %v10450_v34 = vld [vmem:[%s12564_s3 + $0x518] sm:$0xff]   ;;  %v10460_v55 = vld [vmem:[%s12564_s3 + $0x540] sm:$0xff]  }
 0x244   : >> { %9265 = vmatprep.subr.bf16.mxu0 %v10437_v25  ;;  %v10459_v40 = vld [vmem:[%s12564_s3 + $0x2a0] sm:$0xff]  }
 0x245   : >> { %9514 = vmatpush3.bf16.msra.mxu1 %v10438_v46  ;;  %v10451_v46 = vld [vmem:[%s12564_s3 + $0x280] sm:$0xff]  }
 0x246   : >> { %9515 = vmatprep.subr.bf16.mxu1 %v10440_v33 }
 0x247   : >> { %9266 = vmatpush3.bf16.msra.mxu0 %v10437_v25  ;;  %v10452_v25 = vld [vmem:[%s12564_s3 + $0x520] sm:$0xff]  }
 0x248   : >> { %9267 = vmatprep.subr.bf16.mxu0 %v10439_v29 }
 0x249   : >> { %9516 = vmatpush3.bf16.msra.mxu1 %v10440_v33  ;;  %v2793_v33 = vpack.c.bf16 %v10507_v17, %v11646_v54  ;;  %v10455_v54 = vld [vmem:[%s12564_s3 + $0x290] sm:$0xff]  }
 0x24a   : >> { %9260 = vmatmul.mubr.bf16.gmra.mrb[60].mxu0 %v4146_v59  ;;  %9517 = vmatprep.subr.bf16.mxu1 %v10442_v32  ;;  %v10505_v59 = vld [vmem:[#allocation3 + $0x84] sm:$0xff] }
 0x24b   : >> { %9268 = vmatpush3.bf16.msra.mxu0 %v10439_v29  ;;  %9279 = vmatprep.mubr.bf16.mxu0 %v2792_v14  ;;  %v4296_v49 = vpack.c.bf16 %v10505_v59, %v10504_v45  ;;  %v10453_v29 = vld [vmem:[%s12564_s3 + $0x288] sm:$0xff]   ;;  %v10457_v14 = vld [vmem:[%s12564_s3 + $0x298] sm:$0xff]  }
 0x24c   : >> { %9269 = vmatprep.subr.bf16.mxu0 %v10441_v30  ;;  %v10462_v45 = vld [vmem:[%s12564_s3 + $0x548] sm:$0xff]  }
 0x24d   : >> { %9518 = vmatpush3.bf16.msra.mxu1 %v10442_v32  ;;  %v2935_v32 = vld [vmem:[#allocation3 + $0x20] sm:$0xff] }
 0x24e   : >> { %9527 = vmatprep.subr.bf16.mxu1 %v10444_v38 }
 0x24f   : >> { %9270 = vmatpush3.bf16.msra.mxu0 %v10441_v30  ;;  %v2936_v30 = vld [vmem:[#allocation3 + $0x30] sm:$0xff] }
 0x250   : >> { %9271 = vmatprep.subr.bf16.mxu0 %v10443_v7  ;;  %9520 = vmatmul.mubr.bf16.vlgmr.msra.gmra.mrb[16].mxu1 %v4295_v19 }
 0x251   : >> { %9523 = vmatprep.mubr.bf16.mxu1 %v4296_v49  ;;  %9528 = vmatpush3.bf16.msra.mxu1 %v10444_v38  ;;  %v10458_v38 = vld [vmem:[%s12564_s3 + $0x538] sm:$0xff]  }
 0x252   : >> { %9529 = vmatprep.subr.bf16.mxu1 %v10446_v5 }
 0x253   : >> { %9272 = vmatpush3.bf16.msra.mxu0 %v10443_v7  ;;  %v2943_v7 = vpack.c.bf16 %v2936_v30, %v2935_v32  ;;  %v4591_v30 = vld [vmem:[#allocation3 + $0x91] sm:$0xff] }
 0x254   : >> { %9273 = vmatprep.subr.bf16.mxu0 %v10445_v1 }
 0x255   : >> { %9530 = vmatpush3.bf16.msra.mxu1 %v10446_v5  ;;  %v4440_v5 = vld [vmem:[#allocation3 + $0x80] sm:$0xff] }
 0x256   : >> { %9531 = vmatprep.subr.bf16.mxu1 %v10448_v11 }
 0x257   : >> { %9274 = vmatpush3.bf16.msra.mxu0 %v10445_v1  ;;  %v10464_v1 = vld [vmem:[%s12564_s3 + $0x550] sm:$0xff]  }
 0x258   : >> { %9275 = vmatprep.subr.bf16.mxu0 %v10447_v42  ;;  %9524 = vmatmul.mubr.bf16.gmra.mrb[20].mxu1 %v4297_v26  ;;  %v10508_v26 = vld [vmem:[#allocation3 + $0xb0] sm:$0xff] }
 0x259   : >> { %9532 = vmatpush3.bf16.msra.mxu1 %v10448_v11  ;;  %9543 = vmatprep.mubr.bf16.mxu1 %v4444_v37  ;;  %v10463_v11 = vld [vmem:[%s12564_s3 + $0x2b0] sm:$0xff]   ;;  %v10467_v37 = vld [vmem:[%s12564_s3 + $0x560] sm:$0xff]  }
 0x25a   : >> { %9533 = vmatprep.subr.bf16.mxu1 %v10450_v34 }
 0x25b   : >> { %9276 = vmatpush3.bf16.msra.mxu0 %v10447_v42  ;;  %v4442_v42 = vld [vmem:[#allocation3 + $0xa0] sm:$0xff] }
 0x25c   : >> { %9277 = vmatprep.subr.bf16.mxu0 %v10449_v21  ;;  %v4447_v62 = vpack.c.bf16 %v10508_v26, %v4442_v42 }
 0x25d   : >> { %9534 = vmatpush3.bf16.msra.mxu1 %v10450_v34  ;;  %v10465_v34 = vld [vmem:[%s12564_s3 + $0x2b8] sm:$0xff]  }
 0x25e   : >> { %9535 = vmatprep.subr.bf16.mxu1 %v10452_v25 }
 0x25f   : >> { %9278 = vmatpush3.bf16.msra.mxu0 %v10449_v21  ;;  %v2938_v21 = vld [vmem:[#allocation3 + $0x50] sm:$0xff] }
 0x260   : >> { %9287 = vmatprep.subr.bf16.mxu0 %v10451_v46  ;;  %v2944_v17 = vpack.c.bf16 %v2938_v21, %v11701_v50  ;;  %v10471_v50 = vld [vmem:[%s12564_s3 + $0x580] sm:$0xff]  }
 0x261   : >> { %9536 = vmatpush3.bf16.msra.mxu1 %v10452_v25  ;;  %v2939_v25 = vld [vmem:[#allocation3 + $0x60] sm:$0xff] }
 0x262   : >> { %9280 = vmatmul.mubr.bf16.vlgmr.msra.gmra.mrb[56].mxu0 %v2793_v33  ;;  %9537 = vmatprep.subr.bf16.mxu1 %v10454_v61 }
 0x263   : >> { %9283 = vmatprep.mubr.bf16.mxu0 %v4295_v19  ;;  %9288 = vmatpush3.bf16.msra.mxu0 %v10451_v46  ;;  %v4441_v19 = vld [vmem:[#allocation3 + $0x90] sm:$0xff] }
 0x264   : >> { %9289 = vmatprep.subr.bf16.mxu0 %v10453_v29  ;;  %v4446_v59 = vpack.c.bf16 %v4441_v19, %v4440_v5  ;;  %v2940_v46 = vld [vmem:[#allocation3 + $0x70] sm:$0xff]  ;;  %v10474_v5 = vld [vmem:[%s12564_s3 + $0x598] sm:$0xff]  }
 0x265   : >> { %9538 = vmatpush3.bf16.msra.mxu1 %v10454_v61  ;;  %v2945_v33 = vpack.c.bf16 %v2940_v46, %v2939_v25  ;;  %v10470_v61 = vld [vmem:[%s12564_s3 + $0x578] sm:$0xff]  }
 0x266   : >> { %9539 = vmatprep.subr.bf16.mxu1 %v10456_v52 }
 0x267   : >> { %9290 = vmatpush3.bf16.msra.mxu0 %v10453_v29  ;;  %v10469_v29 = vld [vmem:[%s12564_s3 + $0x570] sm:$0xff]  }
 0x268   : >> { %9291 = vmatprep.subr.bf16.mxu0 %v10455_v54 }
 0x269   : >> { %9540 = vmatpush3.bf16.msra.mxu1 %v10456_v52  ;;  %v4588_v52 = vld [vmem:[#allocation3 + $0x61] sm:$0xff] }
 0x26a   : >> { %9284 = vmatmul.mubr.bf16.gmra.mrb[60].mxu0 %v4296_v49  ;;  %9541 = vmatprep.subr.bf16.mxu1 %v10458_v38  ;;  %v10461_v49 = vld [vmem:[%s12564_s3 + $0x2a8] sm:$0xff]  }
 0x26b   : >> { %9292 = vmatpush3.bf16.msra.mxu0 %v10455_v54  ;;  %9303 = vmatprep.mubr.bf16.mxu0 %v2943_v7  ;;  %v4589_v54 = vld [vmem:[#allocation3 + $0x71] sm:$0xff] }
 0x26c   : >> { %9293 = vmatprep.subr.bf16.mxu0 %v10457_v14  ;;  %v4595_v32 = vpack.c.bf16 %v4589_v54, %v4588_v52  ;;  %v10473_v7 = vld [vmem:[%s12564_s3 + $0x590] sm:$0xff]  }
 0x26d   : >> { %9542 = vmatpush3.bf16.msra.mxu1 %v10458_v38  ;;  %v4596_v38 = vpack.c.bf16 %v4591_v30, %v11555_v28  ;;  %v10475_v28 = vld [vmem:[%s12564_s3 + $0x5a0] sm:$0xff]  }
 0x26e   : >> { %9551 = vmatprep.subr.bf16.mxu1 %v10460_v55 }
 0x26f   : >> { %9294 = vmatpush3.bf16.msra.mxu0 %v10457_v14  ;;  %v10472_v14 = vld [vmem:[%s12564_s3 + $0x588] sm:$0xff]  }
 0x270   : >> { %9295 = vmatprep.subr.bf16.mxu0 %v10459_v40  ;;  %9544 = vmatmul.mubr.bf16.vlgmr.msra.gmra.mrb[16].mxu1 %v4445_v9  ;;  %v4594_v9 = vpack.c.bf16 %v11510_v35, %v4586_v15  ;;  %v10468_v35 = vld [vmem:[%s12564_s3 + $0x568] sm:$0xff]  }
 0x271   : >> { %9547 = vmatprep.mubr.bf16.mxu1 %v4446_v59  ;;  %9552 = vmatpush3.bf16.msra.mxu1 %v10460_v55  ;;  %v4592_v55 = vld [vmem:[#allocation3 + $0xa1] sm:$0xff] }
 0x272   : >> { %9553 = vmatprep.subr.bf16.mxu1 %v10462_v45 }
 0x273   : >> { %9296 = vmatpush3.bf16.msra.mxu0 %v10459_v40  ;;  %v4593_v40 = vld [vmem:[#allocation3 + $0xb1] sm:$0xff] }
 0x274   : >> { %9297 = vmatprep.subr.bf16.mxu0 %v10461_v49  ;;  %v4597_v19 = vpack.c.bf16 %v4593_v40, %v4592_v55 }
 0x275   : >> { %9554 = vmatpush3.bf16.msra.mxu1 %v10462_v45  ;;  %v10476_v45 = vld [vmem:[%s12564_s3 + $0x5a8] sm:$0xff]  }
 0x276   : >> { %9555 = vmatprep.subr.bf16.mxu1 %v10464_v1 }
 0x277   : >> { %9298 = vmatpush3.bf16.msra.mxu0 %v10461_v49  ;;  %v10481_v49 = vld [vmem:[%s12564_s3 + $0x5d0] sm:$0xff]  }
 0x278   : >> { %9299 = vmatprep.subr.bf16.mxu0 %v10463_v11  ;;  %9548 = vmatmul.mubr.bf16.gmra.mrb[20].mxu1 %v4447_v62 }
 0x279   : >> { %9556 = vmatpush3.bf16.msra.mxu1 %v10464_v1  ;;  %9567 = vmatprep.mubr.bf16.mxu1 %v4594_v9  ;;  %v4743_v1 = vld [vmem:[#allocation3 + $0xb2] sm:$0xff] }
 0x27a   : >> { %9557 = vmatprep.subr.bf16.mxu1 %v10466_v63 }
 0x27b   : >> { %9300 = vmatpush3.bf16.msra.mxu0 %v10463_v11  ;;  %v4747_v11 = vpack.c.bf16 %v4743_v1, %v11584_v10 }
 0x27c   : >> { %9301 = vmatprep.subr.bf16.mxu0 %v10465_v34 }
 0x27d   : >> { %9558 = vmatpush3.bf16.msra.mxu1 %v10466_v63 }
 0x27e   : >> { %9559 = vmatprep.subr.bf16.mxu1 %v10467_v37 }
 0x27f   : >> { %9302 = vmatpush3.bf16.msra.mxu0 %v10465_v34 }
 0x281   : >> { %9560 = vmatpush3.bf16.msra.mxu1 %v10467_v37 }
 0x282   : >> { %9304 = vmatmul.mubr.bf16.vlgmr.msra.gmra.mrb[56].mxu0 %v2944_v17  ;;  %9561 = vmatprep.subr.bf16.mxu1 %v10468_v35 }
 0x283   : >> { %9307 = vmatprep.mubr.bf16.mxu0 %v2945_v33 }
 0x285   : >> { %9562 = vmatpush3.bf16.msra.mxu1 %v10468_v35 }
 0x286   : >> { %9563 = vmatprep.subr.bf16.mxu1 %v10469_v29 }
 0x289   : >> { %9564 = vmatpush3.bf16.msra.mxu1 %v10469_v29 }
 0x28a   : >> { %9308 = vmatmul.mubr.bf16.gmra.mrb[60].mxu0 %v4446_v59  ;;  %9565 = vmatprep.subr.bf16.mxu1 %v10470_v61  ;;  %v10477_v59 = vld [vmem:[%s12564_s3 + $0x5b0] sm:$0xff]  }
 0x28d   : >> { %9566 = vmatpush3.bf16.msra.mxu1 %v10470_v61 }
 0x28e   : >> { %9575 = vmatprep.subr.bf16.mxu1 %v10471_v50 }
 0x290   : >> { %9568 = vmatmul.mubr.bf16.vlgmr.msra.gmra.mrb[16].mxu1 %v4595_v32 }
 0x291   : >> { %9571 = vmatprep.mubr.bf16.mxu1 %v4596_v38  ;;  %9576 = vmatpush3.bf16.msra.mxu1 %v10471_v50 }
 0x292   : >> { %9577 = vmatprep.subr.bf16.mxu1 %v10472_v14 }
 0x295   : >> { %9578 = vmatpush3.bf16.msra.mxu1 %v10472_v14 }
 0x296   : >> { %9579 = vmatprep.subr.bf16.mxu1 %v10473_v7 }
 0x298   : >> { %9572 = vmatmul.mubr.bf16.gmra.mrb[20].mxu1 %v4597_v19 }
 0x299   : >> { %9580 = vmatpush3.bf16.msra.mxu1 %v10473_v7  ;;  %9591 = vmatprep.mubr.bf16.mxu1 %v4744_v2  ;;  %v10480_v2 = vld [vmem:[%s12564_s3 + $0x5c8] sm:$0xff]  }
 0x29a   : >> { %9581 = vmatprep.subr.bf16.mxu1 %v10474_v5 }
 0x29d   : >> { %9582 = vmatpush3.bf16.msra.mxu1 %v10474_v5 }
 0x29e   : >> { %9583 = vmatprep.subr.bf16.mxu1 %v10475_v28 }
 0x2a1   : >> { %9584 = vmatpush3.bf16.msra.mxu1 %v10475_v28 }
 0x2a2   : >> { %9585 = vmatprep.subr.bf16.mxu1 %v10476_v45 }
 0x2a5   : >> { %9586 = vmatpush3.bf16.msra.mxu1 %v10476_v45 }
 0x2a6   : >> { %9587 = vmatprep.subr.bf16.mxu1 %v10477_v59 }
 0x2a9   : >> { %9588 = vmatpush3.bf16.msra.mxu1 %v10477_v59 }
 0x2aa   : >> { %9589 = vmatprep.subr.bf16.mxu1 %v10478_v0 }
 0x2ad   : >> { %9590 = vmatpush3.bf16.msra.mxu1 %v10478_v0 }
 0x2ae   : >> { %9599 = vmatprep.subr.bf16.mxu1 %v10479_v48 }
 0x2b0   : >> { %9592 = vmatmul.mubr.bf16.vlgmr.msra.gmra.mrb[16].mxu1 %v4745_v56  ;;  %v10484_v56 = vld [vmem:[%s12564_s3 + $0x5e8] sm:$0xff]  }
 0x2b1   : >> { %9595 = vmatprep.mubr.bf16.mxu1 %v4746_v31  ;;  %9600 = vmatpush3.bf16.msra.mxu1 %v10479_v48  ;;  %v4893_v31 = vld [vmem:[#allocation3 + $0xb3] sm:$0xff] }
 0x2b2   : >> { %9601 = vmatprep.subr.bf16.mxu1 %v10480_v2  ;;  %v4897_v10 = vpack.c.bf16 %v4893_v31, %v11642_v51  ;;  %v10512_v31 = vld [vmem:[%s12566_s5 + $0x8] sm:$0xff] (%p393_p11)  }
 0x2b5   : >> { %9602 = vmatpush3.bf16.msra.mxu1 %v10480_v2 }
 0x2b6   : >> { %9603 = vmatprep.subr.bf16.mxu1 %v10481_v49 }
 0x2b8   : >> { %9596 = vmatmul.mubr.bf16.gmra.mrb[20].mxu1 %v4747_v11 }
 0x2b9   : >> { %9604 = vmatpush3.bf16.msra.mxu1 %v10481_v49  ;;  %9615 = vmatprep.mubr.bf16.mxu1 %v4894_v22  ;;  %v10488_v22 = vld [vmem:[%s12564_s3 + $0x608] sm:$0xff]  }
 0x2ba   : >> { %9605 = vmatprep.subr.bf16.mxu1 %v10482_v3 }
 0x2bd   : >> { %9606 = vmatpush3.bf16.msra.mxu1 %v10482_v3 }
 0x2be   : >> { %9607 = vmatprep.subr.bf16.mxu1 %v10483_v4 }
 0x2c1   : >> { %9608 = vmatpush3.bf16.msra.mxu1 %v10483_v4 }
 0x2c2   : >> { %9609 = vmatprep.subr.bf16.mxu1 %v10484_v56 }
 0x2c5   : >> { %9610 = vmatpush3.bf16.msra.mxu1 %v10484_v56 }
 0x2c6   : >> { %9611 = vmatprep.subr.bf16.mxu1 %v10485_v18 }
 0x2c9   : >> { %9612 = vmatpush3.bf16.msra.mxu1 %v10485_v18 }
 0x2ca   : >> { %9613 = vmatprep.subr.bf16.mxu1 %v10486_v47 }
 0x2cd   : >> { %9614 = vmatpush3.bf16.msra.mxu1 %v10486_v47  ;;  %v10509_v47 = vld [vmem:[%s12566_s5 + $0x40] sm:$0xff] (%p393_p11)  }
 0x2ce   : >> { %9623 = vmatprep.subr.bf16.mxu1 %v10487_v53 }
 0x2d0   : >> { %9616 = vmatmul.mubr.bf16.vlgmr.msra.gmra.mrb[16].mxu1 %v4895_v60  ;;  %v10492_v60 = vld [vmem:[%s12564_s3 + $0x628] sm:$0xff]  }
 0x2d1   : >> { %9619 = vmatprep.mubr.bf16.mxu1 %v4896_v24  ;;  %9624 = vmatpush3.bf16.msra.mxu1 %v10487_v53  ;;  %v10729_v53 = vmov (%p393_p11), 0.0  }
 0x2d2   : >> { %9625 = vmatprep.subr.bf16.mxu1 %v10488_v22  ;;  %9647 = vmatprep.subr.bf16.mxu0 (%p393_p11), %v10729_v53 }
 0x2d3   : > { %9648 = vmatpush3.bf16.msra.mxu0 (%p393_p11), %v10509_v47  ;;  %9663 = vmatprep.mubr.msk.bf16.mxu0 (%p393_p11), %vm10730_vm1, %v10729_v53 }
 0x2d4   : > { %9649 = vmatprep.subr.bf16.mxu0 (%p393_p11), %v10729_v53 }
 0x2d5   : >> { %9626 = vmatpush3.bf16.msra.mxu1 %v10488_v22  ;;  %v10510_v22 = vld [vmem:[%s12566_s5] sm:$0xff] (%p393_p11)  }
 0x2d6   : >> { %9627 = vmatprep.subr.bf16.mxu1 %v10489_v39 }
 0x2d8   : >> { %9620 = vmatmul.mubr.bf16.gmra.mrb[20].mxu1 %v4897_v10  ;;  %v10513_v10 = vld [vmem:[%s12566_s5 + $0x50] sm:$0xff] (%p393_p11)  }
 0x2d9   : >> { %9628 = vmatpush3.bf16.msra.mxu1 %v10489_v39  ;;  %9639 = vmatprep.mubr.bf16.mxu1 %v5044_v23  ;;  %v5047_v23 = vpack.c.bf16 %v5043_v58, %v11699_v36  ;;  %v10511_v39 = vld [vmem:[%s12566_s5 + $0x48] sm:$0xff] (%p393_p11)  }
 0x2da   : >> { %9629 = vmatprep.subr.bf16.mxu1 %v10490_v6  ;;  %9650 = vmatpush3.bf16.msra.mxu0 (%p393_p11), %v10511_v39  ;;  %v10542_v39 = vld [vmem:[%s12566_s5 + $0x140] sm:$0xff] (%p393_p11)  }
 0x2db   : > { %9651 = vmatprep.subr.bf16.mxu0 (%p393_p11), %v10729_v53 }
 0x2dd   : >> { %9630 = vmatpush3.bf16.msra.mxu1 %v10490_v6  ;;  %v10514_v6 = vld [vmem:[%s12566_s5 + $0x10] sm:$0xff] (%p393_p11)  }
 0x2de   : >> { %9631 = vmatprep.subr.bf16.mxu1 %v10491_v8  ;;  %9652 = vmatpush3.bf16.msra.mxu0 (%p393_p11), %v10513_v10  ;;  %v10544_v10 = vld [vmem:[%s12566_s5 + $0x148] sm:$0xff] (%p393_p11)  }
 0x2df   : > { %9653 = vmatprep.subr.bf16.mxu0 (%p393_p11), %v10729_v53 }
 0x2e1   : >> { %9632 = vmatpush3.bf16.msra.mxu1 %v10491_v8  ;;  %v10515_v8 = vld [vmem:[%s12566_s5 + $0x58] sm:$0xff] (%p393_p11)  }
 0x2e2   : >> { %9633 = vmatprep.subr.bf16.mxu1 %v10492_v60  ;;  %9654 = vmatpush3.bf16.msra.mxu0 (%p393_p11), %v10515_v8  ;;  %v10546_v8 = vld [vmem:[%s12566_s5 + $0x150] sm:$0xff] (%p393_p11)  }
 0x2e3   : > { %9655 = vmatprep.subr.bf16.mxu0 (%p393_p11), %v10729_v53 }
 0x2e5   : >> { %9634 = vmatpush3.bf16.msra.mxu1 %v10492_v60  ;;  %v10516_v60 = vld [vmem:[%s12566_s5 + $0x18] sm:$0xff] (%p393_p11)  }
 0x2e6   : >> { %9635 = vmatprep.subr.bf16.mxu1 %v10493_v43 }
 0x2e9   : >> { %9636 = vmatpush3.bf16.msra.mxu1 %v10493_v43  ;;  %v10517_v43 = vld [vmem:[%s12566_s5 + $0x60] sm:$0xff] (%p393_p11)  }
 0x2ea   : >> { %9637 = vmatprep.subr.bf16.mxu1 %v10494_v57  ;;  %9656 = vmatpush3.bf16.msra.mxu0 (%p393_p11), %v10517_v43  ;;  %v10548_v43 = vld [vmem:[%s12566_s5 + $0x158] sm:$0xff] (%p393_p11)  }
 0x2eb   : > { %9657 = vmatprep.subr.bf16.mxu0 (%p393_p11), %v10729_v53 }
 0x2ed   : >> { %9638 = vmatpush3.bf16.msra.mxu1 %v10494_v57  ;;  %v10518_v57 = vld [vmem:[%s12566_s5 + $0x20] sm:$0xff] (%p393_p11)  }
 0x2ee   : > { %9667 = vmatprep.subr.bf16.mxu1 (%p393_p11), %v10729_v53 }
 0x2f0   : >> { %9640 = vmatmul.mubr.bf16.vlgmr.msra.gmra.mrb[16].mxu1 %v5045_v20 }
 0x2f1   : >> { %9643 = vmatprep.mubr.bf16.mxu1 %v5046_v41  ;;  %9668 = vmatpush3.bf16.msra.mxu1 (%p393_p11), %v10510_v22  ;;  %v10541_v22 = vld [vmem:[%s12566_s5 + $0x100] sm:$0xff] (%p393_p11)  }
 0x2f2   : > { %9669 = vmatprep.subr.bf16.mxu1 (%p393_p11), %v10729_v53 }
 0x2f5   : > { %9670 = vmatpush3.bf16.msra.mxu1 (%p393_p11), %v10512_v31  ;;  %v10543_v31 = vld [vmem:[%s12566_s5 + $0x108] sm:$0xff] (%p393_p11)  }
 0x2f6   : > { %9671 = vmatprep.subr.bf16.mxu1 (%p393_p11), %v10729_v53 }
 0x2f8   : >> { %9644 = vmatmul.mubr.bf16.gmra.mrb[20].mxu1 %v5047_v23 }
 0x2f9   : > { %9683 = vmatprep.mubr.msk.bf16.mxu1 (%p393_p11), %vm10730_vm1, %v10729_v53  ;;  %9672 = vmatpush3.bf16.msra.mxu1 (%p393_p11), %v10514_v6  ;;  %v10545_v6 = vld [vmem:[%s12566_s5 + $0x110] sm:$0xff] (%p393_p11)  }
 0x2fa   : > { %9673 = vmatprep.subr.bf16.mxu1 (%p393_p11), %v10729_v53 }
 0x2fd   : > { %9674 = vmatpush3.bf16.msra.mxu1 (%p393_p11), %v10516_v60  ;;  %v10547_v60 = vld [vmem:[%s12566_s5 + $0x118] sm:$0xff] (%p393_p11)  }
 0x2fe   : > { %9675 = vmatprep.subr.bf16.mxu1 (%p393_p11), %v10729_v53 }
 0x301   : > { %9676 = vmatpush3.bf16.msra.mxu1 (%p393_p11), %v10518_v57  ;;  %v10549_v57 = vld [vmem:[%s12566_s5 + $0x120] sm:$0xff] (%p393_p11)  }
 0x302   : > { %9677 = vmatprep.subr.bf16.mxu1 (%p393_p11), %v10729_v53 }
 0x355   : >> { %v9305_v16 = vpop.f32.mrb[56].mxu0 }
 0x356   : >> { %v3046_v24 = vpop.f32.mrb[57].mxu0 }
 0x357   : >> { %v9306_v51 = vpop.f32.mrb[58].mxu0 }
 0x358   : >> { %v3049_v42 = vpop.f32.mrb[59].mxu0 }
 0x35d   : >> { %v9309_v15 = vpop.f32.mrb[60].mxu0 }
 0x35e   : >> { %v3062_v26 = vpop.f32.mrb[61].mxu0 }
 0x35f   : >> { %v9310_v62 = vpop.f32.mrb[62].mxu0 }
 0x360   : >> { %v3065_v63 = vpop.f32.mrb[63].mxu0 }
 0x3c3   : >> { %v9641_v9 = vpop.f32.mrb[16].mxu1 }
 0x3c4   : >> { %v10011_v13 = vadd.f32 %v9641_v9, %v9305_v16  ;;  %v5147_v20 = vpop.f32.mrb[17].mxu1  ;;  %v10519_v16 = vld [vmem:[%s12566_s5 + $0x68] sm:$0xff] (%p393_p11)  }
 0x3c5   : >> { %v10012_v27 = vadd.f32 %v5147_v20, %v3046_v24  ;;  %v9642_v44 = vpop.f32.mrb[18].mxu1  ;;  %9658 = vmatpush3.bf16.msra.mxu0 (%p393_p11), %v10519_v16  ;;  %v10521_v20 = vld [vmem:[%s12566_s5 + $0x70] sm:$0xff] (%p393_p11)  }
 0x3c6   : >> { %v5195_v41 = vadd.f32 %v10011_v13, %v8065_v12  ;;  %v10013_v36 = vadd.f32 %v9642_v44, %v9306_v51  ;;  %v5150_v34 = vpop.f32.mrb[19].mxu1  ;;  %9659 = vmatprep.subr.bf16.mxu0 (%p393_p11), %v10729_v53  ;;  %v10522_v44 = vld [vmem:[%s12566_s5 + $0x30] sm:$0xff] (%p393_p11)  }
 0x3c7   : >> { %v5193_v37 = vadd.f32 %v10012_v27, %v8065_v12  ;;  %v10014_v21 = vadd.f32 %v5150_v34, %v3049_v42 }
 0x3c8   : >> { %v5196_v25 = vadd.f32 %v10013_v36, %v8065_v12  ;;  %v5203_v35 = vmax.f32 %v5195_v41, 0.0  ;;  %v10523_v36 = vld [vmem:[%s12566_s5 + $0x78] sm:$0xff] (%p393_p11)  }
 0x3c9   : >> { %v5194_v46 = vadd.f32 %v10014_v21, %v8065_v12  ;;  %v5201_v33 = vmax.f32 %v5193_v37, 0.0  ;;  %9660 = vmatpush3.bf16.msra.mxu0 (%p393_p11), %v10521_v20  ;;  %v10524_v37 = vld [vmem:[%s12566_s5 + $0x38] sm:$0xff] (%p393_p11)  }
 0x3ca   : >> { %v5204_v17 = vmax.f32 %v5196_v25, 0.0  ;;  %9661 = vmatprep.subr.bf16.mxu0 (%p393_p11), %v10729_v53 }
 0x3cb   : >> { %v5202_v29 = vmax.f32 %v5194_v46, 0.0  ;;  %v9645_v61 = vpop.f32.mrb[20].mxu1  ;;  %v10525_v46 = vld [vmem:[%s12566_s5 + $0x80] sm:$0xff] (%p393_p11)  }
 0x3cc   : >> { %v5210_v50 = vmax.f32 %v5203_v35, %v5204_v17  ;;  %v10015_v52 = vadd.f32 %v9645_v61, %v9309_v15  ;;  %v5163_v54 = vpop.f32.mrb[21].mxu1  ;;  %v10526_v35 = vld [vmem:[%s12566_s5 + $0xc0] sm:$0xff] (%p393_p11)   ;;  %v10527_v17 = vld [vmem:[%s12566_s5 + $0x88] sm:$0xff] (%p393_p11)   ;;  %v10530_v61 = vld [vmem:[%s12566_s5 + $0xd0] sm:$0xff] (%p393_p11)  }
 0x3cd   : >> { %v5209_v30 = vmax.f32 %v5201_v33, %v5202_v29  ;;  %v10016_v32 = vadd.f32 %v5163_v54, %v3062_v26  ;;  %v9646_v14 = vpop.f32.mrb[22].mxu1  ;;  %v10520_v26 = vld [vmem:[%s12566_s5 + $0x28] sm:$0xff] (%p393_p11)   ;;  %9662 = vmatpush3.bf16.msra.mxu0 (%p393_p11), %v10523_v36  ;;  %v10529_v29 = vld [vmem:[%s12566_s5 + $0x90] sm:$0xff] (%p393_p11)  }
 0x3ce   : >> { %5214 = vst [vmem:[#allocation4 + $0x8] sm:$0xff] %v5210_v50  ;;  %v5199_v38 = vadd.f32 %v10015_v52, %v8065_v12  ;;  %v10017_v7 = vadd.f32 %v9646_v14, %v9310_v62  ;;  %v5166_v55 = vpop.f32.mrb[23].mxu1  ;;  %9678 = vmatpush3.bf16.msra.mxu1 (%p393_p11), %v10520_v26  ;;  %9687 = vmatprep.subr.bf16.mxu0 (%p393_p11), %v10729_v53  ;;  %v10528_v33 = vld [vmem:[%s12566_s5 + $0xc8] sm:$0xff] (%p393_p11)   ;;  %v10531_v50 = vld [vmem:[%s12566_s5 + $0x98] sm:$0xff] (%p393_p11)  }
 0x3cf   : >> { %5213 = vst [vmem:[#allocation4] sm:$0xff] %v5209_v30  ;;  %v5197_v40 = vadd.f32 %v10016_v32, %v8065_v12  ;;  %v10018_v19 = vadd.f32 %v5166_v55, %v3065_v63  ;;  %9679 = vmatprep.subr.bf16.mxu1 (%p393_p11), %v10729_v53  ;;  %v10532_v52 = vld [vmem:[%s12566_s5 + $0xd8] sm:$0xff] (%p393_p11)  }
 0x3d0   : >> { %v5200_v5 = vadd.f32 %v10017_v7, %v8065_v12  ;;  %v5207_v45 = vmax.f32 %v5199_v38, 0.0  ;;  %v10533_v38 = vld [vmem:[%s12566_s5 + $0xa0] sm:$0xff] (%p393_p11)  }
 0x3d1   : >> { %v5198_v28 = vadd.f32 %v10018_v19, %v8065_v12  ;;  %v5205_v0 = vmax.f32 %v5197_v40, 0.0  ;;  %v10534_v7 = vld [vmem:[%s12566_s5 + $0xe0] sm:$0xff] (%p393_p11)  }
 0x3d2   : >> { %v5208_v59 = vmax.f32 %v5200_v5, 0.0  ;;  %9680 = vmatpush3.bf16.msra.mxu1 (%p393_p11), %v10522_v44  ;;  %v10535_v5 = vld [vmem:[%s12566_s5 + $0xa8] sm:$0xff] (%p393_p11)  }
 0x3d3   : >> { %v5206_v48 = vmax.f32 %v5198_v28, 0.0  ;;  %9681 = vmatprep.subr.bf16.mxu1 (%p393_p11), %v10729_v53 }
 0x3d4   : >> { %v5212_v2 = vmax.f32 %v5207_v45, %v5208_v59  ;;  %v10536_v45 = vld [vmem:[%s12566_s5 + $0xe8] sm:$0xff] (%p393_p11)  }
 0x3d5   : >> { %v5211_v49 = vmax.f32 %v5205_v0, %v5206_v48 }
 0x3d6   : >> { %v5217_v1 = vld [vmem:[#allocation4] ss:$2 sm:$0xff]  ;;  %v5221_v11 = vld [vmem:[#allocation4 + $0x1] ss:$2 sm:$0xff]  ;;  %5216 = vst [vmem:[#allocation4 + $0x18] sm:$0xff] %v5212_v2  ;;  %9682 = vmatpush3.bf16.msra.mxu1 (%p393_p11), %v10524_v37  ;;  %v10537_v2 = vld [vmem:[%s12566_s5 + $0xb0] sm:$0xff] (%p393_p11)  }
 0x3d7   : >> { %v5224_v3 = vmax.f32 %v5217_v1, %v5221_v11  ;;  %5215 = vst [vmem:[#allocation4 + $0x10] sm:$0xff] %v5211_v49  ;;  %9707 = vmatprep.subr.bf16.mxu1 (%p393_p11), %v10729_v53  ;;  %v10538_v1 = vld [vmem:[%s12566_s5 + $0xf0] sm:$0xff] (%p393_p11)  }
 0x3d9   : >> { %5228 = vst [vmem:[%s5227_s0] sm:$0xff] %v5224_v3  ;;  %v10539_v3 = vld [vmem:[%s12566_s5 + $0xb8] sm:$0xff] (%p393_p11)  }
 0x3db   : > { %395 = sbr.rel (!%p393_p11) target bundleno = 28 (0x1c), region = 185 }
 0x3de   : >> { %v5219_v4 = vld [vmem:[#allocation4 + $0x10] ss:$2 sm:$0xff]  ;;  %v5223_v56 = vld [vmem:[#allocation4 + $0x11] ss:$2 sm:$0xff] }
 0x3df   : >> { %v5225_v18 = vmax.f32 %v5219_v4, %v5223_v56  ;;  %v10540_v56 = vld [vmem:[%s12566_s5 + $0xf8] sm:$0xff] (%p393_p11)  }
 0x3e1   : >> { %5229 = vst [vmem:[%s5227_s0 + $0x8] sm:$0xff] %v5225_v18  ;;  %s12515_s0 = scalar_lea.hbm (%p393_p11), %s12572_s11, %s8455_s16 }
 0x3e8   : > { %v5255_v58 = vld [vmem:[#allocation5 + $0x1] ss:$16 sm:$0x3]  ;;  %v5230_v42 = vld [vmem:[#allocation5] ss:$16 sm:$0x3] }
 0x3e9   : > { %v5256_v23 = vld [vmem:[#allocation5 + $0x1] ss:$16 sm:$0xc]  ;;  %v5231_v15 = vld [vmem:[#allocation5] ss:$16 sm:$0xc] }
 0x3ea   : > { %v5257_v24 = vor.u32 %v5256_v23, %v5255_v58  ;;  %v5258_v51 = vld [vmem:[#allocation5 + $0x1] ss:$16 sm:$0x30]  ;;  %v5232_v62 = vor.u32 %v5231_v15, %v5230_v42  ;;  %v5233_v63 = vld [vmem:[#allocation5] ss:$16 sm:$0x30] }
 0x3eb   : > { %v5260_v9 = vld [vmem:[#allocation5 + $0x1] ss:$16 sm:$0xc0]  ;;  %v5235_v13 = vld [vmem:[#allocation5] ss:$16 sm:$0xc0] }
 0x3ec   : > { %v5259_v12 = vor.u32 %v5258_v51, %v5257_v24  ;;  %v5234_v27 = vor.u32 %v5233_v63, %v5232_v62  ;;  %v5457_v54 = vld [vmem:[#allocation5 + $0x2] ss:$16 sm:$0x3]  ;;  %v5572_v32 = vld [vmem:[#allocation5 + $0x3] ss:$16 sm:$0x3] }
 0x3ed   : > { %v5458_v30 = vld [vmem:[#allocation5 + $0x2] ss:$16 sm:$0xc]  ;;  %v5573_v14 = vld [vmem:[#allocation5 + $0x3] ss:$16 sm:$0xc] }
 0x3ee   : > { %v5261_v41 = vor.u32 %v5260_v9, %v5259_v12  ;;  %v5236_v34 = vor.u32 %v5235_v13, %v5234_v27  ;;  %v5460_v55 = vld [vmem:[#allocation5 + $0x2] ss:$16 sm:$0x30]  ;;  %v5459_v40 = vor.u32 %v5458_v30, %v5457_v54  ;;  %v5575_v19 = vld [vmem:[#allocation5 + $0x3] ss:$16 sm:$0x30]  ;;  %v5574_v28 = vor.u32 %v5573_v14, %v5572_v32 }
 0x3ef   : > { %v5462_v59 = vld [vmem:[#allocation5 + $0x2] ss:$16 sm:$0xc0]  ;;  %v5577_v48 = vld [vmem:[#allocation5 + $0x3] ss:$16 sm:$0xc0] }
 0x3f0   : > { %v5262_v21 = vpack.c.bf16 %v5261_v41, %v5261_v41  ;;  %v5237_v25 = vpack.c.bf16 %v5236_v34, %v5236_v34  ;;  %v5461_v0 = vor.u32 %v5460_v55, %v5459_v40  ;;  %v5576_v49 = vor.u32 %v5575_v19, %v5574_v28  ;;  %v10550_v58 = vld [vmem:[%s12566_s5 + $0x160] sm:$0xff]   ;;  %v10551_v62 = vld [vmem:[%s12566_s5 + $0x128] sm:$0xff]   ;;  %v10553_v27 = vld [vmem:[%s12566_s5 + $0x130] sm:$0xff]  }
 0x3f1   : > { %v5687_v23 = vld [vmem:[#allocation5 + $0x4] ss:$16 sm:$0x3]  ;;  %v5802_v24 = vld [vmem:[#allocation5 + $0x5] ss:$16 sm:$0x3] }
 0x3f2   : > { %9664 = vmatmul.mubr.bf16.vlgmr.msra.gmra.mrb[0].mxu0 %v5262_v21  ;;  %9684 = vmatmul.mubr.bf16.vlgmr.msra.gmra.mrb[0].mxu1 %v5237_v25  ;;  %v5463_v11 = vor.u32 %v5462_v59, %v5461_v0  ;;  %v5578_v4 = vor.u32 %v5577_v48, %v5576_v49  ;;  %v5688_v16 = vld [vmem:[#allocation5 + $0x4] ss:$16 sm:$0xc]  ;;  %v5803_v51 = vld [vmem:[#allocation5 + $0x5] ss:$16 sm:$0xc] }
 0x3f3   : > { %9688 = vmatpush3.bf16.msra.mxu0 %v10525_v46  ;;  %9708 = vmatpush3.bf16.msra.mxu1 %v10526_v35  ;;  %v5690_v42 = vld [vmem:[#allocation5 + $0x4] ss:$16 sm:$0x30]  ;;  %v5689_v15 = vor.u32 %v5688_v16, %v5687_v23  ;;  %v5805_v26 = vld [vmem:[#allocation5 + $0x5] ss:$16 sm:$0x30]  ;;  %v5804_v63 = vor.u32 %v5803_v51, %v5802_v24 }
 0x3f4   : > { %9689 = vmatprep.subr.bf16.mxu0 %v10729_v53  ;;  %9709 = vmatprep.subr.bf16.mxu1 %v10729_v53  ;;  %v5464_v18 = vpack.c.bf16 %v5463_v11, %v5463_v11  ;;  %v5579_v47 = vpack.c.bf16 %v5578_v4, %v5578_v4  ;;  %v10552_v9 = vld [vmem:[%s12566_s5 + $0x168] sm:$0xff]   ;;  %v5692_v12 = vld [vmem:[#allocation5 + $0x4] ss:$16 sm:$0xc0]  ;;  %v10555_v34 = vld [vmem:[%s12566_s5 + $0x138] sm:$0xff]  }
 0x3f5   : > { %9703 = vmatprep.mubr.msk.bf16.mxu0 %vm10730_vm1, %v10729_v53  ;;  %9723 = vmatprep.mubr.msk.bf16.mxu1 %vm10730_vm1, %v10729_v53  ;;  %v5691_v13 = vor.u32 %v5690_v42, %v5689_v15  ;;  %v5807_v20 = vld [vmem:[#allocation5 + $0x5] ss:$16 sm:$0xc0]  ;;  %v5806_v44 = vor.u32 %v5805_v26, %v5804_v63  ;;  %v10556_v21 = vld [vmem:[%s12566_s5 + $0x178] sm:$0xff]   ;;  %v10567_v28 = vld [vmem:[%s12566_s5 + $0x1a8] sm:$0xff]  }
 0x3f6   : > { %v10554_v41 = vld [vmem:[%s12566_s5 + $0x170] sm:$0xff]   ;;  %v10557_v35 = vld [vmem:[%s12566_s5 + $0x180] sm:$0xff]   ;;  %v10564_v54 = vld [vmem:[%s12566_s5 + $0x1d8] sm:$0xff]  }
 0x3f7   : > { %9690 = vmatpush3.bf16.msra.mxu0 %v10527_v17  ;;  %9710 = vmatpush3.bf16.msra.mxu1 %v10528_v33  ;;  %v5693_v36 = vor.u32 %v5692_v12, %v5691_v13  ;;  %v5808_v37 = vor.u32 %v5807_v20, %v5806_v44  ;;  %v10558_v17 = vld [vmem:[%s12566_s5 + $0x1c0] sm:$0xff]   ;;  %v10559_v33 = vld [vmem:[%s12566_s5 + $0x188] sm:$0xff]   ;;  %v10569_v48 = vld [vmem:[%s12566_s5 + $0x1b0] sm:$0xff]  }
 0x3f8   : > { %9691 = vmatprep.subr.bf16.mxu0 %v10729_v53  ;;  %9711 = vmatprep.subr.bf16.mxu1 %v10729_v53  ;;  %v5917_v30 = vld [vmem:[#allocation5 + $0x6] ss:$16 sm:$0x3]  ;;  %v6032_v14 = vld [vmem:[#allocation5 + $0x7] ss:$16 sm:$0x3] }
 0x3f9   : > { %v5694_v25 = vpack.c.bf16 %v5693_v36, %v5693_v36  ;;  %v5809_v46 = vpack.c.bf16 %v5808_v37, %v5808_v37  ;;  %v5918_v32 = vld [vmem:[#allocation5 + $0x6] ss:$16 sm:$0xc]  ;;  %v10568_v59 = vld [vmem:[%s12566_s5 + $0x1e8] sm:$0xff]   ;;  %v10571_v4 = vld [vmem:[%s12566_s5 + $0x1b8] sm:$0xff]  }
 0x3fa   : > { %v10566_v55 = vld [vmem:[%s12566_s5 + $0x1e0] sm:$0xff]   ;;  %v5919_v19 = vor.u32 %v5918_v32, %v5917_v30  ;;  %v6148_v23 = vld [vmem:[#allocation5 + $0x8] ss:$16 sm:$0xc]  ;;  %v10585_v44 = vld [vmem:[%s12566_s5 + $0x230] sm:$0xff]  }
 0x3fb   : > { %9692 = vmatpush3.bf16.msra.mxu0 %v10529_v29  ;;  %9712 = vmatpush3.bf16.msra.mxu1 %v10530_v61  ;;  %v10560_v29 = vld [vmem:[%s12566_s5 + $0x1c8] sm:$0xff]   ;;  %v10561_v61 = vld [vmem:[%s12566_s5 + $0x190] sm:$0xff]   ;;  %v10581_v51 = vld [vmem:[%s12566_s5 + $0x220] sm:$0xff]  }
 0x3fc   : > { %9693 = vmatprep.subr.bf16.mxu0 %v10729_v53  ;;  %9713 = vmatprep.subr.bf16.mxu1 %v10729_v53  ;;  %v5920_v40 = vld [vmem:[#allocation5 + $0x6] ss:$16 sm:$0x30]  ;;  %v6037_v11 = vld [vmem:[#allocation5 + $0x7] ss:$16 sm:$0xc0] }
 0x3fd   : > { %v5921_v0 = vor.u32 %v5920_v40, %v5919_v19  ;;  %v6262_v16 = vld [vmem:[#allocation5 + $0x9] ss:$16 sm:$0x3]  ;;  %v10582_v42 = vld [vmem:[%s12566_s5 + $0x260] sm:$0xff]   ;;  %v10586_v36 = vld [vmem:[%s12566_s5 + $0x270] sm:$0xff]  }
 0x3fe   : > { %v6263_v24 = vld [vmem:[#allocation5 + $0x9] ss:$16 sm:$0xc]  ;;  %v6150_v15 = vld [vmem:[#allocation5 + $0x8] ss:$16 sm:$0x30] }
 0x3ff   : > { %9694 = vmatpush3.bf16.msra.mxu0 %v10531_v50  ;;  %9714 = vmatpush3.bf16.msra.mxu1 %v10532_v52  ;;  %v10562_v50 = vld [vmem:[%s12566_s5 + $0x1d0] sm:$0xff]   ;;  %v10563_v52 = vld [vmem:[%s12566_s5 + $0x198] sm:$0xff]   ;;  %v10583_v63 = vld [vmem:[%s12566_s5 + $0x228] sm:$0xff]  }
 0x400   : > { %9695 = vmatprep.subr.bf16.mxu0 %v10729_v53  ;;  %9715 = vmatprep.subr.bf16.mxu1 %v10729_v53  ;;  %v10584_v12 = vld [vmem:[%s12566_s5 + $0x268] sm:$0xff]   ;;  %v10587_v37 = vld [vmem:[%s12566_s5 + $0x238] sm:$0xff]   ;;  %v10597_v32 = vld [vmem:[%s12566_s5 + $0x2a0] sm:$0xff]  }
 0x401   : > { %v6152_v13 = vld [vmem:[#allocation5 + $0x8] ss:$16 sm:$0xc0]  ;;  %v6493_v40 = vld [vmem:[#allocation5 + $0xb] ss:$16 sm:$0xc] }
 0x402   : > { %v10596_v30 = vld [vmem:[%s12566_s5 + $0x2d8] sm:$0xff]  }
 0x403   : > { %9696 = vmatpush3.bf16.msra.mxu0 %v10533_v38  ;;  %9716 = vmatpush3.bf16.msra.mxu1 %v10534_v7  ;;  %v6033_v38 = vld [vmem:[#allocation5 + $0x7] ss:$16 sm:$0xc] }
 0x404   : > { %9697 = vmatprep.subr.bf16.mxu0 %v10729_v53  ;;  %9717 = vmatprep.subr.bf16.mxu1 %v10729_v53  ;;  %v10565_v7 = vld [vmem:[%s12566_s5 + $0x1a0] sm:$0xff]  }
 0x407   : > { %9698 = vmatpush3.bf16.msra.mxu0 %v10535_v5  ;;  %9718 = vmatpush3.bf16.msra.mxu1 %v10536_v45  ;;  %v6035_v5 = vld [vmem:[#allocation5 + $0x7] ss:$16 sm:$0x30]  ;;  %v6034_v45 = vor.u32 %v6033_v38, %v6032_v14  ;;  %v6377_v38 = vld [vmem:[#allocation5 + $0xa] ss:$16 sm:$0x3] }
 0x408   : > { %9699 = vmatprep.subr.bf16.mxu0 %v10729_v53  ;;  %9719 = vmatprep.subr.bf16.mxu1 %v10729_v53  ;;  %v10598_v14 = vld [vmem:[%s12566_s5 + $0x2e0] sm:$0xff]  }
 0x409   : > { %v6036_v49 = vor.u32 %v6035_v5, %v6034_v45  ;;  %v10599_v5 = vld [vmem:[%s12566_s5 + $0x2a8] sm:$0xff]  }
 0x40b   : > { %9700 = vmatpush3.bf16.msra.mxu0 %v10537_v2  ;;  %9720 = vmatpush3.bf16.msra.mxu1 %v10538_v1  ;;  %v5922_v2 = vld [vmem:[#allocation5 + $0x6] ss:$16 sm:$0xc0] }
 0x40c   : > { %9701 = vmatprep.subr.bf16.mxu0 %v10729_v53  ;;  %9721 = vmatprep.subr.bf16.mxu1 %v10729_v53  ;;  %v10570_v1 = vld [vmem:[%s12566_s5 + $0x1f0] sm:$0xff]  }
 0x40f   : > { %9702 = vmatpush3.bf16.msra.mxu0 %v10539_v3  ;;  %9722 = vmatpush3.bf16.msra.mxu1 %v10540_v56  ;;  %v5923_v3 = vor.u32 %v5922_v2, %v5921_v0  ;;  %v6038_v56 = vor.u32 %v6037_v11, %v6036_v49  ;;  %v6495_v0 = vld [vmem:[#allocation5 + $0xb] ss:$16 sm:$0x30]  ;;  %v10601_v2 = vld [vmem:[%s12566_s5 + $0x2b0] sm:$0xff]  }
 0x410   : > { %9727 = vmatprep.subr.bf16.mxu0 %v10729_v53  ;;  %9747 = vmatprep.subr.bf16.mxu1 %v10729_v53  ;;  %v6382_v49 = vld [vmem:[#allocation5 + $0xa] ss:$16 sm:$0xc0]  ;;  %v10602_v11 = vld [vmem:[%s12566_s5 + $0x2f0] sm:$0xff]  }
 0x412   : > { %9704 = vmatmul.mubr.bf16.vlgmr.msra.gmra.mrb[4].mxu0 %v5464_v18  ;;  %9724 = vmatmul.mubr.bf16.vlgmr.msra.gmra.mrb[4].mxu1 %v5579_v47  ;;  %v10572_v18 = vld [vmem:[%s12566_s5 + $0x1f8] sm:$0xff]   ;;  %v5924_v47 = vpack.c.bf16 %v5923_v3, %v5923_v3 }
 0x413   : > { %9728 = vmatpush3.bf16.msra.mxu0 %v10541_v22  ;;  %9748 = vmatpush3.bf16.msra.mxu1 %v10542_v39  ;;  %v6039_v22 = vpack.c.bf16 %v6038_v56, %v6038_v56  ;;  %v10573_v39 = vld [vmem:[%s12566_s5 + $0x200] sm:$0xff]   ;;  %v6497_v3 = vld [vmem:[#allocation5 + $0xb] ss:$16 sm:$0xc0] }
 0x414   : > { %9729 = vmatprep.subr.bf16.mxu0 %v10729_v53  ;;  %9749 = vmatprep.subr.bf16.mxu1 %v10729_v53  ;;  %v10603_v56 = vld [vmem:[%s12566_s5 + $0x2b8] sm:$0xff]  }
 0x415   : > { %9743 = vmatprep.mubr.msk.bf16.mxu0 %vm10730_vm1, %v10729_v53  ;;  %9763 = vmatprep.mubr.msk.bf16.mxu1 %vm10730_vm1, %v10729_v53 }
 0x417   : > { %9730 = vmatpush3.bf16.msra.mxu0 %v10543_v31  ;;  %9750 = vmatpush3.bf16.msra.mxu1 %v10544_v10  ;;  %v10574_v31 = vld [vmem:[%s12566_s5 + $0x240] sm:$0xff]   ;;  %v10575_v10 = vld [vmem:[%s12566_s5 + $0x208] sm:$0xff]  }
 0x418   : > { %9731 = vmatprep.subr.bf16.mxu0 %v10729_v53  ;;  %9751 = vmatprep.subr.bf16.mxu1 %v10729_v53 }
 0x41b   : > { %9732 = vmatpush3.bf16.msra.mxu0 %v10545_v6  ;;  %9752 = vmatpush3.bf16.msra.mxu1 %v10546_v8  ;;  %v10576_v6 = vld [vmem:[%s12566_s5 + $0x248] sm:$0xff]   ;;  %v10577_v8 = vld [vmem:[%s12566_s5 + $0x210] sm:$0xff]  }
 0x41c   : > { %9733 = vmatprep.subr.bf16.mxu0 %v10729_v53  ;;  %9753 = vmatprep.subr.bf16.mxu1 %v10729_v53 }
 0x41f   : > { %9734 = vmatpush3.bf16.msra.mxu0 %v10547_v60  ;;  %9754 = vmatpush3.bf16.msra.mxu1 %v10548_v43  ;;  %v10578_v60 = vld [vmem:[%s12566_s5 + $0x250] sm:$0xff]   ;;  %v10579_v43 = vld [vmem:[%s12566_s5 + $0x218] sm:$0xff]  }
 0x420   : > { %9735 = vmatprep.subr.bf16.mxu0 %v10729_v53  ;;  %9755 = vmatprep.subr.bf16.mxu1 %v10729_v53 }
 0x423   : > { %9736 = vmatpush3.bf16.msra.mxu0 %v10549_v57  ;;  %9756 = vmatpush3.bf16.msra.mxu1 %v10550_v58  ;;  %v10580_v57 = vld [vmem:[%s12566_s5 + $0x258] sm:$0xff]  }
 0x424   : > { %9737 = vmatprep.subr.bf16.mxu0 %v10729_v53  ;;  %9757 = vmatprep.subr.bf16.mxu1 %v10729_v53  ;;  %v6147_v58 = vld [vmem:[#allocation5 + $0x8] ss:$16 sm:$0x3] }
 0x425   : > { %v6149_v26 = vor.u32 %v6148_v23, %v6147_v58  ;;  %v10612_v58 = vld [vmem:[%s12566_s5 + $0x358] sm:$0xff]   ;;  %v10613_v23 = vld [vmem:[%s12566_s5 + $0x320] sm:$0xff]  }
 0x427   : > { %9738 = vmatpush3.bf16.msra.mxu0 %v10551_v62  ;;  %9758 = vmatpush3.bf16.msra.mxu1 %v10552_v9  ;;  %v6265_v62 = vld [vmem:[#allocation5 + $0x9] ss:$16 sm:$0x30]  ;;  %v6264_v9 = vor.u32 %v6263_v24, %v6262_v16  ;;  %v6151_v20 = vor.u32 %v6150_v15, %v6149_v26  ;;  %v10614_v16 = vld [vmem:[%s12566_s5 + $0x360] sm:$0xff]  }
 0x428   : > { %9739 = vmatprep.subr.bf16.mxu0 %v10729_v53  ;;  %9759 = vmatprep.subr.bf16.mxu1 %v10729_v53  ;;  %v6607_v24 = vld [vmem:[#allocation5 + $0xc] ss:$16 sm:$0x3]  ;;  %v6723_v15 = vld [vmem:[#allocation5 + $0xd] ss:$16 sm:$0xc] }
 0x42b   : > { %9740 = vmatpush3.bf16.msra.mxu0 %v10553_v27  ;;  %9760 = vmatpush3.bf16.msra.mxu1 %v10554_v41  ;;  %v6267_v27 = vld [vmem:[#allocation5 + $0x9] ss:$16 sm:$0xc0]  ;;  %v6266_v41 = vor.u32 %v6265_v62, %v6264_v9 }
 0x42c   : > { %9741 = vmatprep.subr.bf16.mxu0 %v10729_v53  ;;  %9761 = vmatprep.subr.bf16.mxu1 %v10729_v53  ;;  %v10615_v62 = vld [vmem:[%s12566_s5 + $0x328] sm:$0xff]  }
 0x42f   : > { %9742 = vmatpush3.bf16.msra.mxu0 %v10555_v34  ;;  %9762 = vmatpush3.bf16.msra.mxu1 %v10556_v21  ;;  %v6153_v34 = vor.u32 %v6152_v13, %v6151_v20  ;;  %v6268_v21 = vor.u32 %v6267_v27, %v6266_v41  ;;  %v6725_v13 = vld [vmem:[#allocation5 + $0xd] ss:$16 sm:$0x30]  ;;  %v10617_v27 = vld [vmem:[%s12566_s5 + $0x330] sm:$0xff]  }
 0x430   : > { %9767 = vmatprep.subr.bf16.mxu0 %v10729_v53  ;;  %9787 = vmatprep.subr.bf16.mxu1 %v10729_v53 }
 0x432   : > { %9744 = vmatmul.mubr.bf16.vlgmr.msra.gmra.mrb[8].mxu0 %v5694_v25  ;;  %9764 = vmatmul.mubr.bf16.vlgmr.msra.gmra.mrb[8].mxu1 %v5809_v46  ;;  %v10588_v25 = vld [vmem:[%s12566_s5 + $0x278] sm:$0xff]   ;;  %v6154_v46 = vpack.c.bf16 %v6153_v34, %v6153_v34 }
 0x433   : > { %9768 = vmatpush3.bf16.msra.mxu0 %v10557_v35  ;;  %9788 = vmatpush3.bf16.msra.mxu1 %v10558_v17  ;;  %v6269_v35 = vpack.c.bf16 %v6268_v21, %v6268_v21  ;;  %v10589_v17 = vld [vmem:[%s12566_s5 + $0x280] sm:$0xff]   ;;  %v6727_v34 = vld [vmem:[#allocation5 + $0xd] ss:$16 sm:$0xc0] }
 0x434   : > { %9769 = vmatprep.subr.bf16.mxu0 %v10729_v53  ;;  %9789 = vmatprep.subr.bf16.mxu1 %v10729_v53  ;;  %v10619_v21 = vld [vmem:[%s12566_s5 + $0x338] sm:$0xff]  }
 0x435   : > { %9783 = vmatprep.mubr.msk.bf16.mxu0 %vm10730_vm1, %v10729_v53  ;;  %9803 = vmatprep.mubr.msk.bf16.mxu1 %vm10730_vm1, %v10729_v53 }
 0x437   : > { %9770 = vmatpush3.bf16.msra.mxu0 %v10559_v33  ;;  %9790 = vmatpush3.bf16.msra.mxu1 %v10560_v29  ;;  %v10590_v33 = vld [vmem:[%s12566_s5 + $0x2c0] sm:$0xff]   ;;  %v10591_v29 = vld [vmem:[%s12566_s5 + $0x288] sm:$0xff]  }
 0x438   : > { %9771 = vmatprep.subr.bf16.mxu0 %v10729_v53  ;;  %9791 = vmatprep.subr.bf16.mxu1 %v10729_v53 }
 0x43b   : > { %9772 = vmatpush3.bf16.msra.mxu0 %v10561_v61  ;;  %9792 = vmatpush3.bf16.msra.mxu1 %v10562_v50  ;;  %v10592_v61 = vld [vmem:[%s12566_s5 + $0x2c8] sm:$0xff]   ;;  %v10593_v50 = vld [vmem:[%s12566_s5 + $0x290] sm:$0xff]  }
 0x43c   : > { %9773 = vmatprep.subr.bf16.mxu0 %v10729_v53  ;;  %9793 = vmatprep.subr.bf16.mxu1 %v10729_v53 }
 0x43f   : > { %9774 = vmatpush3.bf16.msra.mxu0 %v10563_v52  ;;  %9794 = vmatpush3.bf16.msra.mxu1 %v10564_v54  ;;  %v10594_v52 = vld [vmem:[%s12566_s5 + $0x2d0] sm:$0xff]   ;;  %v10595_v54 = vld [vmem:[%s12566_s5 + $0x298] sm:$0xff]  }
 0x440   : > { %9775 = vmatprep.subr.bf16.mxu0 %v10729_v53  ;;  %9795 = vmatprep.subr.bf16.mxu1 %v10729_v53 }
 0x443   : > { %9776 = vmatpush3.bf16.msra.mxu0 %v10565_v7  ;;  %9796 = vmatpush3.bf16.msra.mxu1 %v10566_v55  ;;  %v6378_v7 = vld [vmem:[#allocation5 + $0xa] ss:$16 sm:$0xc]  ;;  %v6492_v55 = vld [vmem:[#allocation5 + $0xb] ss:$16 sm:$0x3] }
 0x444   : > { %9777 = vmatprep.subr.bf16.mxu0 %v10729_v53  ;;  %9797 = vmatprep.subr.bf16.mxu1 %v10729_v53  ;;  %v6379_v19 = vor.u32 %v6378_v7, %v6377_v38  ;;  %v6494_v45 = vor.u32 %v6493_v40, %v6492_v55  ;;  %v10630_v38 = vld [vmem:[%s12566_s5 + $0x3e0] sm:$0xff]   ;;  %v6837_v7 = vld [vmem:[#allocation5 + $0xe] ss:$16 sm:$0x3] }
 0x445   : > { %v6838_v55 = vld [vmem:[#allocation5 + $0xe] ss:$16 sm:$0xc]  ;;  %v6952_v40 = vld [vmem:[#allocation5 + $0xf] ss:$16 sm:$0x3] }
 0x447   : > { %9778 = vmatpush3.bf16.msra.mxu0 %v10567_v28  ;;  %9798 = vmatpush3.bf16.msra.mxu1 %v10568_v59  ;;  %v6380_v28 = vld [vmem:[#allocation5 + $0xa] ss:$16 sm:$0x30] }
 0x448   : > { %9779 = vmatprep.subr.bf16.mxu0 %v10729_v53  ;;  %9799 = vmatprep.subr.bf16.mxu1 %v10729_v53  ;;  %v10600_v59 = vld [vmem:[%s12566_s5 + $0x2e8] sm:$0xff]  }
 0x44b   : > { %9780 = vmatpush3.bf16.msra.mxu0 %v10569_v48  ;;  %9800 = vmatpush3.bf16.msra.mxu1 %v10570_v1  ;;  %v6381_v48 = vor.u32 %v6380_v28, %v6379_v19  ;;  %v6496_v1 = vor.u32 %v6495_v0, %v6494_v45  ;;  %v6953_v19 = vld [vmem:[#allocation5 + $0xf] ss:$16 sm:$0xc]  ;;  %v6840_v45 = vld [vmem:[#allocation5 + $0xe] ss:$16 sm:$0x30] }
 0x44c   : > { %9781 = vmatprep.subr.bf16.mxu0 %v10729_v53  ;;  %9801 = vmatprep.subr.bf16.mxu1 %v10729_v53  ;;  %v10631_v28 = vld [vmem:[%s12566_s5 + $0x3a8] sm:$0xff]  }
 0x44d   : > { %v10632_v0 = vld [vmem:[%s12566_s5 + $0x3e8] sm:$0xff]  }
 0x44f   : > { %9782 = vmatpush3.bf16.msra.mxu0 %v10571_v4  ;;  %9802 = vmatpush3.bf16.msra.mxu1 %v10572_v18  ;;  %v6383_v4 = vor.u32 %v6382_v49, %v6381_v48  ;;  %v6498_v18 = vor.u32 %v6497_v3, %v6496_v1  ;;  %v6955_v48 = vld [vmem:[#allocation5 + $0xf] ss:$16 sm:$0x30] }
 0x450   : > { %9807 = vmatprep.subr.bf16.mxu0 %v10729_v53  ;;  %9827 = vmatprep.subr.bf16.mxu1 %v10729_v53 }
 0x452   : > { %9784 = vmatmul.mubr.bf16.vlgmr.msra.gmra.mrb[12].mxu0 %v5924_v47  ;;  %9804 = vmatmul.mubr.bf16.vlgmr.msra.gmra.mrb[12].mxu1 %v6039_v22  ;;  %v10604_v47 = vld [vmem:[%s12566_s5 + $0x2f8] sm:$0xff]   ;;  %v6384_v22 = vpack.c.bf16 %v6383_v4, %v6383_v4 }
 0x453   : > { %9808 = vmatpush3.bf16.msra.mxu0 %v10573_v39  ;;  %9828 = vmatpush3.bf16.msra.mxu1 %v10574_v31  ;;  %v6499_v39 = vpack.c.bf16 %v6498_v18, %v6498_v18  ;;  %v10605_v31 = vld [vmem:[%s12566_s5 + $0x300] sm:$0xff]   ;;  %v10633_v18 = vld [vmem:[%s12566_s5 + $0x3b0] sm:$0xff]  }
 0x454   : > { %9809 = vmatprep.subr.bf16.mxu0 %v10729_v53  ;;  %9829 = vmatprep.subr.bf16.mxu1 %v10729_v53 }
 0x455   : > { %9823 = vmatprep.mubr.msk.bf16.mxu0 %vm10730_vm1, %v10729_v53  ;;  %9843 = vmatprep.mubr.msk.bf16.mxu1 %vm10730_vm1, %v10729_v53 }
 0x457   : > { %9810 = vmatpush3.bf16.msra.mxu0 %v10575_v10  ;;  %9830 = vmatpush3.bf16.msra.mxu1 %v10576_v6  ;;  %v10606_v10 = vld [vmem:[%s12566_s5 + $0x340] sm:$0xff]   ;;  %v10607_v6 = vld [vmem:[%s12566_s5 + $0x308] sm:$0xff]  }
 0x458   : > { %9811 = vmatprep.subr.bf16.mxu0 %v10729_v53  ;;  %9831 = vmatprep.subr.bf16.mxu1 %v10729_v53 }
 0x45b   : > { %9812 = vmatpush3.bf16.msra.mxu0 %v10577_v8  ;;  %9832 = vmatpush3.bf16.msra.mxu1 %v10578_v60  ;;  %v10608_v8 = vld [vmem:[%s12566_s5 + $0x348] sm:$0xff]   ;;  %v10609_v60 = vld [vmem:[%s12566_s5 + $0x310] sm:$0xff]  }
 0x45c   : > { %9813 = vmatprep.subr.bf16.mxu0 %v10729_v53  ;;  %9833 = vmatprep.subr.bf16.mxu1 %v10729_v53 }
 0x45f   : > { %9814 = vmatpush3.bf16.msra.mxu0 %v10579_v43  ;;  %9834 = vmatpush3.bf16.msra.mxu1 %v10580_v57  ;;  %v10610_v43 = vld [vmem:[%s12566_s5 + $0x350] sm:$0xff]   ;;  %v10611_v57 = vld [vmem:[%s12566_s5 + $0x318] sm:$0xff]  }
 0x460   : > { %9815 = vmatprep.subr.bf16.mxu0 %v10729_v53  ;;  %9835 = vmatprep.subr.bf16.mxu1 %v10729_v53 }
 0x463   : > { %9816 = vmatpush3.bf16.msra.mxu0 %v10581_v51  ;;  %9836 = vmatpush3.bf16.msra.mxu1 %v10582_v42  ;;  %v6608_v51 = vld [vmem:[#allocation5 + $0xc] ss:$16 sm:$0xc]  ;;  %v6722_v42 = vld [vmem:[#allocation5 + $0xd] ss:$16 sm:$0x3] }
 0x464   : > { %9817 = vmatprep.subr.bf16.mxu0 %v10729_v53  ;;  %9837 = vmatprep.subr.bf16.mxu1 %v10729_v53  ;;  %v6609_v26 = vor.u32 %v6608_v51, %v6607_v24  ;;  %v6724_v9 = vor.u32 %v6723_v15, %v6722_v42 }
 0x466   : > { %v6726_v41 = vor.u32 %v6725_v13, %v6724_v9 }
 0x467   : > { %9818 = vmatpush3.bf16.msra.mxu0 %v10583_v63  ;;  %9838 = vmatpush3.bf16.msra.mxu1 %v10584_v12  ;;  %v6610_v63 = vld [vmem:[#allocation5 + $0xc] ss:$16 sm:$0x30] }
 0x468   : > { %9819 = vmatprep.subr.bf16.mxu0 %v10729_v53  ;;  %9839 = vmatprep.subr.bf16.mxu1 %v10729_v53  ;;  %v10616_v12 = vld [vmem:[%s12566_s5 + $0x368] sm:$0xff]   ;;  %v6611_v20 = vor.u32 %v6610_v63, %v6609_v26 }
 0x46b   : > { %9820 = vmatpush3.bf16.msra.mxu0 %v10585_v44  ;;  %9840 = vmatpush3.bf16.msra.mxu1 %v10586_v36  ;;  %v6612_v44 = vld [vmem:[#allocation5 + $0xc] ss:$16 sm:$0xc0]  ;;  %v10618_v36 = vld [vmem:[%s12566_s5 + $0x370] sm:$0xff]  }
 0x46c   : > { %9821 = vmatprep.subr.bf16.mxu0 %v10729_v53  ;;  %9841 = vmatprep.subr.bf16.mxu1 %v10729_v53 }
 0x46f   : > { %9822 = vmatpush3.bf16.msra.mxu0 %v10587_v37  ;;  %9842 = vmatpush3.bf16.msra.mxu1 %v10588_v25  ;;  %v6613_v37 = vor.u32 %v6612_v44, %v6611_v20  ;;  %v6728_v25 = vor.u32 %v6727_v34, %v6726_v41 }
 0x470   : > { %9847 = vmatprep.subr.bf16.mxu0 %v10729_v53  ;;  %9867 = vmatprep.subr.bf16.mxu1 %v10729_v53 }
 0x472   : > { %9824 = vmatmul.mubr.bf16.vlgmr.msra.gmra.mrb[16].mxu0 %v6154_v46  ;;  %9844 = vmatmul.mubr.bf16.vlgmr.msra.gmra.mrb[16].mxu1 %v6269_v35  ;;  %v10620_v46 = vld [vmem:[%s12566_s5 + $0x378] sm:$0xff]   ;;  %v6614_v35 = vpack.c.bf16 %v6613_v37, %v6613_v37 }
 0x473   : > { %9848 = vmatpush3.bf16.msra.mxu0 %v10589_v17  ;;  %9868 = vmatpush3.bf16.msra.mxu1 %v10590_v33  ;;  %v6729_v17 = vpack.c.bf16 %v6728_v25, %v6728_v25  ;;  %v10621_v33 = vld [vmem:[%s12566_s5 + $0x380] sm:$0xff]  }
 0x474   : > { %9849 = vmatprep.subr.bf16.mxu0 %v10729_v53  ;;  %9869 = vmatprep.subr.bf16.mxu1 %v10729_v53 }
 0x475   : > { %9863 = vmatprep.mubr.msk.bf16.mxu0 %vm10730_vm1, %v10729_v53  ;;  %9883 = vmatprep.mubr.msk.bf16.mxu1 %vm10730_vm1, %v10729_v53 }
 0x477   : > { %9850 = vmatpush3.bf16.msra.mxu0 %v10591_v29  ;;  %9870 = vmatpush3.bf16.msra.mxu1 %v10592_v61  ;;  %v10622_v29 = vld [vmem:[%s12566_s5 + $0x3c0] sm:$0xff]   ;;  %v10623_v61 = vld [vmem:[%s12566_s5 + $0x388] sm:$0xff]  }
 0x478   : > { %9851 = vmatprep.subr.bf16.mxu0 %v10729_v53  ;;  %9871 = vmatprep.subr.bf16.mxu1 %v10729_v53 }
 0x47b   : > { %9852 = vmatpush3.bf16.msra.mxu0 %v10593_v50  ;;  %9872 = vmatpush3.bf16.msra.mxu1 %v10594_v52  ;;  %v10624_v50 = vld [vmem:[%s12566_s5 + $0x3c8] sm:$0xff]   ;;  %v10625_v52 = vld [vmem:[%s12566_s5 + $0x390] sm:$0xff]  }
 0x47c   : > { %9853 = vmatprep.subr.bf16.mxu0 %v10729_v53  ;;  %9873 = vmatprep.subr.bf16.mxu1 %v10729_v53 }
 0x47f   : > { %9854 = vmatpush3.bf16.msra.mxu0 %v10595_v54  ;;  %9874 = vmatpush3.bf16.msra.mxu1 %v10596_v30  ;;  %v10626_v54 = vld [vmem:[%s12566_s5 + $0x3d0] sm:$0xff]   ;;  %v10627_v30 = vld [vmem:[%s12566_s5 + $0x398] sm:$0xff]  }
 0x480   : > { %9855 = vmatprep.subr.bf16.mxu0 %v10729_v53  ;;  %9875 = vmatprep.subr.bf16.mxu1 %v10729_v53 }
 0x483   : > { %9856 = vmatpush3.bf16.msra.mxu0 %v10597_v32  ;;  %9876 = vmatpush3.bf16.msra.mxu1 %v10598_v14  ;;  %v10628_v32 = vld [vmem:[%s12566_s5 + $0x3d8] sm:$0xff]   ;;  %v10629_v14 = vld [vmem:[%s12566_s5 + $0x3a0] sm:$0xff]  }
 0x484   : > { %9857 = vmatprep.subr.bf16.mxu0 %v10729_v53  ;;  %9877 = vmatprep.subr.bf16.mxu1 %v10729_v53 }
 0x487   : > { %9858 = vmatpush3.bf16.msra.mxu0 %v10599_v5  ;;  %9878 = vmatpush3.bf16.msra.mxu1 %v10600_v59  ;;  %v6839_v5 = vor.u32 %v6838_v55, %v6837_v7  ;;  %v6954_v59 = vor.u32 %v6953_v19, %v6952_v40  ;;  %v10643_v19 = vld [vmem:[%s12568_s7 + $0x30] sm:$0xff]  }
 0x488   : > { %9859 = vmatprep.subr.bf16.mxu0 %v10729_v53  ;;  %9879 = vmatprep.subr.bf16.mxu1 %v10729_v53 }
 0x48b   : > { %9860 = vmatpush3.bf16.msra.mxu0 %v10601_v2  ;;  %9880 = vmatpush3.bf16.msra.mxu1 %v10602_v11  ;;  %v6841_v11 = vor.u32 %v6840_v45, %v6839_v5  ;;  %v10645_v45 = vld [vmem:[%s12570_s9] sm:$0xff]  }
 0x48c   : > { %9861 = vmatprep.subr.bf16.mxu0 %v10729_v53  ;;  %9881 = vmatprep.subr.bf16.mxu1 %v10729_v53 }
 0x48f   : > { %9862 = vmatpush3.bf16.msra.mxu0 %v10603_v56  ;;  %9882 = vmatpush3.bf16.msra.mxu1 %v10604_v47  ;;  %v6842_v47 = vld [vmem:[#allocation5 + $0xe] ss:$16 sm:$0xc0] }
 0x490   : > { %9887 = vmatprep.subr.bf16.mxu0 %v10729_v53  ;;  %9907 = vmatprep.subr.bf16.mxu1 %v10729_v53 }
 0x492   : > { %9864 = vmatmul.mubr.bf16.vlgmr.msra.gmra.mrb[20].mxu0 %v6384_v22  ;;  %9884 = vmatmul.mubr.bf16.vlgmr.msra.gmra.mrb[20].mxu1 %v6499_v39  ;;  %v6956_v22 = vor.u32 %v6955_v48, %v6954_v59  ;;  %v10646_v59 = vld [vmem:[%s12570_s9 + $0x8] sm:$0xff]   ;;  %v10648_v48 = vld [vmem:[%s12570_s9 + $0x18] sm:$0xff]  }
 0x493   : > { %9888 = vmatpush3.bf16.msra.mxu0 %v10605_v31  ;;  %9908 = vmatpush3.bf16.msra.mxu1 %v10606_v10  ;;  %v10634_v10 = vld [vmem:[%s12566_s5 + $0x3f0] sm:$0xff]  }
 0x494   : > { %9889 = vmatprep.subr.bf16.mxu0 %v10729_v53  ;;  %9909 = vmatprep.subr.bf16.mxu1 %v10729_v53 }
 0x495   : > { %9903 = vmatprep.mubr.msk.bf16.mxu0 %vm10730_vm1, %v10729_v53  ;;  %9923 = vmatprep.mubr.msk.bf16.mxu1 %vm10730_vm1, %v10729_v53 }
 0x497   : > { %9890 = vmatpush3.bf16.msra.mxu0 %v10607_v6  ;;  %9910 = vmatpush3.bf16.msra.mxu1 %v10608_v8  ;;  %v6957_v6 = vld [vmem:[#allocation5 + $0xf] ss:$16 sm:$0xc0] }
 0x498   : > { %9891 = vmatprep.subr.bf16.mxu0 %v10729_v53  ;;  %9911 = vmatprep.subr.bf16.mxu1 %v10729_v53 }
 0x49b   : > { %9892 = vmatpush3.bf16.msra.mxu0 %v10609_v60  ;;  %9912 = vmatpush3.bf16.msra.mxu1 %v10610_v43  ;;  %v6843_v60 = vor.u32 %v6842_v47, %v6841_v11  ;;  %v10635_v43 = vld [vmem:[%s12566_s5 + $0x3b8] sm:$0xff]  }
 0x49c   : > { %9893 = vmatprep.subr.bf16.mxu0 %v10729_v53  ;;  %9913 = vmatprep.subr.bf16.mxu1 %v10729_v53 }
 0x49f   : > { %9894 = vmatpush3.bf16.msra.mxu0 %v10611_v57  ;;  %9914 = vmatpush3.bf16.msra.mxu1 %v10612_v58  ;;  %v6958_v57 = vor.u32 %v6957_v6, %v6956_v22  ;;  %v10636_v58 = vld [vmem:[%s12566_s5 + $0x3f8] sm:$0xff]  }
 0x4a0   : > { %9895 = vmatprep.subr.bf16.mxu0 %v10729_v53  ;;  %9915 = vmatprep.subr.bf16.mxu1 %v10729_v53 }
 0x4a3   : > { %9896 = vmatpush3.bf16.msra.mxu0 %v10613_v23  ;;  %9916 = vmatpush3.bf16.msra.mxu1 %v10614_v16  ;;  %v6844_v23 = vpack.c.bf16 %v6843_v60, %v6843_v60  ;;  %v6959_v16 = vpack.c.bf16 %v6958_v57, %v6958_v57 }
 0x4a4   : > { %9897 = vmatprep.subr.bf16.mxu0 %v10729_v53  ;;  %9917 = vmatprep.subr.bf16.mxu1 %v10729_v53 }
 0x4a7   : > { %9898 = vmatpush3.bf16.msra.mxu0 %v10615_v62  ;;  %9918 = vmatpush3.bf16.msra.mxu1 %v10616_v12 }
 0x4a8   : > { %9899 = vmatprep.subr.bf16.mxu0 %v10729_v53  ;;  %9919 = vmatprep.subr.bf16.mxu1 %v10729_v53 }
 0x4ab   : > { %9900 = vmatpush3.bf16.msra.mxu0 %v10617_v27  ;;  %9920 = vmatpush3.bf16.msra.mxu1 %v10618_v36 }
 0x4ac   : > { %9901 = vmatprep.subr.bf16.mxu0 %v10729_v53  ;;  %9921 = vmatprep.subr.bf16.mxu1 %v10729_v53 }
 0x4af   : > { %9902 = vmatpush3.bf16.msra.mxu0 %v10619_v21  ;;  %9922 = vmatpush3.bf16.msra.mxu1 %v10620_v46 }
 0x4b0   : > { %9927 = vmatprep.subr.bf16.mxu0 %v10729_v53  ;;  %9947 = vmatprep.subr.bf16.mxu1 %v10729_v53 }
 0x4b2   : > { %9904 = vmatmul.mubr.bf16.vlgmr.msra.gmra.mrb[24].mxu0 %v6614_v35  ;;  %9924 = vmatmul.mubr.bf16.vlgmr.msra.gmra.mrb[24].mxu1 %v6729_v17  ;;  %v10637_v35 = vld [vmem:[%s12568_s7] sm:$0xff]   ;;  %v10638_v17 = vld [vmem:[%s12568_s7 + $0x8] sm:$0xff]  }
 0x4b3   : > { %9928 = vmatpush3.bf16.msra.mxu0 %v10621_v33  ;;  %9948 = vmatpush3.bf16.msra.mxu1 %v10622_v29  ;;  %v10639_v33 = vld [vmem:[%s12568_s7 + $0x10] sm:$0xff]   ;;  %v10640_v29 = vld [vmem:[%s12568_s7 + $0x18] sm:$0xff]  }
 0x4b4   : > { %9929 = vmatprep.subr.bf16.mxu0 %v10729_v53  ;;  %9949 = vmatprep.subr.bf16.mxu1 %v10729_v53 }
 0x4b5   : > { %9943 = vmatprep.mubr.msk.bf16.mxu0 %vm10730_vm1, %v10729_v53  ;;  %9963 = vmatprep.mubr.msk.bf16.mxu1 %vm10730_vm1, %v10729_v53 }
 0x4b7   : > { %9930 = vmatpush3.bf16.msra.mxu0 %v10623_v61  ;;  %9950 = vmatpush3.bf16.msra.mxu1 %v10624_v50  ;;  %v10641_v61 = vld [vmem:[%s12568_s7 + $0x20] sm:$0xff]   ;;  %v10642_v50 = vld [vmem:[%s12568_s7 + $0x28] sm:$0xff]  }
 0x4b8   : > { %9931 = vmatprep.subr.bf16.mxu0 %v10729_v53  ;;  %9951 = vmatprep.subr.bf16.mxu1 %v10729_v53 }
 0x4bb   : > { %9932 = vmatpush3.bf16.msra.mxu0 %v10625_v52  ;;  %9952 = vmatpush3.bf16.msra.mxu1 %v10626_v54 }
 0x4bc   : > { %9933 = vmatprep.subr.bf16.mxu0 %v10729_v53  ;;  %9953 = vmatprep.subr.bf16.mxu1 %v10729_v53 }
 0x4bf   : > { %9934 = vmatpush3.bf16.msra.mxu0 %v10627_v30  ;;  %9954 = vmatpush3.bf16.msra.mxu1 %v10628_v32 }
 0x4c0   : > { %9935 = vmatprep.subr.bf16.mxu0 %v10729_v53  ;;  %9955 = vmatprep.subr.bf16.mxu1 %v10729_v53 }
 0x4c3   : > { %9936 = vmatpush3.bf16.msra.mxu0 %v10629_v14  ;;  %9956 = vmatpush3.bf16.msra.mxu1 %v10630_v38 }
 0x4c4   : > { %9937 = vmatprep.subr.bf16.mxu0 %v10729_v53  ;;  %9957 = vmatprep.subr.bf16.mxu1 %v10729_v53 }
 0x4c5   : > { %v5362_v2 = vpop.f32.mrb[0].mxu0  ;;  %v5450_v49 = vpop.f32.mrb[0].mxu1 }
 0x4c6   : > { %v9665_v1 = vpop.f32.mrb[1].mxu0  ;;  %v5451_v3 = vadd.f32 %v5450_v49, %v5362_v2  ;;  %v9685_v4 = vpop.f32.mrb[1].mxu1  ;;  %v10649_v2 = vld [vmem:[%s12570_s9 + $0x20] sm:$0xff]   ;;  %v10650_v49 = vld [vmem:[%s12570_s9 + $0x28] sm:$0xff]  }
 0x4c7   : > { %v5365_v56 = vpop.f32.mrb[2].mxu0  ;;  %9938 = vmatpush3.bf16.msra.mxu0 %v10631_v28  ;;  %v5453_v39 = vpop.f32.mrb[2].mxu1  ;;  %9958 = vmatpush3.bf16.msra.mxu1 %v10632_v0  ;;  %v10644_v28 = vld [vmem:[%s12568_s7 + $0x38] sm:$0xff]   ;;  %v10647_v0 = vld [vmem:[%s12570_s9 + $0x10] sm:$0xff]  }
 0x4c8   : > { %v9666_v31 = vpop.f32.mrb[3].mxu0  ;;  %9939 = vmatprep.subr.bf16.mxu0 %v10729_v53  ;;  %v9686_v8 = vpop.f32.mrb[3].mxu1  ;;  %9959 = vmatprep.subr.bf16.mxu1 %v10729_v53 }
 0x4cb   : > { %9940 = vmatpush3.bf16.msra.mxu0 %v10633_v18  ;;  %9960 = vmatpush3.bf16.msra.mxu1 %v10634_v10 }
 0x4cc   : > { %9941 = vmatprep.subr.bf16.mxu0 %v10729_v53  ;;  %9961 = vmatprep.subr.bf16.mxu1 %v10729_v53 }
 0x4cf   : > { %9942 = vmatpush3.bf16.msra.mxu0 %v10635_v43  ;;  %9962 = vmatpush3.bf16.msra.mxu1 %v10636_v58 }
 0x4d0   : > { %9967 = vmatprep.subr.bf16.mxu0 %v10729_v53  ;;  %9987 = vmatprep.subr.bf16.mxu1 %v10729_v53 }
 0x4d2   : > { %9944 = vmatmul.mubr.bf16.vlgmr.msra.gmra.mrb[28].mxu0 %v6844_v23  ;;  %9964 = vmatmul.mubr.bf16.vlgmr.msra.gmra.mrb[28].mxu1 %v6959_v16 }
 0x4d3   : > { %9983 = vmatprep.mubr.msk.bf16.mxu0 %vm10730_vm1, %v10729_v53  ;;  %10003 = vmatprep.mubr.msk.bf16.mxu1 %vm10730_vm1, %v10729_v53 }
 0x4d4   : > { %9968 = vmatpush3.bf16.msra.mxu0 %v10637_v35  ;;  %9988 = vmatpush3.bf16.msra.mxu1 %v10645_v45 }
 0x4d5   : > { %9969 = vmatprep.subr.bf16.mxu0 %v10729_v53  ;;  %9989 = vmatprep.subr.bf16.mxu1 %v10729_v53 }
 0x4d8   : > { %9970 = vmatpush3.bf16.msra.mxu0 %v10638_v17  ;;  %9990 = vmatpush3.bf16.msra.mxu1 %v10646_v59 }
 0x4d9   : > { %9971 = vmatprep.subr.bf16.mxu0 %v10729_v53  ;;  %9991 = vmatprep.subr.bf16.mxu1 %v10729_v53 }
 0x4dc   : > { %9972 = vmatpush3.bf16.msra.mxu0 %v10639_v33  ;;  %9992 = vmatpush3.bf16.msra.mxu1 %v10647_v0 }
 0x4dd   : > { %9973 = vmatprep.subr.bf16.mxu0 %v10729_v53  ;;  %9993 = vmatprep.subr.bf16.mxu1 %v10729_v53 }
 0x4e0   : > { %9974 = vmatpush3.bf16.msra.mxu0 %v10640_v29  ;;  %9994 = vmatpush3.bf16.msra.mxu1 %v10648_v48 }
 0x4e1   : > { %9975 = vmatprep.subr.bf16.mxu0 %v10729_v53  ;;  %9995 = vmatprep.subr.bf16.mxu1 %v10729_v53 }
 0x4e4   : > { %9976 = vmatpush3.bf16.msra.mxu0 %v10641_v61  ;;  %9996 = vmatpush3.bf16.msra.mxu1 %v10649_v2 }
 0x4e5   : > { %v5564_v24 = vpop.f32.mrb[4].mxu0  ;;  %v5679_v42 = vpop.f32.mrb[4].mxu1  ;;  %9977 = vmatprep.subr.bf16.mxu0 %v10729_v53  ;;  %9997 = vmatprep.subr.bf16.mxu1 %v10729_v53 }
 0x4e6   : > { %v5570_v51 = vadd.f32 %v5564_v24, %v5451_v3  ;;  %v9705_v15 = vpop.f32.mrb[5].mxu0  ;;  %v9725_v26 = vpop.f32.mrb[5].mxu1 }
 0x4e7   : > { %v5567_v62 = vpop.f32.mrb[6].mxu0  ;;  %v5682_v9 = vpop.f32.mrb[6].mxu1 }
 0x4e8   : > { %v5685_v63 = vadd.f32 %v5679_v42, %v5570_v51  ;;  %v9706_v12 = vpop.f32.mrb[7].mxu0  ;;  %v9726_v13 = vpop.f32.mrb[7].mxu1  ;;  %9978 = vmatpush3.bf16.msra.mxu0 %v10642_v50  ;;  %9998 = vmatpush3.bf16.msra.mxu1 %v10650_v49  ;;  %v10651_v50 = vld [vmem:[%s12570_s9 + $0x30] sm:$0xff]  }
 0x4e9   : > { %9979 = vmatprep.subr.bf16.mxu0 %v10729_v53  ;;  %9999 = vmatprep.subr.bf16.mxu1 %v10729_v53 }
 0x4ec   : > { %9980 = vmatpush3.bf16.msra.mxu0 %v10643_v19  ;;  %10000 = vmatpush3.bf16.msra.mxu1 %v10651_v50 }
 0x4ed   : > { %9981 = vmatprep.subr.bf16.mxu0 %v10729_v53  ;;  %10001 = vmatprep.subr.bf16.mxu1 %v10729_v53  ;;  %v8445_v53 = vld [vmem:[%s12571_s10] ss:$0 sm:$0xff] }
 0x4f0   : > { %9982 = vmatpush3.bf16.msra.mxu0 %v10644_v28 }
 0x505   : > { %v5794_v20 = vpop.f32.mrb[8].mxu0  ;;  %v5909_v44 = vpop.f32.mrb[8].mxu1 }
 0x506   : > { %v5800_v27 = vadd.f32 %v5794_v20, %v5685_v63  ;;  %v9745_v41 = vpop.f32.mrb[9].mxu0  ;;  %v9765_v36 = vpop.f32.mrb[9].mxu1 }
 0x507   : > { %v5797_v34 = vpop.f32.mrb[10].mxu0  ;;  %v5912_v21 = vpop.f32.mrb[10].mxu1 }
 0x508   : > { %v5915_v37 = vadd.f32 %v5909_v44, %v5800_v27  ;;  %v9746_v25 = vpop.f32.mrb[11].mxu0  ;;  %v9766_v46 = vpop.f32.mrb[11].mxu1  ;;  %v8435_v34 = vld [vmem:[%s12567_s6] ss:$0 sm:$0xff] }
 0x525   : > { %v6024_v52 = vpop.f32.mrb[12].mxu0  ;;  %v6139_v30 = vpop.f32.mrb[12].mxu1 }
 0x526   : > { %v6030_v54 = vadd.f32 %v6024_v52, %v5915_v37  ;;  %v9785_v32 = vpop.f32.mrb[13].mxu0  ;;  %v9805_v14 = vpop.f32.mrb[13].mxu1  ;;  %v10652_v52 = vld [vmem:[%s12570_s9 + $0x38] sm:$0xff]  }
 0x527   : > { %v6027_v38 = vpop.f32.mrb[14].mxu0  ;;  %v6142_v55 = vpop.f32.mrb[14].mxu1  ;;  %10002 = vmatpush3.bf16.msra.mxu1 %v10652_v52 }
 0x528   : > { %v6145_v7 = vadd.f32 %v6139_v30, %v6030_v54  ;;  %v9786_v40 = vpop.f32.mrb[15].mxu0  ;;  %v9806_v5 = vpop.f32.mrb[15].mxu1  ;;  %v8436_v54 = vld [vmem:[%s12569_s8] ss:$0 sm:$0xff] }
 0x545   : > { %v6254_v1 = vpop.f32.mrb[16].mxu0  ;;  %v6369_v3 = vpop.f32.mrb[16].mxu1 }
 0x546   : > { %v6260_v11 = vadd.f32 %v6254_v1, %v6145_v7  ;;  %v9825_v4 = vpop.f32.mrb[17].mxu0  ;;  %v9845_v56 = vpop.f32.mrb[17].mxu1 }
 0x547   : > { %v6257_v18 = vpop.f32.mrb[18].mxu0  ;;  %v6372_v22 = vpop.f32.mrb[18].mxu1 }
 0x548   : > { %v6375_v47 = vadd.f32 %v6369_v3, %v6260_v11  ;;  %v9826_v39 = vpop.f32.mrb[19].mxu0  ;;  %v9846_v31 = vpop.f32.mrb[19].mxu1 }
 0x565   : > { %v6484_v10 = vpop.f32.mrb[20].mxu0  ;;  %v6599_v8 = vpop.f32.mrb[20].mxu1 }
 0x566   : > { %v6490_v6 = vadd.f32 %v6484_v10, %v6375_v47  ;;  %v9865_v60 = vpop.f32.mrb[21].mxu0  ;;  %v9885_v43 = vpop.f32.mrb[21].mxu1 }
 0x567   : > { %v6487_v57 = vpop.f32.mrb[22].mxu0  ;;  %v6602_v23 = vpop.f32.mrb[22].mxu1 }
 0x568   : > { %v6605_v58 = vadd.f32 %v6599_v8, %v6490_v6  ;;  %v9866_v16 = vpop.f32.mrb[23].mxu0  ;;  %v9886_v24 = vpop.f32.mrb[23].mxu1 }
 0x585   : > { %v6714_v51 = vpop.f32.mrb[24].mxu0  ;;  %v6829_v15 = vpop.f32.mrb[24].mxu1 }
 0x586   : > { %v6720_v42 = vadd.f32 %v6714_v51, %v6605_v58  ;;  %v9905_v26 = vpop.f32.mrb[25].mxu0  ;;  %v9925_v62 = vpop.f32.mrb[25].mxu1 }
 0x587   : > { %v6717_v63 = vpop.f32.mrb[26].mxu0  ;;  %v6832_v12 = vpop.f32.mrb[26].mxu1 }
 0x588   : > { %v6835_v9 = vadd.f32 %v6829_v15, %v6720_v42  ;;  %v9906_v13 = vpop.f32.mrb[27].mxu0  ;;  %v9926_v20 = vpop.f32.mrb[27].mxu1 }
 0x5a5   : > { %v6944_v27 = vpop.f32.mrb[28].mxu0  ;;  %v7059_v41 = vpop.f32.mrb[28].mxu1 }
 0x5a6   : > { %v6950_v44 = vadd.f32 %v6944_v27, %v6835_v9  ;;  %v9945_v36 = vpop.f32.mrb[29].mxu0  ;;  %v9965_v37 = vpop.f32.mrb[29].mxu1 }
 0x5a7   : > { %v6947_v21 = vpop.f32.mrb[30].mxu0  ;;  %v7062_v46 = vpop.f32.mrb[30].mxu1 }
 0x5a8   : > { %v7065_v25 = vadd.f32 %v7059_v41, %v6950_v44  ;;  %v9946_v35 = vpop.f32.mrb[31].mxu0  ;;  %v9966_v17 = vpop.f32.mrb[31].mxu1 }
 0x5aa   : > { %v7073_v33 = vadd.f32 %v8435_v34, %v7065_v25 }
 0x5ac   : > { %v7074_v29 = vmax.f32 %v7073_v33, 0.0 }
 0x5ae   : > { %v7075_v61 = vpack.c.bf16 %v7074_v29, %v7074_v29 }
 0x5b0   : > { %9984 = vmatmul.mubr.bf16.vlgmr.msra.gmra.mrb[32].mxu0 %v7075_v61 }
 0x683   : > { %v7181_v30 = vpop.f32.mrb[32].mxu0 }
 0x684   : > { %v7182_v32 = vadd.f32 %v8436_v54, %v7181_v30  ;;  %v9985_v14 = vpop.f32.mrb[33].mxu0 }
 0x685   : > { %v7184_v38 = vpop.f32.mrb[34].mxu0 }
 0x686   : > { %v7187_v7 = vmax.f32 %v7182_v32, 0.0  ;;  %v9986_v55 = vpop.f32.mrb[35].mxu0 }
 0x688   : > { %v7188_v40 = vpack.c.bf16 %v7187_v7, %v7187_v7 }
 0x68a   : > { %10004 = vmatmul.mubr.bf16.vlgmr.msra.gmra.mrb[32].mxu1 %v7188_v40 }
 0x75d   : > { %v7294_v19 = vpop.f32.mrb[32].mxu1 }
 0x75e   : > { %v7295_v5 = vadd.f32 %v8445_v53, %v7294_v19  ;;  %v10005_v28 = vpop.f32.mrb[33].mxu1 }
 0x75f   : > { %v7297_v45 = vpop.f32.mrb[34].mxu1 }
 0x760   : > { %7300 = vmax.xlane.f32.xlu0 %v7295_v5  ;;  %v10006_v59 = vpop.f32.mrb[35].mxu1 }
 0x7ed   : > { %v7301_v0 = vpop.xlane.xlu0 %7300 }
 0x7ee   : > { %v7302_v48 = vsub.f32 %v7295_v5, %v7301_v0 }
 0x7f0   : > { %v7303_v2 = vmul.f32 1.442695, %v7302_v48 }
 0x7f2   : > { %10653 = vpow2.f32 %v7303_v2 }
 0x7fc   : > { %v10654_v49 = vpop.eup %10653 }
 0x7fd   : > { %7305 = vadd.xlane.f32.xlu0 %v10654_v49 }
 0x88a   : > { %v7306_v1 = vpop.xlane.xlu0 %7305 }
 0x88b   : > { %10655 = vrcp.f32 %v7306_v1 }
 0x895   : > { %v10656_v11 = vpop.eup %10655 }
 0x896   : > { %v7308_v3 = vmul.f32 %v10656_v11, %v10654_v49 }
 0x898   : > { %7309 = vst [vmem:[%s12582_s19] sm:$0xff] %v7308_v3 }
 0x899   : > { %10670 = shalt.err (!%p10667_p4)
}
 0x89a   : > { %s10671_s12 = scalar_lea.hbm %s12515_s0, 128  ;;  %s10675_s14 = scalar_lea.hbm %s12572_s11, 256 }
 0x89b   : > { %p10672_p7 = scmp.ne.s32.totalorder %s12515_s0, %s10671_s12  ;;  %p10676_p10 = scmp.lt.u32.totalorder %s12515_s0, %s12572_s11 }
 0x89c   : > { %p10677_p11 = scmp.lt.u32.totalorder %s10675_s14, %s10671_s12  ;;  %p10679_p13 = scmp.lt.u32.totalorder %s10671_s12, %s12515_s0 }
 0x89d   : > { %p10673_p8 = pnand %p10672_p7, %p10830_p5 }
 0x89e   : > { %p10678_p12 = por %p10677_p11, %p10676_p10 }
 0x89f   : > { %p10674_p9 = pneg %p10673_p8 }
 0x8a0   : > { %p10680_p0 = por %p10679_p13, %p10678_p12 }
 0x8a2   : > { %p10681_p1 = pnand %p10680_p0, %p10674_p9 }
 0x8a4   : > { %10684 = shalt.err (!%p10681_p1)
}
 0x8a5   : > { %10204 = dma.vmem_to_hbm [thread:$0]  (%p10830_p5), %s12517_s13, 128, %s12515_s0, %s7311_s29  }
 0x8a6 PF: > { %p10210_p2 = scmp.ge.s32.totalorder %s10723_s20, 2  ;;  %s7336_s26 = sand.u32 1, %s10711_s17  }
 0x8a7   : > { %s7337_s22 = scalar_lea.sflag [#allocation7], %s7336_s26 }
 0x8a8   : > { %p10207_p3 = pnand %p10210_p2, %p10834_p6 }
 0x8aa   : > { %10706 = dma.done.wait (!%p10207_p3), %s7337_s22, 128  }
 0x8ab   : > { %10708 = vsyncadd (!%p10207_p3), %s7337_s22, 4294967168  ;;  %s12584_s21 = sld [smem:[#allocation9_spill]]  ;;  %s12585_s19 = sld [smem:[#allocation10_spill]] }
 0x8ac   : > { %p21_p4 = scmp.ge.s32.totalorder %s10817_s23, 4   ;;  %s12586_s17 = smov %s10715_s18 }
 0x8ad   : > { %s12588_s20 = smov %s10817_s23 }
 0x8ae   :  { %23 = sbr.rel (!%p21_p4) target bundleno = 5 (0x5), region = 196 }
 0x8b1   : > { %s12587_s18 = smov %s12584_s21 }
 0x8b5   :  { %7342 = vsyncpa [#allocation7], 1 }
 0x8b6   :  { %7344 = vsyncpa [#allocation7 + $0x1], 1 }

</bundles_post_ra>
